<compile_context>
chip_gen: v5e
topology: v5e:2x2
jax: 0.10.0
libtpu: 0.0.40
codegen_flags: <defaults>
</compile_context>

<pallas_src>
import math

import jax
import jax.numpy as jnp
from jax.experimental import pallas as pl
from jax.experimental.pallas import tpu as pltpu

# ---------------- model / problem sizes (small, deterministic) ----------------
B = 2          # n_batch
A = 4          # n_agents
F_DIM = 8      # actor_input_size (n_features); first 4 = [x, y, yaw, speed]
H = 32         # hidden_size
H2 = H // 2    # state-encoder bottleneck
E = 8          # n_entities (context tokens)
T = 6          # n_timesteps
NH = 2         # cross-attention heads
HD = H // NH   # head dim
OUT = 2        # decoder output_size: [acceleration, yaw_rate]

R = B * A      # folded "row" dimension (batch*agents on sublanes)
BE = B * E     # folded context rows

DT = 0.1
MAX_ACC = 4.0
MAX_YAW_RATE = 1.0

_TWO_PI = 2.0 * math.pi

# Trimmed Taylor coefficients (f32-sufficient on [-pi, pi] after range
# reduction): sin through x^11, cos through x^12.
_SIN_COEFFS = (1.0, -1.0 / 6.0, 1.0 / 120.0, -1.0 / 5040.0, 1.0 / 362880.0,
               -1.0 / 39916800.0)
_COS_COEFFS = (1.0, -0.5, 1.0 / 24.0, -1.0 / 720.0, 1.0 / 40320.0,
               -1.0 / 3628800.0, 1.0 / 479001600.0)


def _poly_horner(r2, coeffs):
    acc = coeffs[-1]
    for cf in reversed(coeffs[:-1]):
        acc = cf + r2 * acc
    return acc


def _sin_cos(x):
    """sin/cos via range reduction + Taylor series (shared by kernel & reference).

    TODO(synk): replace with native jnp.sin / jnp.cos if Mosaic lowering is available.
    """
    r = x - _TWO_PI * jnp.floor(x / _TWO_PI + 0.5)
    r2 = r * r
    s = r * _poly_horner(r2, _SIN_COEFFS)
    c = _poly_horner(r2, _COS_COEFFS)
    return s, c


# ------------------------------- Pallas kernel --------------------------------
def decoder_kernel(dyn_ref, ctx_ref, wbig_ref, wh_ref, misc_ref, out_ref):
    f32 = jnp.float32
    bf16 = jnp.bfloat16

    # -------- runtime data ----------------------------------------------------
    dyn = dyn_ref[...]                                  # (R, F + 1 + BE) f32
    state = dyn[:, 0:F_DIM]                             # (R, F)
    avail = dyn[:, F_DIM:F_DIM + 1]                     # (R, 1)
    cmask = dyn[:, F_DIM + 1:F_DIM + 1 + BE]            # (R, BE) additive mask
    ctx = ctx_ref[...]                                  # (BE, H) f32

    # -------- packed weights (bf16) -------------------------------------------
    wbig = wbig_ref[...]                                # (2H + H2, 4H) bf16
    w_lstm = wbig[0:2 * H, :]                           # (2H, 4H) gates i|f|o|g
    w3p = wbig[2 * H:2 * H + H2, 0:2 * H]               # (H2, 2H) = [w3 | w3@Wq/sqrt(HD)]

    wh = wh_ref[...]                                    # (H, 4H) bf16
    wkv = wh[:, 0:2 * H]                                # (H, 2H)
    wo = wh[:, 2 * H:3 * H]                             # (H, H)
    w2 = wh[:, 3 * H:3 * H + H2]                        # (H, H2)
    wout = wh[:, 3 * H + H2:3 * H + H2 + OUT]           # (H, OUT)

    # -------- f32 misc slab: w1 + all bias / LN rows ---------------------------
    misc = misc_ref[...]                                # (F + 4, 4H) f32
    w1 = misc[0:F_DIM, 0:H]                             # (F, H) f32 (raw-state layer)
    b_lstm = misc[F_DIM:F_DIM + 1, :]                   # (1, 4H)
    b3p = misc[F_DIM + 1:F_DIM + 2, 0:2 * H]            # (1, 2H)
    bkv = misc[F_DIM + 1:F_DIM + 2, 2 * H:4 * H]        # (1, 2H)
    b1 = misc[F_DIM + 2:F_DIM + 3, 0:H]
    bo = misc[F_DIM + 2:F_DIM + 3, H:2 * H]
    b2 = misc[F_DIM + 2:F_DIM + 3, 2 * H:2 * H + H2]
    bout = misc[F_DIM + 2:F_DIM + 3, 2 * H + H2:2 * H + H2 + OUT]
    ln_g = misc[F_DIM + 3:F_DIM + 4, 0:H]
    ln_b = misc[F_DIM + 3:F_DIM + 4, H:2 * H]

    # -------- hoisted broadcasts (not CSE'd across the static unroll) ---------
    b1_b = jnp.broadcast_to(b1, (R, H))
    b2_b = jnp.broadcast_to(b2, (R, H2))
    b3p_b = jnp.broadcast_to(b3p, (R, 2 * H))
    bo_b = jnp.broadcast_to(bo, (R, H))
    blstm_b = jnp.broadcast_to(b_lstm, (R, 4 * H))
    bout_b = jnp.broadcast_to(bout, (R, OUT))
    lng_b = jnp.broadcast_to(ln_g, (R, H))
    lnb_b = jnp.broadcast_to(ln_b, (R, H))
    av_b = jnp.broadcast_to(avail, (R, H))
    nav_b = 1.0 - av_b

    # k/v projection is timestep-invariant: hoist out of the recurrence.
    kv = (jnp.dot(ctx.astype(bf16), wkv, preferred_element_type=f32)
          + jnp.broadcast_to(bkv, (BE, 2 * H)))         # (BE, 2H) f32
    kv_bf = kv.astype(bf16)

    # Column-selection masks for the dynamics update.
    col = jax.lax.broadcasted_iota(jnp.int32, (R, F_DIM), 1)
    m_x = col == 0
    m_y = col == 1
    m_yaw = col == 2
    m_spd = col == 3

    h_t = jnp.zeros((R, H), f32)
    c_t = jnp.zeros((R, H), f32)
    outs = []

    for t in range(T):                                  # static unroll, T fixed
        # ---------------- state encoder MLP (F -> H -> H/2 -> H+q) -----------
        # First layer kept f32: it multiplies raw positions (magnitude ~25).
        e = jnp.maximum(jnp.dot(state, w1, preferred_element_type=f32) + b1_b, 0.0)
        e = jnp.maximum(jnp.dot(e.astype(bf16), w2, preferred_element_type=f32)
                        + b2_b, 0.0)
        # Last layer with Wq folded in: lanes [0:H] = emb, [H:2H] = pre-scaled q.
        emb_q = jnp.dot(e.astype(bf16), w3p, preferred_element_type=f32) + b3p_b
        emb = emb_q[:, 0:H]                                             # (R, H)
        q_bf = emb_q[:, H:2 * H].astype(bf16)                           # (R, H)

        # ---------------- masked multi-head cross attention + LN -------------
        head_outs = []
        for n in range(NH):                             # static head loop
            qh = q_bf[:, n * HD:(n + 1) * HD]                           # (R, HD)
            kh = kv_bf[:, n * HD:(n + 1) * HD]                          # (BE, HD)
            vh = kv_bf[:, H + n * HD:H + (n + 1) * HD]                  # (BE, HD)
            s = jax.lax.dot_general(qh, kh, (((1,), (1,)), ((), ())),
                                    preferred_element_type=f32) + cmask
            s = s - jnp.max(s, axis=-1, keepdims=True)
            p_att = jnp.exp(s)
            inv = pl.reciprocal(jnp.sum(p_att, axis=-1, keepdims=True),
                                approx=True)
            p_att = (p_att * inv).astype(bf16)
            head_outs.append(jnp.dot(p_att, vh, preferred_element_type=f32))
        o_cat = jnp.concatenate(head_outs, axis=-1).astype(bf16)        # (R, H)
        att = jnp.dot(o_cat, wo, preferred_element_type=f32) + bo_b

        y = emb + att                                                   # residual
        mu = jnp.mean(y, axis=-1, keepdims=True)
        var = jnp.mean((y - mu) * (y - mu), axis=-1, keepdims=True)
        x_att = (y - mu) * jax.lax.rsqrt(var + 1e-5) * lng_b + lnb_b    # (R, H)

        # ---------------- availability-masked LSTM (single fused matmul) -----
        xh = jnp.concatenate([x_att, h_t], axis=-1).astype(bf16)        # (R, 2H)
        gates = jnp.dot(xh, w_lstm, preferred_element_type=f32) + blstm_b
        sig = jax.nn.sigmoid(gates[:, 0:3 * H])        # i | f | o (contiguous)
        g_g = jnp.tanh(gates[:, 3 * H:4 * H])
        i_g = sig[:, 0:H]
        f_g = sig[:, H:2 * H]
        o_g = sig[:, 2 * H:3 * H]
        c_new = f_g * c_t + i_g * g_g
        h_new = o_g * jnp.tanh(c_new)
        h_t = av_b * h_new + nav_b * h_t
        c_t = av_b * c_new + nav_b * c_t

        # ---------------- action head ----------------------------------------
        action = (jnp.dot(h_t.astype(bf16), wout, preferred_element_type=f32)
                  + bout_b)                                             # (R, OUT)

        # ---------------- unicycle dynamics on first 4 features --------------
        yaw = state[:, 2:3]
        spd = state[:, 3:4]
        acc = jnp.clip(action[:, 0:1], -MAX_ACC, MAX_ACC)
        yr = jnp.clip(action[:, 1:2], -MAX_YAW_RATE, MAX_YAW_RATE)
        syaw, cyaw = _sin_cos(yaw)
        delta = (jnp.where(m_x, spd * cyaw * DT, 0.0)
                 + jnp.where(m_y, spd * syaw * DT, 0.0)
                 + jnp.where(m_yaw, yr * DT, 0.0)
                 + jnp.where(m_spd, acc * DT, 0.0))                     # (R, F)
        state = state + delta
        outs.append(state)

    # single lane-dense writeback (no per-step sub-vreg stores)
    out_ref[...] = jnp.concatenate(outs, axis=-1)


# --------------------------- one-time weight packing ---------------------------
def pack_params(p):
    """Packs all weights into 3 lane-dense buffers. Run ONCE, outside the jit."""
    hi = jax.lax.Precision.HIGHEST
    scale = 1.0 / math.sqrt(HD)

    # attention projections, heads fused along lanes
    wq = jnp.concatenate([p['wq'][n] for n in range(NH)], axis=1)     # (H, H)
    bq = jnp.concatenate([p['bq'][n] for n in range(NH)], axis=1)     # (1, H)
    wk = jnp.concatenate([p['wk'][n] for n in range(NH)], axis=1)
    bk = jnp.concatenate([p['bk'][n] for n in range(NH)], axis=1)
    wv = jnp.concatenate([p['wv'][n] for n in range(NH)], axis=1)
    bv = jnp.concatenate([p['bv'][n] for n in range(NH)], axis=1)
    wo = jnp.concatenate([p['wo'][n] for n in range(NH)], axis=0)     # (H, H)
    wkv = jnp.concatenate([wk, wv], axis=1)                           # (H, 2H)
    bkv = jnp.concatenate([bk, bv], axis=1)                           # (1, 2H)

    # Fold Wq (and the 1/sqrt(HD) score scale) into the last MLP layer.
    w3q = jnp.einsum('kh,hd->kd', p['w3'], wq, precision=hi) * scale  # (H2, H)
    b3q = (jnp.einsum('oh,hd->od', p['b3'], wq, precision=hi) + bq) * scale
    w3p = jnp.concatenate([p['w3'], w3q], axis=1)                     # (H2, 2H)
    b3p = jnp.concatenate([p['b3'], b3q], axis=1)                     # (1, 2H)

    # LSTM: reorder gates to i|f|o|g, stack [W_ih ; W_hh], fuse the biases.
    order = (0, 1, 3, 2)                      # torch order is i, f, g, o
    wih = jnp.concatenate([p['wih'][i] for i in order], axis=1)       # (H, 4H)
    whh = jnp.concatenate([p['whh'][i] for i in order], axis=1)       # (H, 4H)
    b_lstm = jnp.concatenate([p['bih'][i] + p['bhh'][i] for i in order], axis=1)
    w_lstm = jnp.concatenate([wih, whh], axis=0)                      # (2H, 4H)

    # -- wbig (bf16): [ W_lstm (2H,4H) ; pad(w3p) (H2,4H) ] ---------------------
    w3p_pad = jnp.pad(w3p, ((0, 0), (0, 4 * H - 2 * H)))
    wbig = jnp.concatenate([w_lstm, w3p_pad], axis=0).astype(jnp.bfloat16)

    # -- wh (bf16): lanes [wkv | wo | w2 | wout | pad] --------------------------
    wh = jnp.concatenate([wkv, wo, p['w2'], p['wout']], axis=1)       # (H, 114)
    wh = jnp.pad(wh, ((0, 0), (0, 4 * H - wh.shape[1]))).astype(jnp.bfloat16)

    # -- misc (f32): w1 (kept f32: raw-position layer) + bias / LN rows ---------
    w1_pad = jnp.pad(p['w1'], ((0, 0), (0, 4 * H - H)))               # (F, 4H)
    row0 = b_lstm                                                     # (1, 4H)
    row1 = jnp.concatenate([b3p, bkv], axis=1)                        # (1, 4H)
    row2 = jnp.concatenate([p['b1'], p['bo'], p['b2'], p['bout']], axis=1)
    row2 = jnp.pad(row2, ((0, 0), (0, 4 * H - row2.shape[1])))
    row3 = jnp.concatenate([p['ln_g'], p['ln_b']], axis=1)
    row3 = jnp.pad(row3, ((0, 0), (0, 4 * H - row3.shape[1])))
    misc = jnp.concatenate([w1_pad, row0, row1, row2, row3],
                           axis=0).astype(jnp.float32)                # (F+4, 4H)

    return wbig, wh, misc


# ------------------------------- pallas_call wrapper --------------------------
@jax.jit
def decoder_forward(current_features, current_availabilities,
                    context_embeddings, context_avails, wbig, wh, misc):
    """Returns outputs of shape (n_batch, n_agents, n_timesteps, n_features)."""
    feats = current_features.reshape(R, F_DIM).astype(jnp.float32)          # (R, F)
    avail = current_availabilities.reshape(R, 1).astype(jnp.float32)        # (R, 1)
    ctx = context_embeddings.reshape(BE, H).astype(jnp.float32)             # (BE, H)

    # block-diagonal (own batch only) + availability additive mask
    agent_batch = jnp.arange(R, dtype=jnp.int32) // A
    entity_batch = jnp.arange(BE, dtype=jnp.int32) // E
    same_batch = agent_batch[:, None] == entity_batch[None, :]              # (R, BE)
    valid = same_batch & (context_avails.reshape(1, BE) > 0)
    cmask = jnp.where(valid, 0.0, -1e9).astype(jnp.float32)                 # (R, BE)

    dyn = jnp.concatenate([feats, avail, cmask], axis=1)                    # (R, F+1+BE)

    vmem = pl.BlockSpec(memory_space=pltpu.MemorySpace.VMEM)
    out_flat = pl.pallas_call(
        decoder_kernel,
        out_shape=jax.ShapeDtypeStruct((R, T * F_DIM), jnp.float32),
        in_specs=[vmem] * 5,
        out_specs=vmem,
        cost_estimate=pl.CostEstimate(flops=1_300_000, transcendentals=10_000,
                                      bytes_accessed=40_000),
    )(dyn, ctx, wbig, wh, misc)

    # out_flat[b*A + a, t*F + f] -> (B, A, T, F); pure reshape, no transpose.
    return out_flat.reshape(B, A, T, F_DIM)


# ------------------------------- pure-JAX reference ----------------------------
def reference_forward(feats, avails, ctx, ctx_avails, p):
    hi = jax.lax.Precision.HIGHEST
    h = jnp.zeros((B, A, H), jnp.float32)
    c = jnp.zeros((B, A, H), jnp.float32)
    state = feats.astype(jnp.float32)
    cmask = jnp.where(ctx_avails > 0, 0.0, -1e9)[:, None, :]
    av = avails.astype(jnp.float32)[..., None]
    outs = []
    for _ in range(T):
        e = jax.nn.relu(jnp.einsum('baf,fh->bah', state, p['w1'], precision=hi) + p['b1'])
        e = jax.nn.relu(jnp.einsum('bah,hk->bak', e, p['w2'], precision=hi) + p['b2'])
        emb = jnp.einsum('bah,hk->bak', e, p['w3'], precision=hi) + p['b3']
        att = jnp.zeros_like(emb)
        for n in range(NH):
            q = jnp.einsum('bah,hd->bad', emb, p['wq'][n], precision=hi) + p['bq'][n]
            k = jnp.einsum('beh,hd->bed', ctx, p['wk'][n], precision=hi) + p['bk'][n]
            v = jnp.einsum('beh,hd->bed', ctx, p['wv'][n], precision=hi) + p['bv'][n]
            s = jnp.einsum('bad,bed->bae', q, k, precision=hi) / math.sqrt(HD) + cmask
            pr = jax.nn.softmax(s, axis=-1)
            o = jnp.einsum('bae,bed->bad', pr, v, precision=hi)
            att = att + jnp.einsum('bad,dh->bah', o, p['wo'][n], precision=hi)
        att = att + p['bo']
        y = emb + att
        mu = y.mean(-1, keepdims=True)
        var = ((y - mu) ** 2).mean(-1, keepdims=True)
        xa = (y - mu) * jax.lax.rsqrt(var + 1e-5) * p['ln_g'] + p['ln_b']
        gates = [jnp.einsum('bah,hk->bak', xa, p['wih'][i], precision=hi) + p['bih'][i]
                 + jnp.einsum('bah,hk->bak', h, p['whh'][i], precision=hi) + p['bhh'][i]
                 for i in range(4)]
        i_g = jax.nn.sigmoid(gates[0])
        f_g = jax.nn.sigmoid(gates[1])
        g_g = jnp.tanh(gates[2])
        o_g = jax.nn.sigmoid(gates[3])
        c_new = f_g * c + i_g * g_g
        h_new = o_g * jnp.tanh(c_new)
        h = av * h_new + (1.0 - av) * h
        c = av * c_new + (1.0 - av) * c
        action = jnp.einsum('bah,ho->bao', h, p['wout'], precision=hi) + p['bout']
        px, py, yaw, spd = (state[..., 0:1], state[..., 1:2],
                            state[..., 2:3], state[..., 3:4])
        acc = jnp.clip(action[..., 0:1], -MAX_ACC, MAX_ACC)
        yr = jnp.clip(action[..., 1:2], -MAX_YAW_RATE, MAX_YAW_RATE)
        syaw, cyaw = _sin_cos(yaw)
        state = jnp.concatenate([px + spd * cyaw * DT,
                                 py + spd * syaw * DT,
                                 yaw + yr * DT,
                                 spd + acc * DT,
                                 state[..., 4:]], axis=-1)
        outs.append(state)
    return jnp.stack(outs, axis=2)


# ------------------------------- parameter init --------------------------------
def init_params(key):
    ks = list(jax.random.split(key, 32))

    def lin(k, fan_in, shape):
        bound = 1.0 / math.sqrt(fan_in)
        return jax.random.uniform(k, shape, jnp.float32, -bound, bound)

    p = {}
    p['w1'] = lin(ks[0], F_DIM, (F_DIM, H));   p['b1'] = lin(ks[1], F_DIM, (1, H))
    p['w2'] = lin(ks[2], H, (H, H2));          p['b2'] = lin(ks[3], H, (1, H2))
    p['w3'] = lin(ks[4], H2, (H2, H));         p['b3'] = lin(ks[5], H2, (1, H))
    p['wq'] = lin(ks[6], H, (NH, H, HD));      p['bq'] = lin(ks[7], H, (NH, 1, HD))
    p['wk'] = lin(ks[8], H, (NH, H, HD));      p['bk'] = lin(ks[9], H, (NH, 1, HD))
    p['wv'] = lin(ks[10], H, (NH, H, HD));     p['bv'] = lin(ks[11], H, (NH, 1, HD))
    p['wo'] = lin(ks[12], H, (NH, HD, H));     p['bo'] = lin(ks[13], H, (1, H))
    p['ln_g'] = jnp.ones((1, H), jnp.float32)
    p['ln_b'] = jnp.zeros((1, H), jnp.float32)
    p['wih'] = lin(ks[14], H, (4, H, H));      p['bih'] = lin(ks[15], H, (4, 1, H))
    p['whh'] = lin(ks[16], H, (4, H, H));      p['bhh'] = lin(ks[17], H, (4, 1, H))
    p['wout'] = lin(ks[18], H, (H, OUT));      p['bout'] = lin(ks[19], H, (1, OUT))
    return p


# ------------------------------------ main --------------------------------------
if __name__ == "__main__":
    key = jax.random.PRNGKey(0)
    kp, kxy, kyaw, kspd, kextra, ka, kc, ke = jax.random.split(key, 8)

    params = init_params(kp)
    packed = pack_params(params)   # one-time packing, outside the hot jit

    xy = jax.random.normal(kxy, (B, A, 2), jnp.float32) * 10.0
    yaw = jax.random.uniform(kyaw, (B, A, 1), jnp.float32, -math.pi, math.pi)
    spd = jax.random.uniform(kspd, (B, A, 1), jnp.float32, 0.0, 10.0)
    extra = jax.random.normal(kextra, (B, A, F_DIM - 4), jnp.float32)
    current_features = jnp.concatenate([xy, yaw, spd, extra], axis=-1)        # (B, A, F)

    current_availabilities = (jax.random.uniform(ka, (B, A)) > 0.2).astype(jnp.float32)
    context_embeddings = jax.random.normal(kc, (B, E, H), jnp.float32)
    context_avails = (jax.random.uniform(ke, (B, E)) > 0.3).astype(jnp.float32)
    context_avails = context_avails.at[:, 0].set(1.0)   # at least one valid entity

    out = decoder_forward(current_features, current_availabilities,
                          context_embeddings, context_avails, *packed)
    out = jax.block_until_ready(out)

    ref = reference_forward(current_features, current_availabilities,
                            context_embeddings, context_avails, params)

    assert out.shape == (B, A, T, F_DIM), out.shape
    assert bool(jnp.all(jnp.isfinite(out)))
    # bf16 MXU operands (per the perf review) shift results slightly vs the f32
    # reference; errors compound through the 6-step recurrent dynamics, so use
    # an atol+rtol tolerance (outputs include positions with magnitude ~25).
    err = jnp.abs(out - ref)
    tol = 5e-2 + 2e-3 * jnp.abs(ref)
    assert bool(jnp.all(err <= tol)), \
        f"max abs error vs reference: {float(jnp.max(err))}"

    print("KERNEL_OK")
</pallas_src>

<mosaic_0001>
module attributes {stable_mosaic.version = 11 : i64} {
  func.func @decoder_kernel(%arg0: memref<8x25xf32, #tpu.memory_space<vmem>>, %arg1: memref<16x32xf32, #tpu.memory_space<vmem>>, %arg2: memref<80x128xbf16, #tpu.memory_space<vmem>>, %arg3: memref<32x128xbf16, #tpu.memory_space<vmem>>, %arg4: memref<12x128xf32, #tpu.memory_space<vmem>>, %arg5: memref<8x48xf32, #tpu.memory_space<vmem>>) attributes {dimension_semantics = [], scalar_prefetch = 0 : i64, scratch_operands = 0 : i64, tpu.core_type = #tpu.core_type<tc>} {
    %c0 = arith.constant 0 : index
    %c0_0 = arith.constant 0 : index
    %0 = vector.load %arg0[%c0, %c0_0] : memref<8x25xf32, #tpu.memory_space<vmem>>, vector<8x25xf32>
    %1 = vector.extract_strided_slice %0 {offsets = [0, 0], sizes = [8, 8], strides = [1, 1]} : vector<8x25xf32> to vector<8x8xf32>
    %2 = vector.extract_strided_slice %0 {offsets = [0, 8], sizes = [8, 1], strides = [1, 1]} : vector<8x25xf32> to vector<8x1xf32>
    %3 = vector.extract_strided_slice %0 {offsets = [0, 9], sizes = [8, 16], strides = [1, 1]} : vector<8x25xf32> to vector<8x16xf32>
    %c0_1 = arith.constant 0 : index
    %c0_2 = arith.constant 0 : index
    %4 = vector.load %arg1[%c0_1, %c0_2] : memref<16x32xf32, #tpu.memory_space<vmem>>, vector<16x32xf32>
    %c0_3 = arith.constant 0 : index
    %c0_4 = arith.constant 0 : index
    %5 = vector.load %arg2[%c0_3, %c0_4] : memref<80x128xbf16, #tpu.memory_space<vmem>>, vector<80x128xbf16>
    %6 = vector.extract_strided_slice %5 {offsets = [0, 0], sizes = [64, 128], strides = [1, 1]} : vector<80x128xbf16> to vector<64x128xbf16>
    %7 = vector.extract_strided_slice %5 {offsets = [64, 0], sizes = [16, 64], strides = [1, 1]} : vector<80x128xbf16> to vector<16x64xbf16>
    %c0_5 = arith.constant 0 : index
    %c0_6 = arith.constant 0 : index
    %8 = vector.load %arg3[%c0_5, %c0_6] : memref<32x128xbf16, #tpu.memory_space<vmem>>, vector<32x128xbf16>
    %9 = vector.extract_strided_slice %8 {offsets = [0, 0], sizes = [32, 64], strides = [1, 1]} : vector<32x128xbf16> to vector<32x64xbf16>
    %10 = vector.extract_strided_slice %8 {offsets = [0, 64], sizes = [32, 32], strides = [1, 1]} : vector<32x128xbf16> to vector<32x32xbf16>
    %11 = vector.extract_strided_slice %8 {offsets = [0, 96], sizes = [32, 16], strides = [1, 1]} : vector<32x128xbf16> to vector<32x16xbf16>
    %12 = vector.extract_strided_slice %8 {offsets = [0, 112], sizes = [32, 2], strides = [1, 1]} : vector<32x128xbf16> to vector<32x2xbf16>
    %c0_7 = arith.constant 0 : index
    %c0_8 = arith.constant 0 : index
    %13 = vector.load %arg4[%c0_7, %c0_8] : memref<12x128xf32, #tpu.memory_space<vmem>>, vector<12x128xf32>
    %14 = vector.extract_strided_slice %13 {offsets = [0, 0], sizes = [8, 32], strides = [1, 1]} : vector<12x128xf32> to vector<8x32xf32>
    %15 = vector.extract_strided_slice %13 {offsets = [8, 0], sizes = [1, 128], strides = [1, 1]} : vector<12x128xf32> to vector<1x128xf32>
    %16 = vector.extract_strided_slice %13 {offsets = [9, 0], sizes = [1, 64], strides = [1, 1]} : vector<12x128xf32> to vector<1x64xf32>
    %17 = vector.extract_strided_slice %13 {offsets = [9, 64], sizes = [1, 64], strides = [1, 1]} : vector<12x128xf32> to vector<1x64xf32>
    %18 = vector.extract_strided_slice %13 {offsets = [10, 0], sizes = [1, 32], strides = [1, 1]} : vector<12x128xf32> to vector<1x32xf32>
    %19 = vector.extract_strided_slice %13 {offsets = [10, 32], sizes = [1, 32], strides = [1, 1]} : vector<12x128xf32> to vector<1x32xf32>
    %20 = vector.extract_strided_slice %13 {offsets = [10, 64], sizes = [1, 16], strides = [1, 1]} : vector<12x128xf32> to vector<1x16xf32>
    %21 = vector.extract_strided_slice %13 {offsets = [10, 80], sizes = [1, 2], strides = [1, 1]} : vector<12x128xf32> to vector<1x2xf32>
    %22 = vector.extract_strided_slice %13 {offsets = [11, 0], sizes = [1, 32], strides = [1, 1]} : vector<12x128xf32> to vector<1x32xf32>
    %23 = vector.extract_strided_slice %13 {offsets = [11, 32], sizes = [1, 32], strides = [1, 1]} : vector<12x128xf32> to vector<1x32xf32>
    %24 = vector.shape_cast %18 : vector<1x32xf32> to vector<1x32xf32>
    %25 = vector.broadcast %24 : vector<1x32xf32> to vector<8x32xf32>
    %26 = vector.shape_cast %20 : vector<1x16xf32> to vector<1x16xf32>
    %27 = vector.broadcast %26 : vector<1x16xf32> to vector<8x16xf32>
    %28 = vector.shape_cast %16 : vector<1x64xf32> to vector<1x64xf32>
    %29 = vector.broadcast %28 : vector<1x64xf32> to vector<8x64xf32>
    %30 = vector.shape_cast %19 : vector<1x32xf32> to vector<1x32xf32>
    %31 = vector.broadcast %30 : vector<1x32xf32> to vector<8x32xf32>
    %32 = vector.shape_cast %15 : vector<1x128xf32> to vector<1x128xf32>
    %33 = vector.broadcast %32 : vector<1x128xf32> to vector<8x128xf32>
    %34 = vector.shape_cast %21 : vector<1x2xf32> to vector<1x2xf32>
    %35 = vector.broadcast %34 : vector<1x2xf32> to vector<8x2xf32>
    %36 = vector.shape_cast %22 : vector<1x32xf32> to vector<1x32xf32>
    %37 = vector.broadcast %36 : vector<1x32xf32> to vector<8x32xf32>
    %38 = vector.shape_cast %23 : vector<1x32xf32> to vector<1x32xf32>
    %39 = vector.broadcast %38 : vector<1x32xf32> to vector<8x32xf32>
    %40 = vector.shape_cast %2 : vector<8x1xf32> to vector<8x1xf32>
    %41 = vector.broadcast %40 : vector<8x1xf32> to vector<8x32xf32>
    %cst = arith.constant 1.000000e+00 : f32
    %42 = vector.broadcast %cst : f32 to vector<8x32xf32>
    %43 = arith.subf %42, %41 : vector<8x32xf32>
    %44 = arith.truncf %4 : vector<16x32xf32> to vector<16x32xbf16>
    %cst_9 = arith.constant dense<0.000000e+00> : vector<16x64xf32>
    %45 = tpu.matmul %44, %9, %cst_9 {dimension_numbers = #tpu.dot_dimension_numbers<[1], [0], [0], [1], [0, 0, 1, 1], [], []>} : vector<16x32xbf16>, vector<32x64xbf16>, vector<16x64xf32> -> vector<16x64xf32>
    %46 = vector.shape_cast %17 : vector<1x64xf32> to vector<1x64xf32>
    %47 = vector.broadcast %46 : vector<1x64xf32> to vector<16x64xf32>
    %48 = arith.addf %45, %47 : vector<16x64xf32>
    %49 = arith.truncf %48 : vector<16x64xf32> to vector<16x64xbf16>
    %50 = tpu.iota {dimensions = array<i32: 1>} : vector<8x8xi32>
    %c0_i32 = arith.constant 0 : i32
    %51 = vector.broadcast %c0_i32 : i32 to vector<8x8xi32>
    %52 = arith.cmpi eq, %50, %51 : vector<8x8xi32>
    %c1_i32 = arith.constant 1 : i32
    %53 = vector.broadcast %c1_i32 : i32 to vector<8x8xi32>
    %54 = arith.cmpi eq, %50, %53 : vector<8x8xi32>
    %c2_i32 = arith.constant 2 : i32
    %55 = vector.broadcast %c2_i32 : i32 to vector<8x8xi32>
    %56 = arith.cmpi eq, %50, %55 : vector<8x8xi32>
    %c3_i32 = arith.constant 3 : i32
    %57 = vector.broadcast %c3_i32 : i32 to vector<8x8xi32>
    %58 = arith.cmpi eq, %50, %57 : vector<8x8xi32>
    %cst_10 = arith.constant 0.000000e+00 : f32
    %59 = vector.broadcast %cst_10 : f32 to vector<8x32xf32>
    %cst_11 = arith.constant 0.000000e+00 : f32
    %60 = vector.broadcast %cst_11 : f32 to vector<8x32xf32>
    %cst_12 = arith.constant dense<0.000000e+00> : vector<8x32xf32>
    %61 = tpu.matmul %1, %14, %cst_12 {dimension_numbers = #tpu.dot_dimension_numbers<[1], [0], [0], [1], [0, 0, 1, 1], [], []>} : vector<8x8xf32>, vector<8x32xf32>, vector<8x32xf32> -> vector<8x32xf32>
    %62 = arith.addf %61, %25 : vector<8x32xf32>
    %cst_13 = arith.constant 0.000000e+00 : f32
    %63 = vector.broadcast %cst_13 : f32 to vector<8x32xf32>
    %64 = arith.maximumf %62, %63 : vector<8x32xf32>
    %65 = arith.truncf %64 : vector<8x32xf32> to vector<8x32xbf16>
    %cst_14 = arith.constant dense<0.000000e+00> : vector<8x16xf32>
    %66 = tpu.matmul %65, %11, %cst_14 {dimension_numbers = #tpu.dot_dimension_numbers<[1], [0], [0], [1], [0, 0, 1, 1], [], []>} : vector<8x32xbf16>, vector<32x16xbf16>, vector<8x16xf32> -> vector<8x16xf32>
    %67 = arith.addf %66, %27 : vector<8x16xf32>
    %cst_15 = arith.constant 0.000000e+00 : f32
    %68 = vector.broadcast %cst_15 : f32 to vector<8x16xf32>
    %69 = arith.maximumf %67, %68 : vector<8x16xf32>
    %70 = arith.truncf %69 : vector<8x16xf32> to vector<8x16xbf16>
    %cst_16 = arith.constant dense<0.000000e+00> : vector<8x64xf32>
    %71 = tpu.matmul %70, %7, %cst_16 {dimension_numbers = #tpu.dot_dimension_numbers<[1], [0], [0], [1], [0, 0, 1, 1], [], []>} : vector<8x16xbf16>, vector<16x64xbf16>, vector<8x64xf32> -> vector<8x64xf32>
    %72 = arith.addf %71, %29 : vector<8x64xf32>
    %73 = vector.extract_strided_slice %72 {offsets = [0, 0], sizes = [8, 32], strides = [1, 1]} : vector<8x64xf32> to vector<8x32xf32>
    %74 = vector.extract_strided_slice %72 {offsets = [0, 32], sizes = [8, 32], strides = [1, 1]} : vector<8x64xf32> to vector<8x32xf32>
    %75 = arith.truncf %74 : vector<8x32xf32> to vector<8x32xbf16>
    %76 = vector.extract_strided_slice %75 {offsets = [0, 0], sizes = [8, 16], strides = [1, 1]} : vector<8x32xbf16> to vector<8x16xbf16>
    %77 = vector.extract_strided_slice %49 {offsets = [0, 0], sizes = [16, 16], strides = [1, 1]} : vector<16x64xbf16> to vector<16x16xbf16>
    %78 = vector.extract_strided_slice %49 {offsets = [0, 32], sizes = [16, 16], strides = [1, 1]} : vector<16x64xbf16> to vector<16x16xbf16>
    %cst_17 = arith.constant dense<0.000000e+00> : vector<8x16xf32>
    %79 = tpu.matmul %76, %77, %cst_17 {dimension_numbers = #tpu.dot_dimension_numbers<[1], [1], [0], [0], [0, 0, 1, 0], [], []>} : vector<8x16xbf16>, vector<16x16xbf16>, vector<8x16xf32> -> vector<8x16xf32>
    %80 = arith.addf %79, %3 : vector<8x16xf32>
    %cst_18 = arith.constant dense<0xFF800000> : vector<8xf32>
    %81 = vector.multi_reduction <maximumf>, %80, %cst_18 [1] : vector<8x16xf32> to vector<8xf32>
    %82 = vector.shape_cast %81 : vector<8xf32> to vector<8x1xf32>
    %83 = vector.broadcast %82 : vector<8x1xf32> to vector<8x16xf32>
    %84 = arith.subf %80, %83 : vector<8x16xf32>
    %85 = math.exp %84 : vector<8x16xf32>
    %cst_19 = arith.constant dense<0.000000e+00> : vector<8xf32>
    %86 = vector.multi_reduction <add>, %85, %cst_19 [1] : vector<8x16xf32> to vector<8xf32>
    %87 = vector.shape_cast %86 : vector<8xf32> to vector<8x1xf32>
    %88 = tpu.reciprocal %87 {approx = true} : vector<8x1xf32> -> vector<8x1xf32>
    %89 = vector.broadcast %88 : vector<8x1xf32> to vector<8x16xf32>
    %90 = arith.mulf %85, %89 : vector<8x16xf32>
    %91 = arith.truncf %90 : vector<8x16xf32> to vector<8x16xbf16>
    %cst_20 = arith.constant dense<0.000000e+00> : vector<8x16xf32>
    %92 = tpu.matmul %91, %78, %cst_20 {dimension_numbers = #tpu.dot_dimension_numbers<[1], [0], [0], [1], [0, 0, 1, 1], [], []>} : vector<8x16xbf16>, vector<16x16xbf16>, vector<8x16xf32> -> vector<8x16xf32>
    %93 = vector.extract_strided_slice %75 {offsets = [0, 16], sizes = [8, 16], strides = [1, 1]} : vector<8x32xbf16> to vector<8x16xbf16>
    %94 = vector.extract_strided_slice %49 {offsets = [0, 16], sizes = [16, 16], strides = [1, 1]} : vector<16x64xbf16> to vector<16x16xbf16>
    %95 = vector.extract_strided_slice %49 {offsets = [0, 48], sizes = [16, 16], strides = [1, 1]} : vector<16x64xbf16> to vector<16x16xbf16>
    %cst_21 = arith.constant dense<0.000000e+00> : vector<8x16xf32>
    %96 = tpu.matmul %93, %94, %cst_21 {dimension_numbers = #tpu.dot_dimension_numbers<[1], [1], [0], [0], [0, 0, 1, 0], [], []>} : vector<8x16xbf16>, vector<16x16xbf16>, vector<8x16xf32> -> vector<8x16xf32>
    %97 = arith.addf %96, %3 : vector<8x16xf32>
    %cst_22 = arith.constant dense<0xFF800000> : vector<8xf32>
    %98 = vector.multi_reduction <maximumf>, %97, %cst_22 [1] : vector<8x16xf32> to vector<8xf32>
    %99 = vector.shape_cast %98 : vector<8xf32> to vector<8x1xf32>
    %100 = vector.broadcast %99 : vector<8x1xf32> to vector<8x16xf32>
    %101 = arith.subf %97, %100 : vector<8x16xf32>
    %102 = math.exp %101 : vector<8x16xf32>
    %cst_23 = arith.constant dense<0.000000e+00> : vector<8xf32>
    %103 = vector.multi_reduction <add>, %102, %cst_23 [1] : vector<8x16xf32> to vector<8xf32>
    %104 = vector.shape_cast %103 : vector<8xf32> to vector<8x1xf32>
    %105 = tpu.reciprocal %104 {approx = true} : vector<8x1xf32> -> vector<8x1xf32>
    %106 = vector.broadcast %105 : vector<8x1xf32> to vector<8x16xf32>
    %107 = arith.mulf %102, %106 : vector<8x16xf32>
    %108 = arith.truncf %107 : vector<8x16xf32> to vector<8x16xbf16>
    %cst_24 = arith.constant dense<0.000000e+00> : vector<8x16xf32>
    %109 = tpu.matmul %108, %95, %cst_24 {dimension_numbers = #tpu.dot_dimension_numbers<[1], [0], [0], [1], [0, 0, 1, 1], [], []>} : vector<8x16xbf16>, vector<16x16xbf16>, vector<8x16xf32> -> vector<8x16xf32>
    %110 = tpu.concatenate %92, %109 in 1 : vector<8x16xf32>, vector<8x16xf32> -> vector<8x32xf32>
    %111 = arith.truncf %110 : vector<8x32xf32> to vector<8x32xbf16>
    %cst_25 = arith.constant dense<0.000000e+00> : vector<8x32xf32>
    %112 = tpu.matmul %111, %10, %cst_25 {dimension_numbers = #tpu.dot_dimension_numbers<[1], [0], [0], [1], [0, 0, 1, 1], [], []>} : vector<8x32xbf16>, vector<32x32xbf16>, vector<8x32xf32> -> vector<8x32xf32>
    %113 = arith.addf %112, %31 : vector<8x32xf32>
    %114 = arith.addf %73, %113 : vector<8x32xf32>
    %cst_26 = arith.constant dense<0.000000e+00> : vector<8xf32>
    %115 = vector.multi_reduction <add>, %114, %cst_26 [1] : vector<8x32xf32> to vector<8xf32>
    %116 = vector.shape_cast %115 : vector<8xf32> to vector<8x1xf32>
    %cst_27 = arith.constant 3.200000e+01 : f32
    %117 = vector.broadcast %cst_27 : f32 to vector<8x1xf32>
    %118 = arith.divf %116, %117 : vector<8x1xf32>
    %119 = vector.broadcast %118 : vector<8x1xf32> to vector<8x32xf32>
    %120 = arith.subf %114, %119 : vector<8x32xf32>
    %121 = vector.broadcast %118 : vector<8x1xf32> to vector<8x32xf32>
    %122 = arith.subf %114, %121 : vector<8x32xf32>
    %123 = arith.mulf %120, %122 : vector<8x32xf32>
    %cst_28 = arith.constant dense<0.000000e+00> : vector<8xf32>
    %124 = vector.multi_reduction <add>, %123, %cst_28 [1] : vector<8x32xf32> to vector<8xf32>
    %125 = vector.shape_cast %124 : vector<8xf32> to vector<8x1xf32>
    %cst_29 = arith.constant 3.200000e+01 : f32
    %126 = vector.broadcast %cst_29 : f32 to vector<8x1xf32>
    %127 = arith.divf %125, %126 : vector<8x1xf32>
    %128 = vector.broadcast %118 : vector<8x1xf32> to vector<8x32xf32>
    %129 = arith.subf %114, %128 : vector<8x32xf32>
    %cst_30 = arith.constant 9.99999974E-6 : f32
    %130 = vector.broadcast %cst_30 : f32 to vector<8x1xf32>
    %131 = arith.addf %127, %130 : vector<8x1xf32>
    %132 = math.rsqrt %131 : vector<8x1xf32>
    %133 = vector.broadcast %132 : vector<8x1xf32> to vector<8x32xf32>
    %134 = arith.mulf %129, %133 : vector<8x32xf32>
    %135 = arith.mulf %134, %37 : vector<8x32xf32>
    %136 = arith.addf %135, %39 : vector<8x32xf32>
    %137 = tpu.concatenate %136, %59 in 1 : vector<8x32xf32>, vector<8x32xf32> -> vector<8x64xf32>
    %138 = arith.truncf %137 : vector<8x64xf32> to vector<8x64xbf16>
    %cst_31 = arith.constant dense<0.000000e+00> : vector<8x128xf32>
    %139 = tpu.matmul %138, %6, %cst_31 {dimension_numbers = #tpu.dot_dimension_numbers<[1], [0], [0], [1], [0, 0, 1, 1], [], []>} : vector<8x64xbf16>, vector<64x128xbf16>, vector<8x128xf32> -> vector<8x128xf32>
    %140 = arith.addf %139, %33 : vector<8x128xf32>
    %141 = vector.extract_strided_slice %140 {offsets = [0, 0], sizes = [8, 96], strides = [1, 1]} : vector<8x128xf32> to vector<8x96xf32>
    %142 = arith.negf %141 : vector<8x96xf32>
    %143 = math.exp %142 : vector<8x96xf32>
    %cst_32 = arith.constant 1.000000e+00 : f32
    %144 = vector.broadcast %cst_32 : f32 to vector<8x96xf32>
    %145 = arith.addf %144, %143 : vector<8x96xf32>
    %146 = arith.divf %144, %145 : vector<8x96xf32>
    %147 = vector.extract_strided_slice %140 {offsets = [0, 96], sizes = [8, 32], strides = [1, 1]} : vector<8x128xf32> to vector<8x32xf32>
    %148 = math.tanh %147 : vector<8x32xf32>
    %149 = vector.extract_strided_slice %146 {offsets = [0, 0], sizes = [8, 32], strides = [1, 1]} : vector<8x96xf32> to vector<8x32xf32>
    %150 = vector.extract_strided_slice %146 {offsets = [0, 32], sizes = [8, 32], strides = [1, 1]} : vector<8x96xf32> to vector<8x32xf32>
    %151 = vector.extract_strided_slice %146 {offsets = [0, 64], sizes = [8, 32], strides = [1, 1]} : vector<8x96xf32> to vector<8x32xf32>
    %152 = arith.mulf %150, %60 : vector<8x32xf32>
    %153 = arith.mulf %149, %148 : vector<8x32xf32>
    %154 = arith.addf %152, %153 : vector<8x32xf32>
    %155 = math.tanh %154 : vector<8x32xf32>
    %156 = arith.mulf %151, %155 : vector<8x32xf32>
    %157 = arith.mulf %41, %156 : vector<8x32xf32>
    %158 = arith.mulf %43, %59 : vector<8x32xf32>
    %159 = arith.addf %157, %158 : vector<8x32xf32>
    %160 = arith.mulf %41, %154 : vector<8x32xf32>
    %161 = arith.mulf %43, %60 : vector<8x32xf32>
    %162 = arith.addf %160, %161 : vector<8x32xf32>
    %163 = arith.truncf %159 : vector<8x32xf32> to vector<8x32xbf16>
    %cst_33 = arith.constant dense<0.000000e+00> : vector<8x2xf32>
    %164 = tpu.matmul %163, %12, %cst_33 {dimension_numbers = #tpu.dot_dimension_numbers<[1], [0], [0], [1], [0, 0, 1, 1], [], []>} : vector<8x32xbf16>, vector<32x2xbf16>, vector<8x2xf32> -> vector<8x2xf32>
    %165 = arith.addf %164, %35 : vector<8x2xf32>
    %166 = vector.extract_strided_slice %1 {offsets = [0, 2], sizes = [8, 1], strides = [1, 1]} : vector<8x8xf32> to vector<8x1xf32>
    %167 = vector.extract_strided_slice %1 {offsets = [0, 3], sizes = [8, 1], strides = [1, 1]} : vector<8x8xf32> to vector<8x1xf32>
    %168 = vector.extract_strided_slice %165 {offsets = [0, 0], sizes = [8, 1], strides = [1, 1]} : vector<8x2xf32> to vector<8x1xf32>
    %cst_34 = arith.constant -4.000000e+00 : f32
    %cst_35 = arith.constant 4.000000e+00 : f32
    %169 = vector.broadcast %cst_34 : f32 to vector<8x1xf32>
    %170 = arith.maximumf %169, %168 : vector<8x1xf32>
    %171 = vector.broadcast %cst_35 : f32 to vector<8x1xf32>
    %172 = arith.minimumf %171, %170 : vector<8x1xf32>
    %173 = vector.extract_strided_slice %165 {offsets = [0, 1], sizes = [8, 1], strides = [1, 1]} : vector<8x2xf32> to vector<8x1xf32>
    %cst_36 = arith.constant -1.000000e+00 : f32
    %cst_37 = arith.constant 1.000000e+00 : f32
    %174 = vector.broadcast %cst_36 : f32 to vector<8x1xf32>
    %175 = arith.maximumf %174, %173 : vector<8x1xf32>
    %176 = vector.broadcast %cst_37 : f32 to vector<8x1xf32>
    %177 = arith.minimumf %176, %175 : vector<8x1xf32>
    %cst_38 = arith.constant 6.28318548 : f32
    %178 = vector.broadcast %cst_38 : f32 to vector<8x1xf32>
    %179 = arith.divf %166, %178 : vector<8x1xf32>
    %cst_39 = arith.constant 5.000000e-01 : f32
    %180 = vector.broadcast %cst_39 : f32 to vector<8x1xf32>
    %181 = arith.addf %179, %180 : vector<8x1xf32>
    %182 = math.floor %181 : vector<8x1xf32>
    %cst_40 = arith.constant 6.28318548 : f32
    %183 = vector.broadcast %cst_40 : f32 to vector<8x1xf32>
    %184 = arith.mulf %183, %182 : vector<8x1xf32>
    %185 = arith.subf %166, %184 : vector<8x1xf32>
    %186 = arith.mulf %185, %185 : vector<8x1xf32>
    %cst_41 = arith.constant -2.50521079E-8 : f32
    %187 = vector.broadcast %cst_41 : f32 to vector<8x1xf32>
    %188 = arith.mulf %186, %187 : vector<8x1xf32>
    %cst_42 = arith.constant 2.75573188E-6 : f32
    %189 = vector.broadcast %cst_42 : f32 to vector<8x1xf32>
    %190 = arith.addf %189, %188 : vector<8x1xf32>
    %191 = arith.mulf %186, %190 : vector<8x1xf32>
    %cst_43 = arith.constant -1.98412701E-4 : f32
    %192 = vector.broadcast %cst_43 : f32 to vector<8x1xf32>
    %193 = arith.addf %192, %191 : vector<8x1xf32>
    %194 = arith.mulf %186, %193 : vector<8x1xf32>
    %cst_44 = arith.constant 0.00833333377 : f32
    %195 = vector.broadcast %cst_44 : f32 to vector<8x1xf32>
    %196 = arith.addf %195, %194 : vector<8x1xf32>
    %197 = arith.mulf %186, %196 : vector<8x1xf32>
    %cst_45 = arith.constant -0.166666672 : f32
    %198 = vector.broadcast %cst_45 : f32 to vector<8x1xf32>
    %199 = arith.addf %198, %197 : vector<8x1xf32>
    %200 = arith.mulf %186, %199 : vector<8x1xf32>
    %cst_46 = arith.constant 1.000000e+00 : f32
    %201 = vector.broadcast %cst_46 : f32 to vector<8x1xf32>
    %202 = arith.addf %201, %200 : vector<8x1xf32>
    %203 = arith.mulf %185, %202 : vector<8x1xf32>
    %cst_47 = arith.constant 2.08767559E-9 : f32
    %204 = vector.broadcast %cst_47 : f32 to vector<8x1xf32>
    %205 = arith.mulf %186, %204 : vector<8x1xf32>
    %cst_48 = arith.constant -2.755732E-7 : f32
    %206 = vector.broadcast %cst_48 : f32 to vector<8x1xf32>
    %207 = arith.addf %206, %205 : vector<8x1xf32>
    %208 = arith.mulf %186, %207 : vector<8x1xf32>
    %cst_49 = arith.constant 2.48015876E-5 : f32
    %209 = vector.broadcast %cst_49 : f32 to vector<8x1xf32>
    %210 = arith.addf %209, %208 : vector<8x1xf32>
    %211 = arith.mulf %186, %210 : vector<8x1xf32>
    %cst_50 = arith.constant -0.00138888892 : f32
    %212 = vector.broadcast %cst_50 : f32 to vector<8x1xf32>
    %213 = arith.addf %212, %211 : vector<8x1xf32>
    %214 = arith.mulf %186, %213 : vector<8x1xf32>
    %cst_51 = arith.constant 0.0416666679 : f32
    %215 = vector.broadcast %cst_51 : f32 to vector<8x1xf32>
    %216 = arith.addf %215, %214 : vector<8x1xf32>
    %217 = arith.mulf %186, %216 : vector<8x1xf32>
    %cst_52 = arith.constant -5.000000e-01 : f32
    %218 = vector.broadcast %cst_52 : f32 to vector<8x1xf32>
    %219 = arith.addf %218, %217 : vector<8x1xf32>
    %220 = arith.mulf %186, %219 : vector<8x1xf32>
    %cst_53 = arith.constant 1.000000e+00 : f32
    %221 = vector.broadcast %cst_53 : f32 to vector<8x1xf32>
    %222 = arith.addf %221, %220 : vector<8x1xf32>
    %223 = arith.mulf %167, %222 : vector<8x1xf32>
    %cst_54 = arith.constant 1.000000e-01 : f32
    %224 = vector.broadcast %cst_54 : f32 to vector<8x1xf32>
    %225 = arith.mulf %223, %224 : vector<8x1xf32>
    %cst_55 = arith.constant 0.000000e+00 : f32
    %226 = vector.shape_cast %225 : vector<8x1xf32> to vector<8x1xf32>
    %227 = vector.broadcast %226 : vector<8x1xf32> to vector<8x8xf32>
    %228 = vector.broadcast %cst_55 : f32 to vector<8x8xf32>
    %229 = arith.select %52, %227, %228 : vector<8x8xi1>, vector<8x8xf32>
    %230 = arith.mulf %167, %203 : vector<8x1xf32>
    %cst_56 = arith.constant 1.000000e-01 : f32
    %231 = vector.broadcast %cst_56 : f32 to vector<8x1xf32>
    %232 = arith.mulf %230, %231 : vector<8x1xf32>
    %cst_57 = arith.constant 0.000000e+00 : f32
    %233 = vector.shape_cast %232 : vector<8x1xf32> to vector<8x1xf32>
    %234 = vector.broadcast %233 : vector<8x1xf32> to vector<8x8xf32>
    %235 = vector.broadcast %cst_57 : f32 to vector<8x8xf32>
    %236 = arith.select %54, %234, %235 : vector<8x8xi1>, vector<8x8xf32>
    %237 = arith.addf %229, %236 : vector<8x8xf32>
    %cst_58 = arith.constant 1.000000e-01 : f32
    %238 = vector.broadcast %cst_58 : f32 to vector<8x1xf32>
    %239 = arith.mulf %177, %238 : vector<8x1xf32>
    %cst_59 = arith.constant 0.000000e+00 : f32
    %240 = vector.shape_cast %239 : vector<8x1xf32> to vector<8x1xf32>
    %241 = vector.broadcast %240 : vector<8x1xf32> to vector<8x8xf32>
    %242 = vector.broadcast %cst_59 : f32 to vector<8x8xf32>
    %243 = arith.select %56, %241, %242 : vector<8x8xi1>, vector<8x8xf32>
    %244 = arith.addf %237, %243 : vector<8x8xf32>
    %cst_60 = arith.constant 1.000000e-01 : f32
    %245 = vector.broadcast %cst_60 : f32 to vector<8x1xf32>
    %246 = arith.mulf %172, %245 : vector<8x1xf32>
    %cst_61 = arith.constant 0.000000e+00 : f32
    %247 = vector.shape_cast %246 : vector<8x1xf32> to vector<8x1xf32>
    %248 = vector.broadcast %247 : vector<8x1xf32> to vector<8x8xf32>
    %249 = vector.broadcast %cst_61 : f32 to vector<8x8xf32>
    %250 = arith.select %58, %248, %249 : vector<8x8xi1>, vector<8x8xf32>
    %251 = arith.addf %244, %250 : vector<8x8xf32>
    %252 = arith.addf %1, %251 : vector<8x8xf32>
    %cst_62 = arith.constant dense<0.000000e+00> : vector<8x32xf32>
    %253 = tpu.matmul %252, %14, %cst_62 {dimension_numbers = #tpu.dot_dimension_numbers<[1], [0], [0], [1], [0, 0, 1, 1], [], []>} : vector<8x8xf32>, vector<8x32xf32>, vector<8x32xf32> -> vector<8x32xf32>
    %254 = arith.addf %253, %25 : vector<8x32xf32>
    %cst_63 = arith.constant 0.000000e+00 : f32
    %255 = vector.broadcast %cst_63 : f32 to vector<8x32xf32>
    %256 = arith.maximumf %254, %255 : vector<8x32xf32>
    %257 = arith.truncf %256 : vector<8x32xf32> to vector<8x32xbf16>
    %cst_64 = arith.constant dense<0.000000e+00> : vector<8x16xf32>
    %258 = tpu.matmul %257, %11, %cst_64 {dimension_numbers = #tpu.dot_dimension_numbers<[1], [0], [0], [1], [0, 0, 1, 1], [], []>} : vector<8x32xbf16>, vector<32x16xbf16>, vector<8x16xf32> -> vector<8x16xf32>
    %259 = arith.addf %258, %27 : vector<8x16xf32>
    %cst_65 = arith.constant 0.000000e+00 : f32
    %260 = vector.broadcast %cst_65 : f32 to vector<8x16xf32>
    %261 = arith.maximumf %259, %260 : vector<8x16xf32>
    %262 = arith.truncf %261 : vector<8x16xf32> to vector<8x16xbf16>
    %cst_66 = arith.constant dense<0.000000e+00> : vector<8x64xf32>
    %263 = tpu.matmul %262, %7, %cst_66 {dimension_numbers = #tpu.dot_dimension_numbers<[1], [0], [0], [1], [0, 0, 1, 1], [], []>} : vector<8x16xbf16>, vector<16x64xbf16>, vector<8x64xf32> -> vector<8x64xf32>
    %264 = arith.addf %263, %29 : vector<8x64xf32>
    %265 = vector.extract_strided_slice %264 {offsets = [0, 0], sizes = [8, 32], strides = [1, 1]} : vector<8x64xf32> to vector<8x32xf32>
    %266 = vector.extract_strided_slice %264 {offsets = [0, 32], sizes = [8, 32], strides = [1, 1]} : vector<8x64xf32> to vector<8x32xf32>
    %267 = arith.truncf %266 : vector<8x32xf32> to vector<8x32xbf16>
    %268 = vector.extract_strided_slice %267 {offsets = [0, 0], sizes = [8, 16], strides = [1, 1]} : vector<8x32xbf16> to vector<8x16xbf16>
    %269 = vector.extract_strided_slice %49 {offsets = [0, 0], sizes = [16, 16], strides = [1, 1]} : vector<16x64xbf16> to vector<16x16xbf16>
    %270 = vector.extract_strided_slice %49 {offsets = [0, 32], sizes = [16, 16], strides = [1, 1]} : vector<16x64xbf16> to vector<16x16xbf16>
    %cst_67 = arith.constant dense<0.000000e+00> : vector<8x16xf32>
    %271 = tpu.matmul %268, %269, %cst_67 {dimension_numbers = #tpu.dot_dimension_numbers<[1], [1], [0], [0], [0, 0, 1, 0], [], []>} : vector<8x16xbf16>, vector<16x16xbf16>, vector<8x16xf32> -> vector<8x16xf32>
    %272 = arith.addf %271, %3 : vector<8x16xf32>
    %cst_68 = arith.constant dense<0xFF800000> : vector<8xf32>
    %273 = vector.multi_reduction <maximumf>, %272, %cst_68 [1] : vector<8x16xf32> to vector<8xf32>
    %274 = vector.shape_cast %273 : vector<8xf32> to vector<8x1xf32>
    %275 = vector.broadcast %274 : vector<8x1xf32> to vector<8x16xf32>
    %276 = arith.subf %272, %275 : vector<8x16xf32>
    %277 = math.exp %276 : vector<8x16xf32>
    %cst_69 = arith.constant dense<0.000000e+00> : vector<8xf32>
    %278 = vector.multi_reduction <add>, %277, %cst_69 [1] : vector<8x16xf32> to vector<8xf32>
    %279 = vector.shape_cast %278 : vector<8xf32> to vector<8x1xf32>
    %280 = tpu.reciprocal %279 {approx = true} : vector<8x1xf32> -> vector<8x1xf32>
    %281 = vector.broadcast %280 : vector<8x1xf32> to vector<8x16xf32>
    %282 = arith.mulf %277, %281 : vector<8x16xf32>
    %283 = arith.truncf %282 : vector<8x16xf32> to vector<8x16xbf16>
    %cst_70 = arith.constant dense<0.000000e+00> : vector<8x16xf32>
    %284 = tpu.matmul %283, %270, %cst_70 {dimension_numbers = #tpu.dot_dimension_numbers<[1], [0], [0], [1], [0, 0, 1, 1], [], []>} : vector<8x16xbf16>, vector<16x16xbf16>, vector<8x16xf32> -> vector<8x16xf32>
    %285 = vector.extract_strided_slice %267 {offsets = [0, 16], sizes = [8, 16], strides = [1, 1]} : vector<8x32xbf16> to vector<8x16xbf16>
    %286 = vector.extract_strided_slice %49 {offsets = [0, 16], sizes = [16, 16], strides = [1, 1]} : vector<16x64xbf16> to vector<16x16xbf16>
    %287 = vector.extract_strided_slice %49 {offsets = [0, 48], sizes = [16, 16], strides = [1, 1]} : vector<16x64xbf16> to vector<16x16xbf16>
    %cst_71 = arith.constant dense<0.000000e+00> : vector<8x16xf32>
    %288 = tpu.matmul %285, %286, %cst_71 {dimension_numbers = #tpu.dot_dimension_numbers<[1], [1], [0], [0], [0, 0, 1, 0], [], []>} : vector<8x16xbf16>, vector<16x16xbf16>, vector<8x16xf32> -> vector<8x16xf32>
    %289 = arith.addf %288, %3 : vector<8x16xf32>
    %cst_72 = arith.constant dense<0xFF800000> : vector<8xf32>
    %290 = vector.multi_reduction <maximumf>, %289, %cst_72 [1] : vector<8x16xf32> to vector<8xf32>
    %291 = vector.shape_cast %290 : vector<8xf32> to vector<8x1xf32>
    %292 = vector.broadcast %291 : vector<8x1xf32> to vector<8x16xf32>
    %293 = arith.subf %289, %292 : vector<8x16xf32>
    %294 = math.exp %293 : vector<8x16xf32>
    %cst_73 = arith.constant dense<0.000000e+00> : vector<8xf32>
    %295 = vector.multi_reduction <add>, %294, %cst_73 [1] : vector<8x16xf32> to vector<8xf32>
    %296 = vector.shape_cast %295 : vector<8xf32> to vector<8x1xf32>
    %297 = tpu.reciprocal %296 {approx = true} : vector<8x1xf32> -> vector<8x1xf32>
    %298 = vector.broadcast %297 : vector<8x1xf32> to vector<8x16xf32>
    %299 = arith.mulf %294, %298 : vector<8x16xf32>
    %300 = arith.truncf %299 : vector<8x16xf32> to vector<8x16xbf16>
    %cst_74 = arith.constant dense<0.000000e+00> : vector<8x16xf32>
    %301 = tpu.matmul %300, %287, %cst_74 {dimension_numbers = #tpu.dot_dimension_numbers<[1], [0], [0], [1], [0, 0, 1, 1], [], []>} : vector<8x16xbf16>, vector<16x16xbf16>, vector<8x16xf32> -> vector<8x16xf32>
    %302 = tpu.concatenate %284, %301 in 1 : vector<8x16xf32>, vector<8x16xf32> -> vector<8x32xf32>
    %303 = arith.truncf %302 : vector<8x32xf32> to vector<8x32xbf16>
    %cst_75 = arith.constant dense<0.000000e+00> : vector<8x32xf32>
    %304 = tpu.matmul %303, %10, %cst_75 {dimension_numbers = #tpu.dot_dimension_numbers<[1], [0], [0], [1], [0, 0, 1, 1], [], []>} : vector<8x32xbf16>, vector<32x32xbf16>, vector<8x32xf32> -> vector<8x32xf32>
    %305 = arith.addf %304, %31 : vector<8x32xf32>
    %306 = arith.addf %265, %305 : vector<8x32xf32>
    %cst_76 = arith.constant dense<0.000000e+00> : vector<8xf32>
    %307 = vector.multi_reduction <add>, %306, %cst_76 [1] : vector<8x32xf32> to vector<8xf32>
    %308 = vector.shape_cast %307 : vector<8xf32> to vector<8x1xf32>
    %cst_77 = arith.constant 3.200000e+01 : f32
    %309 = vector.broadcast %cst_77 : f32 to vector<8x1xf32>
    %310 = arith.divf %308, %309 : vector<8x1xf32>
    %311 = vector.broadcast %310 : vector<8x1xf32> to vector<8x32xf32>
    %312 = arith.subf %306, %311 : vector<8x32xf32>
    %313 = vector.broadcast %310 : vector<8x1xf32> to vector<8x32xf32>
    %314 = arith.subf %306, %313 : vector<8x32xf32>
    %315 = arith.mulf %312, %314 : vector<8x32xf32>
    %cst_78 = arith.constant dense<0.000000e+00> : vector<8xf32>
    %316 = vector.multi_reduction <add>, %315, %cst_78 [1] : vector<8x32xf32> to vector<8xf32>
    %317 = vector.shape_cast %316 : vector<8xf32> to vector<8x1xf32>
    %cst_79 = arith.constant 3.200000e+01 : f32
    %318 = vector.broadcast %cst_79 : f32 to vector<8x1xf32>
    %319 = arith.divf %317, %318 : vector<8x1xf32>
    %320 = vector.broadcast %310 : vector<8x1xf32> to vector<8x32xf32>
    %321 = arith.subf %306, %320 : vector<8x32xf32>
    %cst_80 = arith.constant 9.99999974E-6 : f32
    %322 = vector.broadcast %cst_80 : f32 to vector<8x1xf32>
    %323 = arith.addf %319, %322 : vector<8x1xf32>
    %324 = math.rsqrt %323 : vector<8x1xf32>
    %325 = vector.broadcast %324 : vector<8x1xf32> to vector<8x32xf32>
    %326 = arith.mulf %321, %325 : vector<8x32xf32>
    %327 = arith.mulf %326, %37 : vector<8x32xf32>
    %328 = arith.addf %327, %39 : vector<8x32xf32>
    %329 = tpu.concatenate %328, %159 in 1 : vector<8x32xf32>, vector<8x32xf32> -> vector<8x64xf32>
    %330 = arith.truncf %329 : vector<8x64xf32> to vector<8x64xbf16>
    %cst_81 = arith.constant dense<0.000000e+00> : vector<8x128xf32>
    %331 = tpu.matmul %330, %6, %cst_81 {dimension_numbers = #tpu.dot_dimension_numbers<[1], [0], [0], [1], [0, 0, 1, 1], [], []>} : vector<8x64xbf16>, vector<64x128xbf16>, vector<8x128xf32> -> vector<8x128xf32>
    %332 = arith.addf %331, %33 : vector<8x128xf32>
    %333 = vector.extract_strided_slice %332 {offsets = [0, 0], sizes = [8, 96], strides = [1, 1]} : vector<8x128xf32> to vector<8x96xf32>
    %334 = arith.negf %333 : vector<8x96xf32>
    %335 = math.exp %334 : vector<8x96xf32>
    %cst_82 = arith.constant 1.000000e+00 : f32
    %336 = vector.broadcast %cst_82 : f32 to vector<8x96xf32>
    %337 = arith.addf %336, %335 : vector<8x96xf32>
    %338 = arith.divf %336, %337 : vector<8x96xf32>
    %339 = vector.extract_strided_slice %332 {offsets = [0, 96], sizes = [8, 32], strides = [1, 1]} : vector<8x128xf32> to vector<8x32xf32>
    %340 = math.tanh %339 : vector<8x32xf32>
    %341 = vector.extract_strided_slice %338 {offsets = [0, 0], sizes = [8, 32], strides = [1, 1]} : vector<8x96xf32> to vector<8x32xf32>
    %342 = vector.extract_strided_slice %338 {offsets = [0, 32], sizes = [8, 32], strides = [1, 1]} : vector<8x96xf32> to vector<8x32xf32>
    %343 = vector.extract_strided_slice %338 {offsets = [0, 64], sizes = [8, 32], strides = [1, 1]} : vector<8x96xf32> to vector<8x32xf32>
    %344 = arith.mulf %342, %162 : vector<8x32xf32>
    %345 = arith.mulf %341, %340 : vector<8x32xf32>
    %346 = arith.addf %344, %345 : vector<8x32xf32>
    %347 = math.tanh %346 : vector<8x32xf32>
    %348 = arith.mulf %343, %347 : vector<8x32xf32>
    %349 = arith.mulf %41, %348 : vector<8x32xf32>
    %350 = arith.mulf %43, %159 : vector<8x32xf32>
    %351 = arith.addf %349, %350 : vector<8x32xf32>
    %352 = arith.mulf %41, %346 : vector<8x32xf32>
    %353 = arith.mulf %43, %162 : vector<8x32xf32>
    %354 = arith.addf %352, %353 : vector<8x32xf32>
    %355 = arith.truncf %351 : vector<8x32xf32> to vector<8x32xbf16>
    %cst_83 = arith.constant dense<0.000000e+00> : vector<8x2xf32>
    %356 = tpu.matmul %355, %12, %cst_83 {dimension_numbers = #tpu.dot_dimension_numbers<[1], [0], [0], [1], [0, 0, 1, 1], [], []>} : vector<8x32xbf16>, vector<32x2xbf16>, vector<8x2xf32> -> vector<8x2xf32>
    %357 = arith.addf %356, %35 : vector<8x2xf32>
    %358 = vector.extract_strided_slice %252 {offsets = [0, 2], sizes = [8, 1], strides = [1, 1]} : vector<8x8xf32> to vector<8x1xf32>
    %359 = vector.extract_strided_slice %252 {offsets = [0, 3], sizes = [8, 1], strides = [1, 1]} : vector<8x8xf32> to vector<8x1xf32>
    %360 = vector.extract_strided_slice %357 {offsets = [0, 0], sizes = [8, 1], strides = [1, 1]} : vector<8x2xf32> to vector<8x1xf32>
    %cst_84 = arith.constant -4.000000e+00 : f32
    %cst_85 = arith.constant 4.000000e+00 : f32
    %361 = vector.broadcast %cst_84 : f32 to vector<8x1xf32>
    %362 = arith.maximumf %361, %360 : vector<8x1xf32>
    %363 = vector.broadcast %cst_85 : f32 to vector<8x1xf32>
    %364 = arith.minimumf %363, %362 : vector<8x1xf32>
    %365 = vector.extract_strided_slice %357 {offsets = [0, 1], sizes = [8, 1], strides = [1, 1]} : vector<8x2xf32> to vector<8x1xf32>
    %cst_86 = arith.constant -1.000000e+00 : f32
    %cst_87 = arith.constant 1.000000e+00 : f32
    %366 = vector.broadcast %cst_86 : f32 to vector<8x1xf32>
    %367 = arith.maximumf %366, %365 : vector<8x1xf32>
    %368 = vector.broadcast %cst_87 : f32 to vector<8x1xf32>
    %369 = arith.minimumf %368, %367 : vector<8x1xf32>
    %cst_88 = arith.constant 6.28318548 : f32
    %370 = vector.broadcast %cst_88 : f32 to vector<8x1xf32>
    %371 = arith.divf %358, %370 : vector<8x1xf32>
    %cst_89 = arith.constant 5.000000e-01 : f32
    %372 = vector.broadcast %cst_89 : f32 to vector<8x1xf32>
    %373 = arith.addf %371, %372 : vector<8x1xf32>
    %374 = math.floor %373 : vector<8x1xf32>
    %cst_90 = arith.constant 6.28318548 : f32
    %375 = vector.broadcast %cst_90 : f32 to vector<8x1xf32>
    %376 = arith.mulf %375, %374 : vector<8x1xf32>
    %377 = arith.subf %358, %376 : vector<8x1xf32>
    %378 = arith.mulf %377, %377 : vector<8x1xf32>
    %cst_91 = arith.constant -2.50521079E-8 : f32
    %379 = vector.broadcast %cst_91 : f32 to vector<8x1xf32>
    %380 = arith.mulf %378, %379 : vector<8x1xf32>
    %cst_92 = arith.constant 2.75573188E-6 : f32
    %381 = vector.broadcast %cst_92 : f32 to vector<8x1xf32>
    %382 = arith.addf %381, %380 : vector<8x1xf32>
    %383 = arith.mulf %378, %382 : vector<8x1xf32>
    %cst_93 = arith.constant -1.98412701E-4 : f32
    %384 = vector.broadcast %cst_93 : f32 to vector<8x1xf32>
    %385 = arith.addf %384, %383 : vector<8x1xf32>
    %386 = arith.mulf %378, %385 : vector<8x1xf32>
    %cst_94 = arith.constant 0.00833333377 : f32
    %387 = vector.broadcast %cst_94 : f32 to vector<8x1xf32>
    %388 = arith.addf %387, %386 : vector<8x1xf32>
    %389 = arith.mulf %378, %388 : vector<8x1xf32>
    %cst_95 = arith.constant -0.166666672 : f32
    %390 = vector.broadcast %cst_95 : f32 to vector<8x1xf32>
    %391 = arith.addf %390, %389 : vector<8x1xf32>
    %392 = arith.mulf %378, %391 : vector<8x1xf32>
    %cst_96 = arith.constant 1.000000e+00 : f32
    %393 = vector.broadcast %cst_96 : f32 to vector<8x1xf32>
    %394 = arith.addf %393, %392 : vector<8x1xf32>
    %395 = arith.mulf %377, %394 : vector<8x1xf32>
    %cst_97 = arith.constant 2.08767559E-9 : f32
    %396 = vector.broadcast %cst_97 : f32 to vector<8x1xf32>
    %397 = arith.mulf %378, %396 : vector<8x1xf32>
    %cst_98 = arith.constant -2.755732E-7 : f32
    %398 = vector.broadcast %cst_98 : f32 to vector<8x1xf32>
    %399 = arith.addf %398, %397 : vector<8x1xf32>
    %400 = arith.mulf %378, %399 : vector<8x1xf32>
    %cst_99 = arith.constant 2.48015876E-5 : f32
    %401 = vector.broadcast %cst_99 : f32 to vector<8x1xf32>
    %402 = arith.addf %401, %400 : vector<8x1xf32>
    %403 = arith.mulf %378, %402 : vector<8x1xf32>
    %cst_100 = arith.constant -0.00138888892 : f32
    %404 = vector.broadcast %cst_100 : f32 to vector<8x1xf32>
    %405 = arith.addf %404, %403 : vector<8x1xf32>
    %406 = arith.mulf %378, %405 : vector<8x1xf32>
    %cst_101 = arith.constant 0.0416666679 : f32
    %407 = vector.broadcast %cst_101 : f32 to vector<8x1xf32>
    %408 = arith.addf %407, %406 : vector<8x1xf32>
    %409 = arith.mulf %378, %408 : vector<8x1xf32>
    %cst_102 = arith.constant -5.000000e-01 : f32
    %410 = vector.broadcast %cst_102 : f32 to vector<8x1xf32>
    %411 = arith.addf %410, %409 : vector<8x1xf32>
    %412 = arith.mulf %378, %411 : vector<8x1xf32>
    %cst_103 = arith.constant 1.000000e+00 : f32
    %413 = vector.broadcast %cst_103 : f32 to vector<8x1xf32>
    %414 = arith.addf %413, %412 : vector<8x1xf32>
    %415 = arith.mulf %359, %414 : vector<8x1xf32>
    %cst_104 = arith.constant 1.000000e-01 : f32
    %416 = vector.broadcast %cst_104 : f32 to vector<8x1xf32>
    %417 = arith.mulf %415, %416 : vector<8x1xf32>
    %cst_105 = arith.constant 0.000000e+00 : f32
    %418 = vector.shape_cast %417 : vector<8x1xf32> to vector<8x1xf32>
    %419 = vector.broadcast %418 : vector<8x1xf32> to vector<8x8xf32>
    %420 = vector.broadcast %cst_105 : f32 to vector<8x8xf32>
    %421 = arith.select %52, %419, %420 : vector<8x8xi1>, vector<8x8xf32>
    %422 = arith.mulf %359, %395 : vector<8x1xf32>
    %cst_106 = arith.constant 1.000000e-01 : f32
    %423 = vector.broadcast %cst_106 : f32 to vector<8x1xf32>
    %424 = arith.mulf %422, %423 : vector<8x1xf32>
    %cst_107 = arith.constant 0.000000e+00 : f32
    %425 = vector.shape_cast %424 : vector<8x1xf32> to vector<8x1xf32>
    %426 = vector.broadcast %425 : vector<8x1xf32> to vector<8x8xf32>
    %427 = vector.broadcast %cst_107 : f32 to vector<8x8xf32>
    %428 = arith.select %54, %426, %427 : vector<8x8xi1>, vector<8x8xf32>
    %429 = arith.addf %421, %428 : vector<8x8xf32>
    %cst_108 = arith.constant 1.000000e-01 : f32
    %430 = vector.broadcast %cst_108 : f32 to vector<8x1xf32>
    %431 = arith.mulf %369, %430 : vector<8x1xf32>
    %cst_109 = arith.constant 0.000000e+00 : f32
    %432 = vector.shape_cast %431 : vector<8x1xf32> to vector<8x1xf32>
    %433 = vector.broadcast %432 : vector<8x1xf32> to vector<8x8xf32>
    %434 = vector.broadcast %cst_109 : f32 to vector<8x8xf32>
    %435 = arith.select %56, %433, %434 : vector<8x8xi1>, vector<8x8xf32>
    %436 = arith.addf %429, %435 : vector<8x8xf32>
    %cst_110 = arith.constant 1.000000e-01 : f32
    %437 = vector.broadcast %cst_110 : f32 to vector<8x1xf32>
    %438 = arith.mulf %364, %437 : vector<8x1xf32>
    %cst_111 = arith.constant 0.000000e+00 : f32
    %439 = vector.shape_cast %438 : vector<8x1xf32> to vector<8x1xf32>
    %440 = vector.broadcast %439 : vector<8x1xf32> to vector<8x8xf32>
    %441 = vector.broadcast %cst_111 : f32 to vector<8x8xf32>
    %442 = arith.select %58, %440, %441 : vector<8x8xi1>, vector<8x8xf32>
    %443 = arith.addf %436, %442 : vector<8x8xf32>
    %444 = arith.addf %252, %443 : vector<8x8xf32>
    %cst_112 = arith.constant dense<0.000000e+00> : vector<8x32xf32>
    %445 = tpu.matmul %444, %14, %cst_112 {dimension_numbers = #tpu.dot_dimension_numbers<[1], [0], [0], [1], [0, 0, 1, 1], [], []>} : vector<8x8xf32>, vector<8x32xf32>, vector<8x32xf32> -> vector<8x32xf32>
    %446 = arith.addf %445, %25 : vector<8x32xf32>
    %cst_113 = arith.constant 0.000000e+00 : f32
    %447 = vector.broadcast %cst_113 : f32 to vector<8x32xf32>
    %448 = arith.maximumf %446, %447 : vector<8x32xf32>
    %449 = arith.truncf %448 : vector<8x32xf32> to vector<8x32xbf16>
    %cst_114 = arith.constant dense<0.000000e+00> : vector<8x16xf32>
    %450 = tpu.matmul %449, %11, %cst_114 {dimension_numbers = #tpu.dot_dimension_numbers<[1], [0], [0], [1], [0, 0, 1, 1], [], []>} : vector<8x32xbf16>, vector<32x16xbf16>, vector<8x16xf32> -> vector<8x16xf32>
    %451 = arith.addf %450, %27 : vector<8x16xf32>
    %cst_115 = arith.constant 0.000000e+00 : f32
    %452 = vector.broadcast %cst_115 : f32 to vector<8x16xf32>
    %453 = arith.maximumf %451, %452 : vector<8x16xf32>
    %454 = arith.truncf %453 : vector<8x16xf32> to vector<8x16xbf16>
    %cst_116 = arith.constant dense<0.000000e+00> : vector<8x64xf32>
    %455 = tpu.matmul %454, %7, %cst_116 {dimension_numbers = #tpu.dot_dimension_numbers<[1], [0], [0], [1], [0, 0, 1, 1], [], []>} : vector<8x16xbf16>, vector<16x64xbf16>, vector<8x64xf32> -> vector<8x64xf32>
    %456 = arith.addf %455, %29 : vector<8x64xf32>
    %457 = vector.extract_strided_slice %456 {offsets = [0, 0], sizes = [8, 32], strides = [1, 1]} : vector<8x64xf32> to vector<8x32xf32>
    %458 = vector.extract_strided_slice %456 {offsets = [0, 32], sizes = [8, 32], strides = [1, 1]} : vector<8x64xf32> to vector<8x32xf32>
    %459 = arith.truncf %458 : vector<8x32xf32> to vector<8x32xbf16>
    %460 = vector.extract_strided_slice %459 {offsets = [0, 0], sizes = [8, 16], strides = [1, 1]} : vector<8x32xbf16> to vector<8x16xbf16>
    %461 = vector.extract_strided_slice %49 {offsets = [0, 0], sizes = [16, 16], strides = [1, 1]} : vector<16x64xbf16> to vector<16x16xbf16>
    %462 = vector.extract_strided_slice %49 {offsets = [0, 32], sizes = [16, 16], strides = [1, 1]} : vector<16x64xbf16> to vector<16x16xbf16>
    %cst_117 = arith.constant dense<0.000000e+00> : vector<8x16xf32>
    %463 = tpu.matmul %460, %461, %cst_117 {dimension_numbers = #tpu.dot_dimension_numbers<[1], [1], [0], [0], [0, 0, 1, 0], [], []>} : vector<8x16xbf16>, vector<16x16xbf16>, vector<8x16xf32> -> vector<8x16xf32>
    %464 = arith.addf %463, %3 : vector<8x16xf32>
    %cst_118 = arith.constant dense<0xFF800000> : vector<8xf32>
    %465 = vector.multi_reduction <maximumf>, %464, %cst_118 [1] : vector<8x16xf32> to vector<8xf32>
    %466 = vector.shape_cast %465 : vector<8xf32> to vector<8x1xf32>
    %467 = vector.broadcast %466 : vector<8x1xf32> to vector<8x16xf32>
    %468 = arith.subf %464, %467 : vector<8x16xf32>
    %469 = math.exp %468 : vector<8x16xf32>
    %cst_119 = arith.constant dense<0.000000e+00> : vector<8xf32>
    %470 = vector.multi_reduction <add>, %469, %cst_119 [1] : vector<8x16xf32> to vector<8xf32>
    %471 = vector.shape_cast %470 : vector<8xf32> to vector<8x1xf32>
    %472 = tpu.reciprocal %471 {approx = true} : vector<8x1xf32> -> vector<8x1xf32>
    %473 = vector.broadcast %472 : vector<8x1xf32> to vector<8x16xf32>
    %474 = arith.mulf %469, %473 : vector<8x16xf32>
    %475 = arith.truncf %474 : vector<8x16xf32> to vector<8x16xbf16>
    %cst_120 = arith.constant dense<0.000000e+00> : vector<8x16xf32>
    %476 = tpu.matmul %475, %462, %cst_120 {dimension_numbers = #tpu.dot_dimension_numbers<[1], [0], [0], [1], [0, 0, 1, 1], [], []>} : vector<8x16xbf16>, vector<16x16xbf16>, vector<8x16xf32> -> vector<8x16xf32>
    %477 = vector.extract_strided_slice %459 {offsets = [0, 16], sizes = [8, 16], strides = [1, 1]} : vector<8x32xbf16> to vector<8x16xbf16>
    %478 = vector.extract_strided_slice %49 {offsets = [0, 16], sizes = [16, 16], strides = [1, 1]} : vector<16x64xbf16> to vector<16x16xbf16>
    %479 = vector.extract_strided_slice %49 {offsets = [0, 48], sizes = [16, 16], strides = [1, 1]} : vector<16x64xbf16> to vector<16x16xbf16>
    %cst_121 = arith.constant dense<0.000000e+00> : vector<8x16xf32>
    %480 = tpu.matmul %477, %478, %cst_121 {dimension_numbers = #tpu.dot_dimension_numbers<[1], [1], [0], [0], [0, 0, 1, 0], [], []>} : vector<8x16xbf16>, vector<16x16xbf16>, vector<8x16xf32> -> vector<8x16xf32>
    %481 = arith.addf %480, %3 : vector<8x16xf32>
    %cst_122 = arith.constant dense<0xFF800000> : vector<8xf32>
    %482 = vector.multi_reduction <maximumf>, %481, %cst_122 [1] : vector<8x16xf32> to vector<8xf32>
    %483 = vector.shape_cast %482 : vector<8xf32> to vector<8x1xf32>
    %484 = vector.broadcast %483 : vector<8x1xf32> to vector<8x16xf32>
    %485 = arith.subf %481, %484 : vector<8x16xf32>
    %486 = math.exp %485 : vector<8x16xf32>
    %cst_123 = arith.constant dense<0.000000e+00> : vector<8xf32>
    %487 = vector.multi_reduction <add>, %486, %cst_123 [1] : vector<8x16xf32> to vector<8xf32>
    %488 = vector.shape_cast %487 : vector<8xf32> to vector<8x1xf32>
    %489 = tpu.reciprocal %488 {approx = true} : vector<8x1xf32> -> vector<8x1xf32>
    %490 = vector.broadcast %489 : vector<8x1xf32> to vector<8x16xf32>
    %491 = arith.mulf %486, %490 : vector<8x16xf32>
    %492 = arith.truncf %491 : vector<8x16xf32> to vector<8x16xbf16>
    %cst_124 = arith.constant dense<0.000000e+00> : vector<8x16xf32>
    %493 = tpu.matmul %492, %479, %cst_124 {dimension_numbers = #tpu.dot_dimension_numbers<[1], [0], [0], [1], [0, 0, 1, 1], [], []>} : vector<8x16xbf16>, vector<16x16xbf16>, vector<8x16xf32> -> vector<8x16xf32>
    %494 = tpu.concatenate %476, %493 in 1 : vector<8x16xf32>, vector<8x16xf32> -> vector<8x32xf32>
    %495 = arith.truncf %494 : vector<8x32xf32> to vector<8x32xbf16>
    %cst_125 = arith.constant dense<0.000000e+00> : vector<8x32xf32>
    %496 = tpu.matmul %495, %10, %cst_125 {dimension_numbers = #tpu.dot_dimension_numbers<[1], [0], [0], [1], [0, 0, 1, 1], [], []>} : vector<8x32xbf16>, vector<32x32xbf16>, vector<8x32xf32> -> vector<8x32xf32>
    %497 = arith.addf %496, %31 : vector<8x32xf32>
    %498 = arith.addf %457, %497 : vector<8x32xf32>
    %cst_126 = arith.constant dense<0.000000e+00> : vector<8xf32>
    %499 = vector.multi_reduction <add>, %498, %cst_126 [1] : vector<8x32xf32> to vector<8xf32>
    %500 = vector.shape_cast %499 : vector<8xf32> to vector<8x1xf32>
    %cst_127 = arith.constant 3.200000e+01 : f32
    %501 = vector.broadcast %cst_127 : f32 to vector<8x1xf32>
    %502 = arith.divf %500, %501 : vector<8x1xf32>
    %503 = vector.broadcast %502 : vector<8x1xf32> to vector<8x32xf32>
    %504 = arith.subf %498, %503 : vector<8x32xf32>
    %505 = vector.broadcast %502 : vector<8x1xf32> to vector<8x32xf32>
    %506 = arith.subf %498, %505 : vector<8x32xf32>
    %507 = arith.mulf %504, %506 : vector<8x32xf32>
    %cst_128 = arith.constant dense<0.000000e+00> : vector<8xf32>
    %508 = vector.multi_reduction <add>, %507, %cst_128 [1] : vector<8x32xf32> to vector<8xf32>
    %509 = vector.shape_cast %508 : vector<8xf32> to vector<8x1xf32>
    %cst_129 = arith.constant 3.200000e+01 : f32
    %510 = vector.broadcast %cst_129 : f32 to vector<8x1xf32>
    %511 = arith.divf %509, %510 : vector<8x1xf32>
    %512 = vector.broadcast %502 : vector<8x1xf32> to vector<8x32xf32>
    %513 = arith.subf %498, %512 : vector<8x32xf32>
    %cst_130 = arith.constant 9.99999974E-6 : f32
    %514 = vector.broadcast %cst_130 : f32 to vector<8x1xf32>
    %515 = arith.addf %511, %514 : vector<8x1xf32>
    %516 = math.rsqrt %515 : vector<8x1xf32>
    %517 = vector.broadcast %516 : vector<8x1xf32> to vector<8x32xf32>
    %518 = arith.mulf %513, %517 : vector<8x32xf32>
    %519 = arith.mulf %518, %37 : vector<8x32xf32>
    %520 = arith.addf %519, %39 : vector<8x32xf32>
    %521 = tpu.concatenate %520, %351 in 1 : vector<8x32xf32>, vector<8x32xf32> -> vector<8x64xf32>
    %522 = arith.truncf %521 : vector<8x64xf32> to vector<8x64xbf16>
    %cst_131 = arith.constant dense<0.000000e+00> : vector<8x128xf32>
    %523 = tpu.matmul %522, %6, %cst_131 {dimension_numbers = #tpu.dot_dimension_numbers<[1], [0], [0], [1], [0, 0, 1, 1], [], []>} : vector<8x64xbf16>, vector<64x128xbf16>, vector<8x128xf32> -> vector<8x128xf32>
    %524 = arith.addf %523, %33 : vector<8x128xf32>
    %525 = vector.extract_strided_slice %524 {offsets = [0, 0], sizes = [8, 96], strides = [1, 1]} : vector<8x128xf32> to vector<8x96xf32>
    %526 = arith.negf %525 : vector<8x96xf32>
    %527 = math.exp %526 : vector<8x96xf32>
    %cst_132 = arith.constant 1.000000e+00 : f32
    %528 = vector.broadcast %cst_132 : f32 to vector<8x96xf32>
    %529 = arith.addf %528, %527 : vector<8x96xf32>
    %530 = arith.divf %528, %529 : vector<8x96xf32>
    %531 = vector.extract_strided_slice %524 {offsets = [0, 96], sizes = [8, 32], strides = [1, 1]} : vector<8x128xf32> to vector<8x32xf32>
    %532 = math.tanh %531 : vector<8x32xf32>
    %533 = vector.extract_strided_slice %530 {offsets = [0, 0], sizes = [8, 32], strides = [1, 1]} : vector<8x96xf32> to vector<8x32xf32>
    %534 = vector.extract_strided_slice %530 {offsets = [0, 32], sizes = [8, 32], strides = [1, 1]} : vector<8x96xf32> to vector<8x32xf32>
    %535 = vector.extract_strided_slice %530 {offsets = [0, 64], sizes = [8, 32], strides = [1, 1]} : vector<8x96xf32> to vector<8x32xf32>
    %536 = arith.mulf %534, %354 : vector<8x32xf32>
    %537 = arith.mulf %533, %532 : vector<8x32xf32>
    %538 = arith.addf %536, %537 : vector<8x32xf32>
    %539 = math.tanh %538 : vector<8x32xf32>
    %540 = arith.mulf %535, %539 : vector<8x32xf32>
    %541 = arith.mulf %41, %540 : vector<8x32xf32>
    %542 = arith.mulf %43, %351 : vector<8x32xf32>
    %543 = arith.addf %541, %542 : vector<8x32xf32>
    %544 = arith.mulf %41, %538 : vector<8x32xf32>
    %545 = arith.mulf %43, %354 : vector<8x32xf32>
    %546 = arith.addf %544, %545 : vector<8x32xf32>
    %547 = arith.truncf %543 : vector<8x32xf32> to vector<8x32xbf16>
    %cst_133 = arith.constant dense<0.000000e+00> : vector<8x2xf32>
    %548 = tpu.matmul %547, %12, %cst_133 {dimension_numbers = #tpu.dot_dimension_numbers<[1], [0], [0], [1], [0, 0, 1, 1], [], []>} : vector<8x32xbf16>, vector<32x2xbf16>, vector<8x2xf32> -> vector<8x2xf32>
    %549 = arith.addf %548, %35 : vector<8x2xf32>
    %550 = vector.extract_strided_slice %444 {offsets = [0, 2], sizes = [8, 1], strides = [1, 1]} : vector<8x8xf32> to vector<8x1xf32>
    %551 = vector.extract_strided_slice %444 {offsets = [0, 3], sizes = [8, 1], strides = [1, 1]} : vector<8x8xf32> to vector<8x1xf32>
    %552 = vector.extract_strided_slice %549 {offsets = [0, 0], sizes = [8, 1], strides = [1, 1]} : vector<8x2xf32> to vector<8x1xf32>
    %cst_134 = arith.constant -4.000000e+00 : f32
    %cst_135 = arith.constant 4.000000e+00 : f32
    %553 = vector.broadcast %cst_134 : f32 to vector<8x1xf32>
    %554 = arith.maximumf %553, %552 : vector<8x1xf32>
    %555 = vector.broadcast %cst_135 : f32 to vector<8x1xf32>
    %556 = arith.minimumf %555, %554 : vector<8x1xf32>
    %557 = vector.extract_strided_slice %549 {offsets = [0, 1], sizes = [8, 1], strides = [1, 1]} : vector<8x2xf32> to vector<8x1xf32>
    %cst_136 = arith.constant -1.000000e+00 : f32
    %cst_137 = arith.constant 1.000000e+00 : f32
    %558 = vector.broadcast %cst_136 : f32 to vector<8x1xf32>
    %559 = arith.maximumf %558, %557 : vector<8x1xf32>
    %560 = vector.broadcast %cst_137 : f32 to vector<8x1xf32>
    %561 = arith.minimumf %560, %559 : vector<8x1xf32>
    %cst_138 = arith.constant 6.28318548 : f32
    %562 = vector.broadcast %cst_138 : f32 to vector<8x1xf32>
    %563 = arith.divf %550, %562 : vector<8x1xf32>
    %cst_139 = arith.constant 5.000000e-01 : f32
    %564 = vector.broadcast %cst_139 : f32 to vector<8x1xf32>
    %565 = arith.addf %563, %564 : vector<8x1xf32>
    %566 = math.floor %565 : vector<8x1xf32>
    %cst_140 = arith.constant 6.28318548 : f32
    %567 = vector.broadcast %cst_140 : f32 to vector<8x1xf32>
    %568 = arith.mulf %567, %566 : vector<8x1xf32>
    %569 = arith.subf %550, %568 : vector<8x1xf32>
    %570 = arith.mulf %569, %569 : vector<8x1xf32>
    %cst_141 = arith.constant -2.50521079E-8 : f32
    %571 = vector.broadcast %cst_141 : f32 to vector<8x1xf32>
    %572 = arith.mulf %570, %571 : vector<8x1xf32>
    %cst_142 = arith.constant 2.75573188E-6 : f32
    %573 = vector.broadcast %cst_142 : f32 to vector<8x1xf32>
    %574 = arith.addf %573, %572 : vector<8x1xf32>
    %575 = arith.mulf %570, %574 : vector<8x1xf32>
    %cst_143 = arith.constant -1.98412701E-4 : f32
    %576 = vector.broadcast %cst_143 : f32 to vector<8x1xf32>
    %577 = arith.addf %576, %575 : vector<8x1xf32>
    %578 = arith.mulf %570, %577 : vector<8x1xf32>
    %cst_144 = arith.constant 0.00833333377 : f32
    %579 = vector.broadcast %cst_144 : f32 to vector<8x1xf32>
    %580 = arith.addf %579, %578 : vector<8x1xf32>
    %581 = arith.mulf %570, %580 : vector<8x1xf32>
    %cst_145 = arith.constant -0.166666672 : f32
    %582 = vector.broadcast %cst_145 : f32 to vector<8x1xf32>
    %583 = arith.addf %582, %581 : vector<8x1xf32>
    %584 = arith.mulf %570, %583 : vector<8x1xf32>
    %cst_146 = arith.constant 1.000000e+00 : f32
    %585 = vector.broadcast %cst_146 : f32 to vector<8x1xf32>
    %586 = arith.addf %585, %584 : vector<8x1xf32>
    %587 = arith.mulf %569, %586 : vector<8x1xf32>
    %cst_147 = arith.constant 2.08767559E-9 : f32
    %588 = vector.broadcast %cst_147 : f32 to vector<8x1xf32>
    %589 = arith.mulf %570, %588 : vector<8x1xf32>
    %cst_148 = arith.constant -2.755732E-7 : f32
    %590 = vector.broadcast %cst_148 : f32 to vector<8x1xf32>
    %591 = arith.addf %590, %589 : vector<8x1xf32>
    %592 = arith.mulf %570, %591 : vector<8x1xf32>
    %cst_149 = arith.constant 2.48015876E-5 : f32
    %593 = vector.broadcast %cst_149 : f32 to vector<8x1xf32>
    %594 = arith.addf %593, %592 : vector<8x1xf32>
    %595 = arith.mulf %570, %594 : vector<8x1xf32>
    %cst_150 = arith.constant -0.00138888892 : f32
    %596 = vector.broadcast %cst_150 : f32 to vector<8x1xf32>
    %597 = arith.addf %596, %595 : vector<8x1xf32>
    %598 = arith.mulf %570, %597 : vector<8x1xf32>
    %cst_151 = arith.constant 0.0416666679 : f32
    %599 = vector.broadcast %cst_151 : f32 to vector<8x1xf32>
    %600 = arith.addf %599, %598 : vector<8x1xf32>
    %601 = arith.mulf %570, %600 : vector<8x1xf32>
    %cst_152 = arith.constant -5.000000e-01 : f32
    %602 = vector.broadcast %cst_152 : f32 to vector<8x1xf32>
    %603 = arith.addf %602, %601 : vector<8x1xf32>
    %604 = arith.mulf %570, %603 : vector<8x1xf32>
    %cst_153 = arith.constant 1.000000e+00 : f32
    %605 = vector.broadcast %cst_153 : f32 to vector<8x1xf32>
    %606 = arith.addf %605, %604 : vector<8x1xf32>
    %607 = arith.mulf %551, %606 : vector<8x1xf32>
    %cst_154 = arith.constant 1.000000e-01 : f32
    %608 = vector.broadcast %cst_154 : f32 to vector<8x1xf32>
    %609 = arith.mulf %607, %608 : vector<8x1xf32>
    %cst_155 = arith.constant 0.000000e+00 : f32
    %610 = vector.shape_cast %609 : vector<8x1xf32> to vector<8x1xf32>
    %611 = vector.broadcast %610 : vector<8x1xf32> to vector<8x8xf32>
    %612 = vector.broadcast %cst_155 : f32 to vector<8x8xf32>
    %613 = arith.select %52, %611, %612 : vector<8x8xi1>, vector<8x8xf32>
    %614 = arith.mulf %551, %587 : vector<8x1xf32>
    %cst_156 = arith.constant 1.000000e-01 : f32
    %615 = vector.broadcast %cst_156 : f32 to vector<8x1xf32>
    %616 = arith.mulf %614, %615 : vector<8x1xf32>
    %cst_157 = arith.constant 0.000000e+00 : f32
    %617 = vector.shape_cast %616 : vector<8x1xf32> to vector<8x1xf32>
    %618 = vector.broadcast %617 : vector<8x1xf32> to vector<8x8xf32>
    %619 = vector.broadcast %cst_157 : f32 to vector<8x8xf32>
    %620 = arith.select %54, %618, %619 : vector<8x8xi1>, vector<8x8xf32>
    %621 = arith.addf %613, %620 : vector<8x8xf32>
    %cst_158 = arith.constant 1.000000e-01 : f32
    %622 = vector.broadcast %cst_158 : f32 to vector<8x1xf32>
    %623 = arith.mulf %561, %622 : vector<8x1xf32>
    %cst_159 = arith.constant 0.000000e+00 : f32
    %624 = vector.shape_cast %623 : vector<8x1xf32> to vector<8x1xf32>
    %625 = vector.broadcast %624 : vector<8x1xf32> to vector<8x8xf32>
    %626 = vector.broadcast %cst_159 : f32 to vector<8x8xf32>
    %627 = arith.select %56, %625, %626 : vector<8x8xi1>, vector<8x8xf32>
    %628 = arith.addf %621, %627 : vector<8x8xf32>
    %cst_160 = arith.constant 1.000000e-01 : f32
    %629 = vector.broadcast %cst_160 : f32 to vector<8x1xf32>
    %630 = arith.mulf %556, %629 : vector<8x1xf32>
    %cst_161 = arith.constant 0.000000e+00 : f32
    %631 = vector.shape_cast %630 : vector<8x1xf32> to vector<8x1xf32>
    %632 = vector.broadcast %631 : vector<8x1xf32> to vector<8x8xf32>
    %633 = vector.broadcast %cst_161 : f32 to vector<8x8xf32>
    %634 = arith.select %58, %632, %633 : vector<8x8xi1>, vector<8x8xf32>
    %635 = arith.addf %628, %634 : vector<8x8xf32>
    %636 = arith.addf %444, %635 : vector<8x8xf32>
    %cst_162 = arith.constant dense<0.000000e+00> : vector<8x32xf32>
    %637 = tpu.matmul %636, %14, %cst_162 {dimension_numbers = #tpu.dot_dimension_numbers<[1], [0], [0], [1], [0, 0, 1, 1], [], []>} : vector<8x8xf32>, vector<8x32xf32>, vector<8x32xf32> -> vector<8x32xf32>
    %638 = arith.addf %637, %25 : vector<8x32xf32>
    %cst_163 = arith.constant 0.000000e+00 : f32
    %639 = vector.broadcast %cst_163 : f32 to vector<8x32xf32>
    %640 = arith.maximumf %638, %639 : vector<8x32xf32>
    %641 = arith.truncf %640 : vector<8x32xf32> to vector<8x32xbf16>
    %cst_164 = arith.constant dense<0.000000e+00> : vector<8x16xf32>
    %642 = tpu.matmul %641, %11, %cst_164 {dimension_numbers = #tpu.dot_dimension_numbers<[1], [0], [0], [1], [0, 0, 1, 1], [], []>} : vector<8x32xbf16>, vector<32x16xbf16>, vector<8x16xf32> -> vector<8x16xf32>
    %643 = arith.addf %642, %27 : vector<8x16xf32>
    %cst_165 = arith.constant 0.000000e+00 : f32
    %644 = vector.broadcast %cst_165 : f32 to vector<8x16xf32>
    %645 = arith.maximumf %643, %644 : vector<8x16xf32>
    %646 = arith.truncf %645 : vector<8x16xf32> to vector<8x16xbf16>
    %cst_166 = arith.constant dense<0.000000e+00> : vector<8x64xf32>
    %647 = tpu.matmul %646, %7, %cst_166 {dimension_numbers = #tpu.dot_dimension_numbers<[1], [0], [0], [1], [0, 0, 1, 1], [], []>} : vector<8x16xbf16>, vector<16x64xbf16>, vector<8x64xf32> -> vector<8x64xf32>
    %648 = arith.addf %647, %29 : vector<8x64xf32>
    %649 = vector.extract_strided_slice %648 {offsets = [0, 0], sizes = [8, 32], strides = [1, 1]} : vector<8x64xf32> to vector<8x32xf32>
    %650 = vector.extract_strided_slice %648 {offsets = [0, 32], sizes = [8, 32], strides = [1, 1]} : vector<8x64xf32> to vector<8x32xf32>
    %651 = arith.truncf %650 : vector<8x32xf32> to vector<8x32xbf16>
    %652 = vector.extract_strided_slice %651 {offsets = [0, 0], sizes = [8, 16], strides = [1, 1]} : vector<8x32xbf16> to vector<8x16xbf16>
    %653 = vector.extract_strided_slice %49 {offsets = [0, 0], sizes = [16, 16], strides = [1, 1]} : vector<16x64xbf16> to vector<16x16xbf16>
    %654 = vector.extract_strided_slice %49 {offsets = [0, 32], sizes = [16, 16], strides = [1, 1]} : vector<16x64xbf16> to vector<16x16xbf16>
    %cst_167 = arith.constant dense<0.000000e+00> : vector<8x16xf32>
    %655 = tpu.matmul %652, %653, %cst_167 {dimension_numbers = #tpu.dot_dimension_numbers<[1], [1], [0], [0], [0, 0, 1, 0], [], []>} : vector<8x16xbf16>, vector<16x16xbf16>, vector<8x16xf32> -> vector<8x16xf32>
    %656 = arith.addf %655, %3 : vector<8x16xf32>
    %cst_168 = arith.constant dense<0xFF800000> : vector<8xf32>
    %657 = vector.multi_reduction <maximumf>, %656, %cst_168 [1] : vector<8x16xf32> to vector<8xf32>
    %658 = vector.shape_cast %657 : vector<8xf32> to vector<8x1xf32>
    %659 = vector.broadcast %658 : vector<8x1xf32> to vector<8x16xf32>
    %660 = arith.subf %656, %659 : vector<8x16xf32>
    %661 = math.exp %660 : vector<8x16xf32>
    %cst_169 = arith.constant dense<0.000000e+00> : vector<8xf32>
    %662 = vector.multi_reduction <add>, %661, %cst_169 [1] : vector<8x16xf32> to vector<8xf32>
    %663 = vector.shape_cast %662 : vector<8xf32> to vector<8x1xf32>
    %664 = tpu.reciprocal %663 {approx = true} : vector<8x1xf32> -> vector<8x1xf32>
    %665 = vector.broadcast %664 : vector<8x1xf32> to vector<8x16xf32>
    %666 = arith.mulf %661, %665 : vector<8x16xf32>
    %667 = arith.truncf %666 : vector<8x16xf32> to vector<8x16xbf16>
    %cst_170 = arith.constant dense<0.000000e+00> : vector<8x16xf32>
    %668 = tpu.matmul %667, %654, %cst_170 {dimension_numbers = #tpu.dot_dimension_numbers<[1], [0], [0], [1], [0, 0, 1, 1], [], []>} : vector<8x16xbf16>, vector<16x16xbf16>, vector<8x16xf32> -> vector<8x16xf32>
    %669 = vector.extract_strided_slice %651 {offsets = [0, 16], sizes = [8, 16], strides = [1, 1]} : vector<8x32xbf16> to vector<8x16xbf16>
    %670 = vector.extract_strided_slice %49 {offsets = [0, 16], sizes = [16, 16], strides = [1, 1]} : vector<16x64xbf16> to vector<16x16xbf16>
    %671 = vector.extract_strided_slice %49 {offsets = [0, 48], sizes = [16, 16], strides = [1, 1]} : vector<16x64xbf16> to vector<16x16xbf16>
    %cst_171 = arith.constant dense<0.000000e+00> : vector<8x16xf32>
    %672 = tpu.matmul %669, %670, %cst_171 {dimension_numbers = #tpu.dot_dimension_numbers<[1], [1], [0], [0], [0, 0, 1, 0], [], []>} : vector<8x16xbf16>, vector<16x16xbf16>, vector<8x16xf32> -> vector<8x16xf32>
    %673 = arith.addf %672, %3 : vector<8x16xf32>
    %cst_172 = arith.constant dense<0xFF800000> : vector<8xf32>
    %674 = vector.multi_reduction <maximumf>, %673, %cst_172 [1] : vector<8x16xf32> to vector<8xf32>
    %675 = vector.shape_cast %674 : vector<8xf32> to vector<8x1xf32>
    %676 = vector.broadcast %675 : vector<8x1xf32> to vector<8x16xf32>
    %677 = arith.subf %673, %676 : vector<8x16xf32>
    %678 = math.exp %677 : vector<8x16xf32>
    %cst_173 = arith.constant dense<0.000000e+00> : vector<8xf32>
    %679 = vector.multi_reduction <add>, %678, %cst_173 [1] : vector<8x16xf32> to vector<8xf32>
    %680 = vector.shape_cast %679 : vector<8xf32> to vector<8x1xf32>
    %681 = tpu.reciprocal %680 {approx = true} : vector<8x1xf32> -> vector<8x1xf32>
    %682 = vector.broadcast %681 : vector<8x1xf32> to vector<8x16xf32>
    %683 = arith.mulf %678, %682 : vector<8x16xf32>
    %684 = arith.truncf %683 : vector<8x16xf32> to vector<8x16xbf16>
    %cst_174 = arith.constant dense<0.000000e+00> : vector<8x16xf32>
    %685 = tpu.matmul %684, %671, %cst_174 {dimension_numbers = #tpu.dot_dimension_numbers<[1], [0], [0], [1], [0, 0, 1, 1], [], []>} : vector<8x16xbf16>, vector<16x16xbf16>, vector<8x16xf32> -> vector<8x16xf32>
    %686 = tpu.concatenate %668, %685 in 1 : vector<8x16xf32>, vector<8x16xf32> -> vector<8x32xf32>
    %687 = arith.truncf %686 : vector<8x32xf32> to vector<8x32xbf16>
    %cst_175 = arith.constant dense<0.000000e+00> : vector<8x32xf32>
    %688 = tpu.matmul %687, %10, %cst_175 {dimension_numbers = #tpu.dot_dimension_numbers<[1], [0], [0], [1], [0, 0, 1, 1], [], []>} : vector<8x32xbf16>, vector<32x32xbf16>, vector<8x32xf32> -> vector<8x32xf32>
    %689 = arith.addf %688, %31 : vector<8x32xf32>
    %690 = arith.addf %649, %689 : vector<8x32xf32>
    %cst_176 = arith.constant dense<0.000000e+00> : vector<8xf32>
    %691 = vector.multi_reduction <add>, %690, %cst_176 [1] : vector<8x32xf32> to vector<8xf32>
    %692 = vector.shape_cast %691 : vector<8xf32> to vector<8x1xf32>
    %cst_177 = arith.constant 3.200000e+01 : f32
    %693 = vector.broadcast %cst_177 : f32 to vector<8x1xf32>
    %694 = arith.divf %692, %693 : vector<8x1xf32>
    %695 = vector.broadcast %694 : vector<8x1xf32> to vector<8x32xf32>
    %696 = arith.subf %690, %695 : vector<8x32xf32>
    %697 = vector.broadcast %694 : vector<8x1xf32> to vector<8x32xf32>
    %698 = arith.subf %690, %697 : vector<8x32xf32>
    %699 = arith.mulf %696, %698 : vector<8x32xf32>
    %cst_178 = arith.constant dense<0.000000e+00> : vector<8xf32>
    %700 = vector.multi_reduction <add>, %699, %cst_178 [1] : vector<8x32xf32> to vector<8xf32>
    %701 = vector.shape_cast %700 : vector<8xf32> to vector<8x1xf32>
    %cst_179 = arith.constant 3.200000e+01 : f32
    %702 = vector.broadcast %cst_179 : f32 to vector<8x1xf32>
    %703 = arith.divf %701, %702 : vector<8x1xf32>
    %704 = vector.broadcast %694 : vector<8x1xf32> to vector<8x32xf32>
    %705 = arith.subf %690, %704 : vector<8x32xf32>
    %cst_180 = arith.constant 9.99999974E-6 : f32
    %706 = vector.broadcast %cst_180 : f32 to vector<8x1xf32>
    %707 = arith.addf %703, %706 : vector<8x1xf32>
    %708 = math.rsqrt %707 : vector<8x1xf32>
    %709 = vector.broadcast %708 : vector<8x1xf32> to vector<8x32xf32>
    %710 = arith.mulf %705, %709 : vector<8x32xf32>
    %711 = arith.mulf %710, %37 : vector<8x32xf32>
    %712 = arith.addf %711, %39 : vector<8x32xf32>
    %713 = tpu.concatenate %712, %543 in 1 : vector<8x32xf32>, vector<8x32xf32> -> vector<8x64xf32>
    %714 = arith.truncf %713 : vector<8x64xf32> to vector<8x64xbf16>
    %cst_181 = arith.constant dense<0.000000e+00> : vector<8x128xf32>
    %715 = tpu.matmul %714, %6, %cst_181 {dimension_numbers = #tpu.dot_dimension_numbers<[1], [0], [0], [1], [0, 0, 1, 1], [], []>} : vector<8x64xbf16>, vector<64x128xbf16>, vector<8x128xf32> -> vector<8x128xf32>
    %716 = arith.addf %715, %33 : vector<8x128xf32>
    %717 = vector.extract_strided_slice %716 {offsets = [0, 0], sizes = [8, 96], strides = [1, 1]} : vector<8x128xf32> to vector<8x96xf32>
    %718 = arith.negf %717 : vector<8x96xf32>
    %719 = math.exp %718 : vector<8x96xf32>
    %cst_182 = arith.constant 1.000000e+00 : f32
    %720 = vector.broadcast %cst_182 : f32 to vector<8x96xf32>
    %721 = arith.addf %720, %719 : vector<8x96xf32>
    %722 = arith.divf %720, %721 : vector<8x96xf32>
    %723 = vector.extract_strided_slice %716 {offsets = [0, 96], sizes = [8, 32], strides = [1, 1]} : vector<8x128xf32> to vector<8x32xf32>
    %724 = math.tanh %723 : vector<8x32xf32>
    %725 = vector.extract_strided_slice %722 {offsets = [0, 0], sizes = [8, 32], strides = [1, 1]} : vector<8x96xf32> to vector<8x32xf32>
    %726 = vector.extract_strided_slice %722 {offsets = [0, 32], sizes = [8, 32], strides = [1, 1]} : vector<8x96xf32> to vector<8x32xf32>
    %727 = vector.extract_strided_slice %722 {offsets = [0, 64], sizes = [8, 32], strides = [1, 1]} : vector<8x96xf32> to vector<8x32xf32>
    %728 = arith.mulf %726, %546 : vector<8x32xf32>
    %729 = arith.mulf %725, %724 : vector<8x32xf32>
    %730 = arith.addf %728, %729 : vector<8x32xf32>
    %731 = math.tanh %730 : vector<8x32xf32>
    %732 = arith.mulf %727, %731 : vector<8x32xf32>
    %733 = arith.mulf %41, %732 : vector<8x32xf32>
    %734 = arith.mulf %43, %543 : vector<8x32xf32>
    %735 = arith.addf %733, %734 : vector<8x32xf32>
    %736 = arith.mulf %41, %730 : vector<8x32xf32>
    %737 = arith.mulf %43, %546 : vector<8x32xf32>
    %738 = arith.addf %736, %737 : vector<8x32xf32>
    %739 = arith.truncf %735 : vector<8x32xf32> to vector<8x32xbf16>
    %cst_183 = arith.constant dense<0.000000e+00> : vector<8x2xf32>
    %740 = tpu.matmul %739, %12, %cst_183 {dimension_numbers = #tpu.dot_dimension_numbers<[1], [0], [0], [1], [0, 0, 1, 1], [], []>} : vector<8x32xbf16>, vector<32x2xbf16>, vector<8x2xf32> -> vector<8x2xf32>
    %741 = arith.addf %740, %35 : vector<8x2xf32>
    %742 = vector.extract_strided_slice %636 {offsets = [0, 2], sizes = [8, 1], strides = [1, 1]} : vector<8x8xf32> to vector<8x1xf32>
    %743 = vector.extract_strided_slice %636 {offsets = [0, 3], sizes = [8, 1], strides = [1, 1]} : vector<8x8xf32> to vector<8x1xf32>
    %744 = vector.extract_strided_slice %741 {offsets = [0, 0], sizes = [8, 1], strides = [1, 1]} : vector<8x2xf32> to vector<8x1xf32>
    %cst_184 = arith.constant -4.000000e+00 : f32
    %cst_185 = arith.constant 4.000000e+00 : f32
    %745 = vector.broadcast %cst_184 : f32 to vector<8x1xf32>
    %746 = arith.maximumf %745, %744 : vector<8x1xf32>
    %747 = vector.broadcast %cst_185 : f32 to vector<8x1xf32>
    %748 = arith.minimumf %747, %746 : vector<8x1xf32>
    %749 = vector.extract_strided_slice %741 {offsets = [0, 1], sizes = [8, 1], strides = [1, 1]} : vector<8x2xf32> to vector<8x1xf32>
    %cst_186 = arith.constant -1.000000e+00 : f32
    %cst_187 = arith.constant 1.000000e+00 : f32
    %750 = vector.broadcast %cst_186 : f32 to vector<8x1xf32>
    %751 = arith.maximumf %750, %749 : vector<8x1xf32>
    %752 = vector.broadcast %cst_187 : f32 to vector<8x1xf32>
    %753 = arith.minimumf %752, %751 : vector<8x1xf32>
    %cst_188 = arith.constant 6.28318548 : f32
    %754 = vector.broadcast %cst_188 : f32 to vector<8x1xf32>
    %755 = arith.divf %742, %754 : vector<8x1xf32>
    %cst_189 = arith.constant 5.000000e-01 : f32
    %756 = vector.broadcast %cst_189 : f32 to vector<8x1xf32>
    %757 = arith.addf %755, %756 : vector<8x1xf32>
    %758 = math.floor %757 : vector<8x1xf32>
    %cst_190 = arith.constant 6.28318548 : f32
    %759 = vector.broadcast %cst_190 : f32 to vector<8x1xf32>
    %760 = arith.mulf %759, %758 : vector<8x1xf32>
    %761 = arith.subf %742, %760 : vector<8x1xf32>
    %762 = arith.mulf %761, %761 : vector<8x1xf32>
    %cst_191 = arith.constant -2.50521079E-8 : f32
    %763 = vector.broadcast %cst_191 : f32 to vector<8x1xf32>
    %764 = arith.mulf %762, %763 : vector<8x1xf32>
    %cst_192 = arith.constant 2.75573188E-6 : f32
    %765 = vector.broadcast %cst_192 : f32 to vector<8x1xf32>
    %766 = arith.addf %765, %764 : vector<8x1xf32>
    %767 = arith.mulf %762, %766 : vector<8x1xf32>
    %cst_193 = arith.constant -1.98412701E-4 : f32
    %768 = vector.broadcast %cst_193 : f32 to vector<8x1xf32>
    %769 = arith.addf %768, %767 : vector<8x1xf32>
    %770 = arith.mulf %762, %769 : vector<8x1xf32>
    %cst_194 = arith.constant 0.00833333377 : f32
    %771 = vector.broadcast %cst_194 : f32 to vector<8x1xf32>
    %772 = arith.addf %771, %770 : vector<8x1xf32>
    %773 = arith.mulf %762, %772 : vector<8x1xf32>
    %cst_195 = arith.constant -0.166666672 : f32
    %774 = vector.broadcast %cst_195 : f32 to vector<8x1xf32>
    %775 = arith.addf %774, %773 : vector<8x1xf32>
    %776 = arith.mulf %762, %775 : vector<8x1xf32>
    %cst_196 = arith.constant 1.000000e+00 : f32
    %777 = vector.broadcast %cst_196 : f32 to vector<8x1xf32>
    %778 = arith.addf %777, %776 : vector<8x1xf32>
    %779 = arith.mulf %761, %778 : vector<8x1xf32>
    %cst_197 = arith.constant 2.08767559E-9 : f32
    %780 = vector.broadcast %cst_197 : f32 to vector<8x1xf32>
    %781 = arith.mulf %762, %780 : vector<8x1xf32>
    %cst_198 = arith.constant -2.755732E-7 : f32
    %782 = vector.broadcast %cst_198 : f32 to vector<8x1xf32>
    %783 = arith.addf %782, %781 : vector<8x1xf32>
    %784 = arith.mulf %762, %783 : vector<8x1xf32>
    %cst_199 = arith.constant 2.48015876E-5 : f32
    %785 = vector.broadcast %cst_199 : f32 to vector<8x1xf32>
    %786 = arith.addf %785, %784 : vector<8x1xf32>
    %787 = arith.mulf %762, %786 : vector<8x1xf32>
    %cst_200 = arith.constant -0.00138888892 : f32
    %788 = vector.broadcast %cst_200 : f32 to vector<8x1xf32>
    %789 = arith.addf %788, %787 : vector<8x1xf32>
    %790 = arith.mulf %762, %789 : vector<8x1xf32>
    %cst_201 = arith.constant 0.0416666679 : f32
    %791 = vector.broadcast %cst_201 : f32 to vector<8x1xf32>
    %792 = arith.addf %791, %790 : vector<8x1xf32>
    %793 = arith.mulf %762, %792 : vector<8x1xf32>
    %cst_202 = arith.constant -5.000000e-01 : f32
    %794 = vector.broadcast %cst_202 : f32 to vector<8x1xf32>
    %795 = arith.addf %794, %793 : vector<8x1xf32>
    %796 = arith.mulf %762, %795 : vector<8x1xf32>
    %cst_203 = arith.constant 1.000000e+00 : f32
    %797 = vector.broadcast %cst_203 : f32 to vector<8x1xf32>
    %798 = arith.addf %797, %796 : vector<8x1xf32>
    %799 = arith.mulf %743, %798 : vector<8x1xf32>
    %cst_204 = arith.constant 1.000000e-01 : f32
    %800 = vector.broadcast %cst_204 : f32 to vector<8x1xf32>
    %801 = arith.mulf %799, %800 : vector<8x1xf32>
    %cst_205 = arith.constant 0.000000e+00 : f32
    %802 = vector.shape_cast %801 : vector<8x1xf32> to vector<8x1xf32>
    %803 = vector.broadcast %802 : vector<8x1xf32> to vector<8x8xf32>
    %804 = vector.broadcast %cst_205 : f32 to vector<8x8xf32>
    %805 = arith.select %52, %803, %804 : vector<8x8xi1>, vector<8x8xf32>
    %806 = arith.mulf %743, %779 : vector<8x1xf32>
    %cst_206 = arith.constant 1.000000e-01 : f32
    %807 = vector.broadcast %cst_206 : f32 to vector<8x1xf32>
    %808 = arith.mulf %806, %807 : vector<8x1xf32>
    %cst_207 = arith.constant 0.000000e+00 : f32
    %809 = vector.shape_cast %808 : vector<8x1xf32> to vector<8x1xf32>
    %810 = vector.broadcast %809 : vector<8x1xf32> to vector<8x8xf32>
    %811 = vector.broadcast %cst_207 : f32 to vector<8x8xf32>
    %812 = arith.select %54, %810, %811 : vector<8x8xi1>, vector<8x8xf32>
    %813 = arith.addf %805, %812 : vector<8x8xf32>
    %cst_208 = arith.constant 1.000000e-01 : f32
    %814 = vector.broadcast %cst_208 : f32 to vector<8x1xf32>
    %815 = arith.mulf %753, %814 : vector<8x1xf32>
    %cst_209 = arith.constant 0.000000e+00 : f32
    %816 = vector.shape_cast %815 : vector<8x1xf32> to vector<8x1xf32>
    %817 = vector.broadcast %816 : vector<8x1xf32> to vector<8x8xf32>
    %818 = vector.broadcast %cst_209 : f32 to vector<8x8xf32>
    %819 = arith.select %56, %817, %818 : vector<8x8xi1>, vector<8x8xf32>
    %820 = arith.addf %813, %819 : vector<8x8xf32>
    %cst_210 = arith.constant 1.000000e-01 : f32
    %821 = vector.broadcast %cst_210 : f32 to vector<8x1xf32>
    %822 = arith.mulf %748, %821 : vector<8x1xf32>
    %cst_211 = arith.constant 0.000000e+00 : f32
    %823 = vector.shape_cast %822 : vector<8x1xf32> to vector<8x1xf32>
    %824 = vector.broadcast %823 : vector<8x1xf32> to vector<8x8xf32>
    %825 = vector.broadcast %cst_211 : f32 to vector<8x8xf32>
    %826 = arith.select %58, %824, %825 : vector<8x8xi1>, vector<8x8xf32>
    %827 = arith.addf %820, %826 : vector<8x8xf32>
    %828 = arith.addf %636, %827 : vector<8x8xf32>
    %cst_212 = arith.constant dense<0.000000e+00> : vector<8x32xf32>
    %829 = tpu.matmul %828, %14, %cst_212 {dimension_numbers = #tpu.dot_dimension_numbers<[1], [0], [0], [1], [0, 0, 1, 1], [], []>} : vector<8x8xf32>, vector<8x32xf32>, vector<8x32xf32> -> vector<8x32xf32>
    %830 = arith.addf %829, %25 : vector<8x32xf32>
    %cst_213 = arith.constant 0.000000e+00 : f32
    %831 = vector.broadcast %cst_213 : f32 to vector<8x32xf32>
    %832 = arith.maximumf %830, %831 : vector<8x32xf32>
    %833 = arith.truncf %832 : vector<8x32xf32> to vector<8x32xbf16>
    %cst_214 = arith.constant dense<0.000000e+00> : vector<8x16xf32>
    %834 = tpu.matmul %833, %11, %cst_214 {dimension_numbers = #tpu.dot_dimension_numbers<[1], [0], [0], [1], [0, 0, 1, 1], [], []>} : vector<8x32xbf16>, vector<32x16xbf16>, vector<8x16xf32> -> vector<8x16xf32>
    %835 = arith.addf %834, %27 : vector<8x16xf32>
    %cst_215 = arith.constant 0.000000e+00 : f32
    %836 = vector.broadcast %cst_215 : f32 to vector<8x16xf32>
    %837 = arith.maximumf %835, %836 : vector<8x16xf32>
    %838 = arith.truncf %837 : vector<8x16xf32> to vector<8x16xbf16>
    %cst_216 = arith.constant dense<0.000000e+00> : vector<8x64xf32>
    %839 = tpu.matmul %838, %7, %cst_216 {dimension_numbers = #tpu.dot_dimension_numbers<[1], [0], [0], [1], [0, 0, 1, 1], [], []>} : vector<8x16xbf16>, vector<16x64xbf16>, vector<8x64xf32> -> vector<8x64xf32>
    %840 = arith.addf %839, %29 : vector<8x64xf32>
    %841 = vector.extract_strided_slice %840 {offsets = [0, 0], sizes = [8, 32], strides = [1, 1]} : vector<8x64xf32> to vector<8x32xf32>
    %842 = vector.extract_strided_slice %840 {offsets = [0, 32], sizes = [8, 32], strides = [1, 1]} : vector<8x64xf32> to vector<8x32xf32>
    %843 = arith.truncf %842 : vector<8x32xf32> to vector<8x32xbf16>
    %844 = vector.extract_strided_slice %843 {offsets = [0, 0], sizes = [8, 16], strides = [1, 1]} : vector<8x32xbf16> to vector<8x16xbf16>
    %845 = vector.extract_strided_slice %49 {offsets = [0, 0], sizes = [16, 16], strides = [1, 1]} : vector<16x64xbf16> to vector<16x16xbf16>
    %846 = vector.extract_strided_slice %49 {offsets = [0, 32], sizes = [16, 16], strides = [1, 1]} : vector<16x64xbf16> to vector<16x16xbf16>
    %cst_217 = arith.constant dense<0.000000e+00> : vector<8x16xf32>
    %847 = tpu.matmul %844, %845, %cst_217 {dimension_numbers = #tpu.dot_dimension_numbers<[1], [1], [0], [0], [0, 0, 1, 0], [], []>} : vector<8x16xbf16>, vector<16x16xbf16>, vector<8x16xf32> -> vector<8x16xf32>
    %848 = arith.addf %847, %3 : vector<8x16xf32>
    %cst_218 = arith.constant dense<0xFF800000> : vector<8xf32>
    %849 = vector.multi_reduction <maximumf>, %848, %cst_218 [1] : vector<8x16xf32> to vector<8xf32>
    %850 = vector.shape_cast %849 : vector<8xf32> to vector<8x1xf32>
    %851 = vector.broadcast %850 : vector<8x1xf32> to vector<8x16xf32>
    %852 = arith.subf %848, %851 : vector<8x16xf32>
    %853 = math.exp %852 : vector<8x16xf32>
    %cst_219 = arith.constant dense<0.000000e+00> : vector<8xf32>
    %854 = vector.multi_reduction <add>, %853, %cst_219 [1] : vector<8x16xf32> to vector<8xf32>
    %855 = vector.shape_cast %854 : vector<8xf32> to vector<8x1xf32>
    %856 = tpu.reciprocal %855 {approx = true} : vector<8x1xf32> -> vector<8x1xf32>
    %857 = vector.broadcast %856 : vector<8x1xf32> to vector<8x16xf32>
    %858 = arith.mulf %853, %857 : vector<8x16xf32>
    %859 = arith.truncf %858 : vector<8x16xf32> to vector<8x16xbf16>
    %cst_220 = arith.constant dense<0.000000e+00> : vector<8x16xf32>
    %860 = tpu.matmul %859, %846, %cst_220 {dimension_numbers = #tpu.dot_dimension_numbers<[1], [0], [0], [1], [0, 0, 1, 1], [], []>} : vector<8x16xbf16>, vector<16x16xbf16>, vector<8x16xf32> -> vector<8x16xf32>
    %861 = vector.extract_strided_slice %843 {offsets = [0, 16], sizes = [8, 16], strides = [1, 1]} : vector<8x32xbf16> to vector<8x16xbf16>
    %862 = vector.extract_strided_slice %49 {offsets = [0, 16], sizes = [16, 16], strides = [1, 1]} : vector<16x64xbf16> to vector<16x16xbf16>
    %863 = vector.extract_strided_slice %49 {offsets = [0, 48], sizes = [16, 16], strides = [1, 1]} : vector<16x64xbf16> to vector<16x16xbf16>
    %cst_221 = arith.constant dense<0.000000e+00> : vector<8x16xf32>
    %864 = tpu.matmul %861, %862, %cst_221 {dimension_numbers = #tpu.dot_dimension_numbers<[1], [1], [0], [0], [0, 0, 1, 0], [], []>} : vector<8x16xbf16>, vector<16x16xbf16>, vector<8x16xf32> -> vector<8x16xf32>
    %865 = arith.addf %864, %3 : vector<8x16xf32>
    %cst_222 = arith.constant dense<0xFF800000> : vector<8xf32>
    %866 = vector.multi_reduction <maximumf>, %865, %cst_222 [1] : vector<8x16xf32> to vector<8xf32>
    %867 = vector.shape_cast %866 : vector<8xf32> to vector<8x1xf32>
    %868 = vector.broadcast %867 : vector<8x1xf32> to vector<8x16xf32>
    %869 = arith.subf %865, %868 : vector<8x16xf32>
    %870 = math.exp %869 : vector<8x16xf32>
    %cst_223 = arith.constant dense<0.000000e+00> : vector<8xf32>
    %871 = vector.multi_reduction <add>, %870, %cst_223 [1] : vector<8x16xf32> to vector<8xf32>
    %872 = vector.shape_cast %871 : vector<8xf32> to vector<8x1xf32>
    %873 = tpu.reciprocal %872 {approx = true} : vector<8x1xf32> -> vector<8x1xf32>
    %874 = vector.broadcast %873 : vector<8x1xf32> to vector<8x16xf32>
    %875 = arith.mulf %870, %874 : vector<8x16xf32>
    %876 = arith.truncf %875 : vector<8x16xf32> to vector<8x16xbf16>
    %cst_224 = arith.constant dense<0.000000e+00> : vector<8x16xf32>
    %877 = tpu.matmul %876, %863, %cst_224 {dimension_numbers = #tpu.dot_dimension_numbers<[1], [0], [0], [1], [0, 0, 1, 1], [], []>} : vector<8x16xbf16>, vector<16x16xbf16>, vector<8x16xf32> -> vector<8x16xf32>
    %878 = tpu.concatenate %860, %877 in 1 : vector<8x16xf32>, vector<8x16xf32> -> vector<8x32xf32>
    %879 = arith.truncf %878 : vector<8x32xf32> to vector<8x32xbf16>
    %cst_225 = arith.constant dense<0.000000e+00> : vector<8x32xf32>
    %880 = tpu.matmul %879, %10, %cst_225 {dimension_numbers = #tpu.dot_dimension_numbers<[1], [0], [0], [1], [0, 0, 1, 1], [], []>} : vector<8x32xbf16>, vector<32x32xbf16>, vector<8x32xf32> -> vector<8x32xf32>
    %881 = arith.addf %880, %31 : vector<8x32xf32>
    %882 = arith.addf %841, %881 : vector<8x32xf32>
    %cst_226 = arith.constant dense<0.000000e+00> : vector<8xf32>
    %883 = vector.multi_reduction <add>, %882, %cst_226 [1] : vector<8x32xf32> to vector<8xf32>
    %884 = vector.shape_cast %883 : vector<8xf32> to vector<8x1xf32>
    %cst_227 = arith.constant 3.200000e+01 : f32
    %885 = vector.broadcast %cst_227 : f32 to vector<8x1xf32>
    %886 = arith.divf %884, %885 : vector<8x1xf32>
    %887 = vector.broadcast %886 : vector<8x1xf32> to vector<8x32xf32>
    %888 = arith.subf %882, %887 : vector<8x32xf32>
    %889 = vector.broadcast %886 : vector<8x1xf32> to vector<8x32xf32>
    %890 = arith.subf %882, %889 : vector<8x32xf32>
    %891 = arith.mulf %888, %890 : vector<8x32xf32>
    %cst_228 = arith.constant dense<0.000000e+00> : vector<8xf32>
    %892 = vector.multi_reduction <add>, %891, %cst_228 [1] : vector<8x32xf32> to vector<8xf32>
    %893 = vector.shape_cast %892 : vector<8xf32> to vector<8x1xf32>
    %cst_229 = arith.constant 3.200000e+01 : f32
    %894 = vector.broadcast %cst_229 : f32 to vector<8x1xf32>
    %895 = arith.divf %893, %894 : vector<8x1xf32>
    %896 = vector.broadcast %886 : vector<8x1xf32> to vector<8x32xf32>
    %897 = arith.subf %882, %896 : vector<8x32xf32>
    %cst_230 = arith.constant 9.99999974E-6 : f32
    %898 = vector.broadcast %cst_230 : f32 to vector<8x1xf32>
    %899 = arith.addf %895, %898 : vector<8x1xf32>
    %900 = math.rsqrt %899 : vector<8x1xf32>
    %901 = vector.broadcast %900 : vector<8x1xf32> to vector<8x32xf32>
    %902 = arith.mulf %897, %901 : vector<8x32xf32>
    %903 = arith.mulf %902, %37 : vector<8x32xf32>
    %904 = arith.addf %903, %39 : vector<8x32xf32>
    %905 = tpu.concatenate %904, %735 in 1 : vector<8x32xf32>, vector<8x32xf32> -> vector<8x64xf32>
    %906 = arith.truncf %905 : vector<8x64xf32> to vector<8x64xbf16>
    %cst_231 = arith.constant dense<0.000000e+00> : vector<8x128xf32>
    %907 = tpu.matmul %906, %6, %cst_231 {dimension_numbers = #tpu.dot_dimension_numbers<[1], [0], [0], [1], [0, 0, 1, 1], [], []>} : vector<8x64xbf16>, vector<64x128xbf16>, vector<8x128xf32> -> vector<8x128xf32>
    %908 = arith.addf %907, %33 : vector<8x128xf32>
    %909 = vector.extract_strided_slice %908 {offsets = [0, 0], sizes = [8, 96], strides = [1, 1]} : vector<8x128xf32> to vector<8x96xf32>
    %910 = arith.negf %909 : vector<8x96xf32>
    %911 = math.exp %910 : vector<8x96xf32>
    %cst_232 = arith.constant 1.000000e+00 : f32
    %912 = vector.broadcast %cst_232 : f32 to vector<8x96xf32>
    %913 = arith.addf %912, %911 : vector<8x96xf32>
    %914 = arith.divf %912, %913 : vector<8x96xf32>
    %915 = vector.extract_strided_slice %908 {offsets = [0, 96], sizes = [8, 32], strides = [1, 1]} : vector<8x128xf32> to vector<8x32xf32>
    %916 = math.tanh %915 : vector<8x32xf32>
    %917 = vector.extract_strided_slice %914 {offsets = [0, 0], sizes = [8, 32], strides = [1, 1]} : vector<8x96xf32> to vector<8x32xf32>
    %918 = vector.extract_strided_slice %914 {offsets = [0, 32], sizes = [8, 32], strides = [1, 1]} : vector<8x96xf32> to vector<8x32xf32>
    %919 = vector.extract_strided_slice %914 {offsets = [0, 64], sizes = [8, 32], strides = [1, 1]} : vector<8x96xf32> to vector<8x32xf32>
    %920 = arith.mulf %918, %738 : vector<8x32xf32>
    %921 = arith.mulf %917, %916 : vector<8x32xf32>
    %922 = arith.addf %920, %921 : vector<8x32xf32>
    %923 = math.tanh %922 : vector<8x32xf32>
    %924 = arith.mulf %919, %923 : vector<8x32xf32>
    %925 = arith.mulf %41, %924 : vector<8x32xf32>
    %926 = arith.mulf %43, %735 : vector<8x32xf32>
    %927 = arith.addf %925, %926 : vector<8x32xf32>
    %928 = arith.mulf %41, %922 : vector<8x32xf32>
    %929 = arith.mulf %43, %738 : vector<8x32xf32>
    %930 = arith.addf %928, %929 : vector<8x32xf32>
    %931 = arith.truncf %927 : vector<8x32xf32> to vector<8x32xbf16>
    %cst_233 = arith.constant dense<0.000000e+00> : vector<8x2xf32>
    %932 = tpu.matmul %931, %12, %cst_233 {dimension_numbers = #tpu.dot_dimension_numbers<[1], [0], [0], [1], [0, 0, 1, 1], [], []>} : vector<8x32xbf16>, vector<32x2xbf16>, vector<8x2xf32> -> vector<8x2xf32>
    %933 = arith.addf %932, %35 : vector<8x2xf32>
    %934 = vector.extract_strided_slice %828 {offsets = [0, 2], sizes = [8, 1], strides = [1, 1]} : vector<8x8xf32> to vector<8x1xf32>
    %935 = vector.extract_strided_slice %828 {offsets = [0, 3], sizes = [8, 1], strides = [1, 1]} : vector<8x8xf32> to vector<8x1xf32>
    %936 = vector.extract_strided_slice %933 {offsets = [0, 0], sizes = [8, 1], strides = [1, 1]} : vector<8x2xf32> to vector<8x1xf32>
    %cst_234 = arith.constant -4.000000e+00 : f32
    %cst_235 = arith.constant 4.000000e+00 : f32
    %937 = vector.broadcast %cst_234 : f32 to vector<8x1xf32>
    %938 = arith.maximumf %937, %936 : vector<8x1xf32>
    %939 = vector.broadcast %cst_235 : f32 to vector<8x1xf32>
    %940 = arith.minimumf %939, %938 : vector<8x1xf32>
    %941 = vector.extract_strided_slice %933 {offsets = [0, 1], sizes = [8, 1], strides = [1, 1]} : vector<8x2xf32> to vector<8x1xf32>
    %cst_236 = arith.constant -1.000000e+00 : f32
    %cst_237 = arith.constant 1.000000e+00 : f32
    %942 = vector.broadcast %cst_236 : f32 to vector<8x1xf32>
    %943 = arith.maximumf %942, %941 : vector<8x1xf32>
    %944 = vector.broadcast %cst_237 : f32 to vector<8x1xf32>
    %945 = arith.minimumf %944, %943 : vector<8x1xf32>
    %cst_238 = arith.constant 6.28318548 : f32
    %946 = vector.broadcast %cst_238 : f32 to vector<8x1xf32>
    %947 = arith.divf %934, %946 : vector<8x1xf32>
    %cst_239 = arith.constant 5.000000e-01 : f32
    %948 = vector.broadcast %cst_239 : f32 to vector<8x1xf32>
    %949 = arith.addf %947, %948 : vector<8x1xf32>
    %950 = math.floor %949 : vector<8x1xf32>
    %cst_240 = arith.constant 6.28318548 : f32
    %951 = vector.broadcast %cst_240 : f32 to vector<8x1xf32>
    %952 = arith.mulf %951, %950 : vector<8x1xf32>
    %953 = arith.subf %934, %952 : vector<8x1xf32>
    %954 = arith.mulf %953, %953 : vector<8x1xf32>
    %cst_241 = arith.constant -2.50521079E-8 : f32
    %955 = vector.broadcast %cst_241 : f32 to vector<8x1xf32>
    %956 = arith.mulf %954, %955 : vector<8x1xf32>
    %cst_242 = arith.constant 2.75573188E-6 : f32
    %957 = vector.broadcast %cst_242 : f32 to vector<8x1xf32>
    %958 = arith.addf %957, %956 : vector<8x1xf32>
    %959 = arith.mulf %954, %958 : vector<8x1xf32>
    %cst_243 = arith.constant -1.98412701E-4 : f32
    %960 = vector.broadcast %cst_243 : f32 to vector<8x1xf32>
    %961 = arith.addf %960, %959 : vector<8x1xf32>
    %962 = arith.mulf %954, %961 : vector<8x1xf32>
    %cst_244 = arith.constant 0.00833333377 : f32
    %963 = vector.broadcast %cst_244 : f32 to vector<8x1xf32>
    %964 = arith.addf %963, %962 : vector<8x1xf32>
    %965 = arith.mulf %954, %964 : vector<8x1xf32>
    %cst_245 = arith.constant -0.166666672 : f32
    %966 = vector.broadcast %cst_245 : f32 to vector<8x1xf32>
    %967 = arith.addf %966, %965 : vector<8x1xf32>
    %968 = arith.mulf %954, %967 : vector<8x1xf32>
    %cst_246 = arith.constant 1.000000e+00 : f32
    %969 = vector.broadcast %cst_246 : f32 to vector<8x1xf32>
    %970 = arith.addf %969, %968 : vector<8x1xf32>
    %971 = arith.mulf %953, %970 : vector<8x1xf32>
    %cst_247 = arith.constant 2.08767559E-9 : f32
    %972 = vector.broadcast %cst_247 : f32 to vector<8x1xf32>
    %973 = arith.mulf %954, %972 : vector<8x1xf32>
    %cst_248 = arith.constant -2.755732E-7 : f32
    %974 = vector.broadcast %cst_248 : f32 to vector<8x1xf32>
    %975 = arith.addf %974, %973 : vector<8x1xf32>
    %976 = arith.mulf %954, %975 : vector<8x1xf32>
    %cst_249 = arith.constant 2.48015876E-5 : f32
    %977 = vector.broadcast %cst_249 : f32 to vector<8x1xf32>
    %978 = arith.addf %977, %976 : vector<8x1xf32>
    %979 = arith.mulf %954, %978 : vector<8x1xf32>
    %cst_250 = arith.constant -0.00138888892 : f32
    %980 = vector.broadcast %cst_250 : f32 to vector<8x1xf32>
    %981 = arith.addf %980, %979 : vector<8x1xf32>
    %982 = arith.mulf %954, %981 : vector<8x1xf32>
    %cst_251 = arith.constant 0.0416666679 : f32
    %983 = vector.broadcast %cst_251 : f32 to vector<8x1xf32>
    %984 = arith.addf %983, %982 : vector<8x1xf32>
    %985 = arith.mulf %954, %984 : vector<8x1xf32>
    %cst_252 = arith.constant -5.000000e-01 : f32
    %986 = vector.broadcast %cst_252 : f32 to vector<8x1xf32>
    %987 = arith.addf %986, %985 : vector<8x1xf32>
    %988 = arith.mulf %954, %987 : vector<8x1xf32>
    %cst_253 = arith.constant 1.000000e+00 : f32
    %989 = vector.broadcast %cst_253 : f32 to vector<8x1xf32>
    %990 = arith.addf %989, %988 : vector<8x1xf32>
    %991 = arith.mulf %935, %990 : vector<8x1xf32>
    %cst_254 = arith.constant 1.000000e-01 : f32
    %992 = vector.broadcast %cst_254 : f32 to vector<8x1xf32>
    %993 = arith.mulf %991, %992 : vector<8x1xf32>
    %cst_255 = arith.constant 0.000000e+00 : f32
    %994 = vector.shape_cast %993 : vector<8x1xf32> to vector<8x1xf32>
    %995 = vector.broadcast %994 : vector<8x1xf32> to vector<8x8xf32>
    %996 = vector.broadcast %cst_255 : f32 to vector<8x8xf32>
    %997 = arith.select %52, %995, %996 : vector<8x8xi1>, vector<8x8xf32>
    %998 = arith.mulf %935, %971 : vector<8x1xf32>
    %cst_256 = arith.constant 1.000000e-01 : f32
    %999 = vector.broadcast %cst_256 : f32 to vector<8x1xf32>
    %1000 = arith.mulf %998, %999 : vector<8x1xf32>
    %cst_257 = arith.constant 0.000000e+00 : f32
    %1001 = vector.shape_cast %1000 : vector<8x1xf32> to vector<8x1xf32>
    %1002 = vector.broadcast %1001 : vector<8x1xf32> to vector<8x8xf32>
    %1003 = vector.broadcast %cst_257 : f32 to vector<8x8xf32>
    %1004 = arith.select %54, %1002, %1003 : vector<8x8xi1>, vector<8x8xf32>
    %1005 = arith.addf %997, %1004 : vector<8x8xf32>
    %cst_258 = arith.constant 1.000000e-01 : f32
    %1006 = vector.broadcast %cst_258 : f32 to vector<8x1xf32>
    %1007 = arith.mulf %945, %1006 : vector<8x1xf32>
    %cst_259 = arith.constant 0.000000e+00 : f32
    %1008 = vector.shape_cast %1007 : vector<8x1xf32> to vector<8x1xf32>
    %1009 = vector.broadcast %1008 : vector<8x1xf32> to vector<8x8xf32>
    %1010 = vector.broadcast %cst_259 : f32 to vector<8x8xf32>
    %1011 = arith.select %56, %1009, %1010 : vector<8x8xi1>, vector<8x8xf32>
    %1012 = arith.addf %1005, %1011 : vector<8x8xf32>
    %cst_260 = arith.constant 1.000000e-01 : f32
    %1013 = vector.broadcast %cst_260 : f32 to vector<8x1xf32>
    %1014 = arith.mulf %940, %1013 : vector<8x1xf32>
    %cst_261 = arith.constant 0.000000e+00 : f32
    %1015 = vector.shape_cast %1014 : vector<8x1xf32> to vector<8x1xf32>
    %1016 = vector.broadcast %1015 : vector<8x1xf32> to vector<8x8xf32>
    %1017 = vector.broadcast %cst_261 : f32 to vector<8x8xf32>
    %1018 = arith.select %58, %1016, %1017 : vector<8x8xi1>, vector<8x8xf32>
    %1019 = arith.addf %1012, %1018 : vector<8x8xf32>
    %1020 = arith.addf %828, %1019 : vector<8x8xf32>
    %cst_262 = arith.constant dense<0.000000e+00> : vector<8x32xf32>
    %1021 = tpu.matmul %1020, %14, %cst_262 {dimension_numbers = #tpu.dot_dimension_numbers<[1], [0], [0], [1], [0, 0, 1, 1], [], []>} : vector<8x8xf32>, vector<8x32xf32>, vector<8x32xf32> -> vector<8x32xf32>
    %1022 = arith.addf %1021, %25 : vector<8x32xf32>
    %cst_263 = arith.constant 0.000000e+00 : f32
    %1023 = vector.broadcast %cst_263 : f32 to vector<8x32xf32>
    %1024 = arith.maximumf %1022, %1023 : vector<8x32xf32>
    %1025 = arith.truncf %1024 : vector<8x32xf32> to vector<8x32xbf16>
    %cst_264 = arith.constant dense<0.000000e+00> : vector<8x16xf32>
    %1026 = tpu.matmul %1025, %11, %cst_264 {dimension_numbers = #tpu.dot_dimension_numbers<[1], [0], [0], [1], [0, 0, 1, 1], [], []>} : vector<8x32xbf16>, vector<32x16xbf16>, vector<8x16xf32> -> vector<8x16xf32>
    %1027 = arith.addf %1026, %27 : vector<8x16xf32>
    %cst_265 = arith.constant 0.000000e+00 : f32
    %1028 = vector.broadcast %cst_265 : f32 to vector<8x16xf32>
    %1029 = arith.maximumf %1027, %1028 : vector<8x16xf32>
    %1030 = arith.truncf %1029 : vector<8x16xf32> to vector<8x16xbf16>
    %cst_266 = arith.constant dense<0.000000e+00> : vector<8x64xf32>
    %1031 = tpu.matmul %1030, %7, %cst_266 {dimension_numbers = #tpu.dot_dimension_numbers<[1], [0], [0], [1], [0, 0, 1, 1], [], []>} : vector<8x16xbf16>, vector<16x64xbf16>, vector<8x64xf32> -> vector<8x64xf32>
    %1032 = arith.addf %1031, %29 : vector<8x64xf32>
    %1033 = vector.extract_strided_slice %1032 {offsets = [0, 0], sizes = [8, 32], strides = [1, 1]} : vector<8x64xf32> to vector<8x32xf32>
    %1034 = vector.extract_strided_slice %1032 {offsets = [0, 32], sizes = [8, 32], strides = [1, 1]} : vector<8x64xf32> to vector<8x32xf32>
    %1035 = arith.truncf %1034 : vector<8x32xf32> to vector<8x32xbf16>
    %1036 = vector.extract_strided_slice %1035 {offsets = [0, 0], sizes = [8, 16], strides = [1, 1]} : vector<8x32xbf16> to vector<8x16xbf16>
    %1037 = vector.extract_strided_slice %49 {offsets = [0, 0], sizes = [16, 16], strides = [1, 1]} : vector<16x64xbf16> to vector<16x16xbf16>
    %1038 = vector.extract_strided_slice %49 {offsets = [0, 32], sizes = [16, 16], strides = [1, 1]} : vector<16x64xbf16> to vector<16x16xbf16>
    %cst_267 = arith.constant dense<0.000000e+00> : vector<8x16xf32>
    %1039 = tpu.matmul %1036, %1037, %cst_267 {dimension_numbers = #tpu.dot_dimension_numbers<[1], [1], [0], [0], [0, 0, 1, 0], [], []>} : vector<8x16xbf16>, vector<16x16xbf16>, vector<8x16xf32> -> vector<8x16xf32>
    %1040 = arith.addf %1039, %3 : vector<8x16xf32>
    %cst_268 = arith.constant dense<0xFF800000> : vector<8xf32>
    %1041 = vector.multi_reduction <maximumf>, %1040, %cst_268 [1] : vector<8x16xf32> to vector<8xf32>
    %1042 = vector.shape_cast %1041 : vector<8xf32> to vector<8x1xf32>
    %1043 = vector.broadcast %1042 : vector<8x1xf32> to vector<8x16xf32>
    %1044 = arith.subf %1040, %1043 : vector<8x16xf32>
    %1045 = math.exp %1044 : vector<8x16xf32>
    %cst_269 = arith.constant dense<0.000000e+00> : vector<8xf32>
    %1046 = vector.multi_reduction <add>, %1045, %cst_269 [1] : vector<8x16xf32> to vector<8xf32>
    %1047 = vector.shape_cast %1046 : vector<8xf32> to vector<8x1xf32>
    %1048 = tpu.reciprocal %1047 {approx = true} : vector<8x1xf32> -> vector<8x1xf32>
    %1049 = vector.broadcast %1048 : vector<8x1xf32> to vector<8x16xf32>
    %1050 = arith.mulf %1045, %1049 : vector<8x16xf32>
    %1051 = arith.truncf %1050 : vector<8x16xf32> to vector<8x16xbf16>
    %cst_270 = arith.constant dense<0.000000e+00> : vector<8x16xf32>
    %1052 = tpu.matmul %1051, %1038, %cst_270 {dimension_numbers = #tpu.dot_dimension_numbers<[1], [0], [0], [1], [0, 0, 1, 1], [], []>} : vector<8x16xbf16>, vector<16x16xbf16>, vector<8x16xf32> -> vector<8x16xf32>
    %1053 = vector.extract_strided_slice %1035 {offsets = [0, 16], sizes = [8, 16], strides = [1, 1]} : vector<8x32xbf16> to vector<8x16xbf16>
    %1054 = vector.extract_strided_slice %49 {offsets = [0, 16], sizes = [16, 16], strides = [1, 1]} : vector<16x64xbf16> to vector<16x16xbf16>
    %1055 = vector.extract_strided_slice %49 {offsets = [0, 48], sizes = [16, 16], strides = [1, 1]} : vector<16x64xbf16> to vector<16x16xbf16>
    %cst_271 = arith.constant dense<0.000000e+00> : vector<8x16xf32>
    %1056 = tpu.matmul %1053, %1054, %cst_271 {dimension_numbers = #tpu.dot_dimension_numbers<[1], [1], [0], [0], [0, 0, 1, 0], [], []>} : vector<8x16xbf16>, vector<16x16xbf16>, vector<8x16xf32> -> vector<8x16xf32>
    %1057 = arith.addf %1056, %3 : vector<8x16xf32>
    %cst_272 = arith.constant dense<0xFF800000> : vector<8xf32>
    %1058 = vector.multi_reduction <maximumf>, %1057, %cst_272 [1] : vector<8x16xf32> to vector<8xf32>
    %1059 = vector.shape_cast %1058 : vector<8xf32> to vector<8x1xf32>
    %1060 = vector.broadcast %1059 : vector<8x1xf32> to vector<8x16xf32>
    %1061 = arith.subf %1057, %1060 : vector<8x16xf32>
    %1062 = math.exp %1061 : vector<8x16xf32>
    %cst_273 = arith.constant dense<0.000000e+00> : vector<8xf32>
    %1063 = vector.multi_reduction <add>, %1062, %cst_273 [1] : vector<8x16xf32> to vector<8xf32>
    %1064 = vector.shape_cast %1063 : vector<8xf32> to vector<8x1xf32>
    %1065 = tpu.reciprocal %1064 {approx = true} : vector<8x1xf32> -> vector<8x1xf32>
    %1066 = vector.broadcast %1065 : vector<8x1xf32> to vector<8x16xf32>
    %1067 = arith.mulf %1062, %1066 : vector<8x16xf32>
    %1068 = arith.truncf %1067 : vector<8x16xf32> to vector<8x16xbf16>
    %cst_274 = arith.constant dense<0.000000e+00> : vector<8x16xf32>
    %1069 = tpu.matmul %1068, %1055, %cst_274 {dimension_numbers = #tpu.dot_dimension_numbers<[1], [0], [0], [1], [0, 0, 1, 1], [], []>} : vector<8x16xbf16>, vector<16x16xbf16>, vector<8x16xf32> -> vector<8x16xf32>
    %1070 = tpu.concatenate %1052, %1069 in 1 : vector<8x16xf32>, vector<8x16xf32> -> vector<8x32xf32>
    %1071 = arith.truncf %1070 : vector<8x32xf32> to vector<8x32xbf16>
    %cst_275 = arith.constant dense<0.000000e+00> : vector<8x32xf32>
    %1072 = tpu.matmul %1071, %10, %cst_275 {dimension_numbers = #tpu.dot_dimension_numbers<[1], [0], [0], [1], [0, 0, 1, 1], [], []>} : vector<8x32xbf16>, vector<32x32xbf16>, vector<8x32xf32> -> vector<8x32xf32>
    %1073 = arith.addf %1072, %31 : vector<8x32xf32>
    %1074 = arith.addf %1033, %1073 : vector<8x32xf32>
    %cst_276 = arith.constant dense<0.000000e+00> : vector<8xf32>
    %1075 = vector.multi_reduction <add>, %1074, %cst_276 [1] : vector<8x32xf32> to vector<8xf32>
    %1076 = vector.shape_cast %1075 : vector<8xf32> to vector<8x1xf32>
    %cst_277 = arith.constant 3.200000e+01 : f32
    %1077 = vector.broadcast %cst_277 : f32 to vector<8x1xf32>
    %1078 = arith.divf %1076, %1077 : vector<8x1xf32>
    %1079 = vector.broadcast %1078 : vector<8x1xf32> to vector<8x32xf32>
    %1080 = arith.subf %1074, %1079 : vector<8x32xf32>
    %1081 = vector.broadcast %1078 : vector<8x1xf32> to vector<8x32xf32>
    %1082 = arith.subf %1074, %1081 : vector<8x32xf32>
    %1083 = arith.mulf %1080, %1082 : vector<8x32xf32>
    %cst_278 = arith.constant dense<0.000000e+00> : vector<8xf32>
    %1084 = vector.multi_reduction <add>, %1083, %cst_278 [1] : vector<8x32xf32> to vector<8xf32>
    %1085 = vector.shape_cast %1084 : vector<8xf32> to vector<8x1xf32>
    %cst_279 = arith.constant 3.200000e+01 : f32
    %1086 = vector.broadcast %cst_279 : f32 to vector<8x1xf32>
    %1087 = arith.divf %1085, %1086 : vector<8x1xf32>
    %1088 = vector.broadcast %1078 : vector<8x1xf32> to vector<8x32xf32>
    %1089 = arith.subf %1074, %1088 : vector<8x32xf32>
    %cst_280 = arith.constant 9.99999974E-6 : f32
    %1090 = vector.broadcast %cst_280 : f32 to vector<8x1xf32>
    %1091 = arith.addf %1087, %1090 : vector<8x1xf32>
    %1092 = math.rsqrt %1091 : vector<8x1xf32>
    %1093 = vector.broadcast %1092 : vector<8x1xf32> to vector<8x32xf32>
    %1094 = arith.mulf %1089, %1093 : vector<8x32xf32>
    %1095 = arith.mulf %1094, %37 : vector<8x32xf32>
    %1096 = arith.addf %1095, %39 : vector<8x32xf32>
    %1097 = tpu.concatenate %1096, %927 in 1 : vector<8x32xf32>, vector<8x32xf32> -> vector<8x64xf32>
    %1098 = arith.truncf %1097 : vector<8x64xf32> to vector<8x64xbf16>
    %cst_281 = arith.constant dense<0.000000e+00> : vector<8x128xf32>
    %1099 = tpu.matmul %1098, %6, %cst_281 {dimension_numbers = #tpu.dot_dimension_numbers<[1], [0], [0], [1], [0, 0, 1, 1], [], []>} : vector<8x64xbf16>, vector<64x128xbf16>, vector<8x128xf32> -> vector<8x128xf32>
    %1100 = arith.addf %1099, %33 : vector<8x128xf32>
    %1101 = vector.extract_strided_slice %1100 {offsets = [0, 0], sizes = [8, 96], strides = [1, 1]} : vector<8x128xf32> to vector<8x96xf32>
    %1102 = arith.negf %1101 : vector<8x96xf32>
    %1103 = math.exp %1102 : vector<8x96xf32>
    %cst_282 = arith.constant 1.000000e+00 : f32
    %1104 = vector.broadcast %cst_282 : f32 to vector<8x96xf32>
    %1105 = arith.addf %1104, %1103 : vector<8x96xf32>
    %1106 = arith.divf %1104, %1105 : vector<8x96xf32>
    %1107 = vector.extract_strided_slice %1100 {offsets = [0, 96], sizes = [8, 32], strides = [1, 1]} : vector<8x128xf32> to vector<8x32xf32>
    %1108 = math.tanh %1107 : vector<8x32xf32>
    %1109 = vector.extract_strided_slice %1106 {offsets = [0, 0], sizes = [8, 32], strides = [1, 1]} : vector<8x96xf32> to vector<8x32xf32>
    %1110 = vector.extract_strided_slice %1106 {offsets = [0, 32], sizes = [8, 32], strides = [1, 1]} : vector<8x96xf32> to vector<8x32xf32>
    %1111 = vector.extract_strided_slice %1106 {offsets = [0, 64], sizes = [8, 32], strides = [1, 1]} : vector<8x96xf32> to vector<8x32xf32>
    %1112 = arith.mulf %1110, %930 : vector<8x32xf32>
    %1113 = arith.mulf %1109, %1108 : vector<8x32xf32>
    %1114 = arith.addf %1112, %1113 : vector<8x32xf32>
    %1115 = math.tanh %1114 : vector<8x32xf32>
    %1116 = arith.mulf %1111, %1115 : vector<8x32xf32>
    %1117 = arith.mulf %41, %1116 : vector<8x32xf32>
    %1118 = arith.mulf %43, %927 : vector<8x32xf32>
    %1119 = arith.addf %1117, %1118 : vector<8x32xf32>
    %1120 = arith.truncf %1119 : vector<8x32xf32> to vector<8x32xbf16>
    %cst_283 = arith.constant dense<0.000000e+00> : vector<8x2xf32>
    %1121 = tpu.matmul %1120, %12, %cst_283 {dimension_numbers = #tpu.dot_dimension_numbers<[1], [0], [0], [1], [0, 0, 1, 1], [], []>} : vector<8x32xbf16>, vector<32x2xbf16>, vector<8x2xf32> -> vector<8x2xf32>
    %1122 = arith.addf %1121, %35 : vector<8x2xf32>
    %1123 = vector.extract_strided_slice %1020 {offsets = [0, 2], sizes = [8, 1], strides = [1, 1]} : vector<8x8xf32> to vector<8x1xf32>
    %1124 = vector.extract_strided_slice %1020 {offsets = [0, 3], sizes = [8, 1], strides = [1, 1]} : vector<8x8xf32> to vector<8x1xf32>
    %1125 = vector.extract_strided_slice %1122 {offsets = [0, 0], sizes = [8, 1], strides = [1, 1]} : vector<8x2xf32> to vector<8x1xf32>
    %cst_284 = arith.constant -4.000000e+00 : f32
    %cst_285 = arith.constant 4.000000e+00 : f32
    %1126 = vector.broadcast %cst_284 : f32 to vector<8x1xf32>
    %1127 = arith.maximumf %1126, %1125 : vector<8x1xf32>
    %1128 = vector.broadcast %cst_285 : f32 to vector<8x1xf32>
    %1129 = arith.minimumf %1128, %1127 : vector<8x1xf32>
    %1130 = vector.extract_strided_slice %1122 {offsets = [0, 1], sizes = [8, 1], strides = [1, 1]} : vector<8x2xf32> to vector<8x1xf32>
    %cst_286 = arith.constant -1.000000e+00 : f32
    %cst_287 = arith.constant 1.000000e+00 : f32
    %1131 = vector.broadcast %cst_286 : f32 to vector<8x1xf32>
    %1132 = arith.maximumf %1131, %1130 : vector<8x1xf32>
    %1133 = vector.broadcast %cst_287 : f32 to vector<8x1xf32>
    %1134 = arith.minimumf %1133, %1132 : vector<8x1xf32>
    %cst_288 = arith.constant 6.28318548 : f32
    %1135 = vector.broadcast %cst_288 : f32 to vector<8x1xf32>
    %1136 = arith.divf %1123, %1135 : vector<8x1xf32>
    %cst_289 = arith.constant 5.000000e-01 : f32
    %1137 = vector.broadcast %cst_289 : f32 to vector<8x1xf32>
    %1138 = arith.addf %1136, %1137 : vector<8x1xf32>
    %1139 = math.floor %1138 : vector<8x1xf32>
    %cst_290 = arith.constant 6.28318548 : f32
    %1140 = vector.broadcast %cst_290 : f32 to vector<8x1xf32>
    %1141 = arith.mulf %1140, %1139 : vector<8x1xf32>
    %1142 = arith.subf %1123, %1141 : vector<8x1xf32>
    %1143 = arith.mulf %1142, %1142 : vector<8x1xf32>
    %cst_291 = arith.constant -2.50521079E-8 : f32
    %1144 = vector.broadcast %cst_291 : f32 to vector<8x1xf32>
    %1145 = arith.mulf %1143, %1144 : vector<8x1xf32>
    %cst_292 = arith.constant 2.75573188E-6 : f32
    %1146 = vector.broadcast %cst_292 : f32 to vector<8x1xf32>
    %1147 = arith.addf %1146, %1145 : vector<8x1xf32>
    %1148 = arith.mulf %1143, %1147 : vector<8x1xf32>
    %cst_293 = arith.constant -1.98412701E-4 : f32
    %1149 = vector.broadcast %cst_293 : f32 to vector<8x1xf32>
    %1150 = arith.addf %1149, %1148 : vector<8x1xf32>
    %1151 = arith.mulf %1143, %1150 : vector<8x1xf32>
    %cst_294 = arith.constant 0.00833333377 : f32
    %1152 = vector.broadcast %cst_294 : f32 to vector<8x1xf32>
    %1153 = arith.addf %1152, %1151 : vector<8x1xf32>
    %1154 = arith.mulf %1143, %1153 : vector<8x1xf32>
    %cst_295 = arith.constant -0.166666672 : f32
    %1155 = vector.broadcast %cst_295 : f32 to vector<8x1xf32>
    %1156 = arith.addf %1155, %1154 : vector<8x1xf32>
    %1157 = arith.mulf %1143, %1156 : vector<8x1xf32>
    %cst_296 = arith.constant 1.000000e+00 : f32
    %1158 = vector.broadcast %cst_296 : f32 to vector<8x1xf32>
    %1159 = arith.addf %1158, %1157 : vector<8x1xf32>
    %1160 = arith.mulf %1142, %1159 : vector<8x1xf32>
    %cst_297 = arith.constant 2.08767559E-9 : f32
    %1161 = vector.broadcast %cst_297 : f32 to vector<8x1xf32>
    %1162 = arith.mulf %1143, %1161 : vector<8x1xf32>
    %cst_298 = arith.constant -2.755732E-7 : f32
    %1163 = vector.broadcast %cst_298 : f32 to vector<8x1xf32>
    %1164 = arith.addf %1163, %1162 : vector<8x1xf32>
    %1165 = arith.mulf %1143, %1164 : vector<8x1xf32>
    %cst_299 = arith.constant 2.48015876E-5 : f32
    %1166 = vector.broadcast %cst_299 : f32 to vector<8x1xf32>
    %1167 = arith.addf %1166, %1165 : vector<8x1xf32>
    %1168 = arith.mulf %1143, %1167 : vector<8x1xf32>
    %cst_300 = arith.constant -0.00138888892 : f32
    %1169 = vector.broadcast %cst_300 : f32 to vector<8x1xf32>
    %1170 = arith.addf %1169, %1168 : vector<8x1xf32>
    %1171 = arith.mulf %1143, %1170 : vector<8x1xf32>
    %cst_301 = arith.constant 0.0416666679 : f32
    %1172 = vector.broadcast %cst_301 : f32 to vector<8x1xf32>
    %1173 = arith.addf %1172, %1171 : vector<8x1xf32>
    %1174 = arith.mulf %1143, %1173 : vector<8x1xf32>
    %cst_302 = arith.constant -5.000000e-01 : f32
    %1175 = vector.broadcast %cst_302 : f32 to vector<8x1xf32>
    %1176 = arith.addf %1175, %1174 : vector<8x1xf32>
    %1177 = arith.mulf %1143, %1176 : vector<8x1xf32>
    %cst_303 = arith.constant 1.000000e+00 : f32
    %1178 = vector.broadcast %cst_303 : f32 to vector<8x1xf32>
    %1179 = arith.addf %1178, %1177 : vector<8x1xf32>
    %1180 = arith.mulf %1124, %1179 : vector<8x1xf32>
    %cst_304 = arith.constant 1.000000e-01 : f32
    %1181 = vector.broadcast %cst_304 : f32 to vector<8x1xf32>
    %1182 = arith.mulf %1180, %1181 : vector<8x1xf32>
    %cst_305 = arith.constant 0.000000e+00 : f32
    %1183 = vector.shape_cast %1182 : vector<8x1xf32> to vector<8x1xf32>
    %1184 = vector.broadcast %1183 : vector<8x1xf32> to vector<8x8xf32>
    %1185 = vector.broadcast %cst_305 : f32 to vector<8x8xf32>
    %1186 = arith.select %52, %1184, %1185 : vector<8x8xi1>, vector<8x8xf32>
    %1187 = arith.mulf %1124, %1160 : vector<8x1xf32>
    %cst_306 = arith.constant 1.000000e-01 : f32
    %1188 = vector.broadcast %cst_306 : f32 to vector<8x1xf32>
    %1189 = arith.mulf %1187, %1188 : vector<8x1xf32>
    %cst_307 = arith.constant 0.000000e+00 : f32
    %1190 = vector.shape_cast %1189 : vector<8x1xf32> to vector<8x1xf32>
    %1191 = vector.broadcast %1190 : vector<8x1xf32> to vector<8x8xf32>
    %1192 = vector.broadcast %cst_307 : f32 to vector<8x8xf32>
    %1193 = arith.select %54, %1191, %1192 : vector<8x8xi1>, vector<8x8xf32>
    %1194 = arith.addf %1186, %1193 : vector<8x8xf32>
    %cst_308 = arith.constant 1.000000e-01 : f32
    %1195 = vector.broadcast %cst_308 : f32 to vector<8x1xf32>
    %1196 = arith.mulf %1134, %1195 : vector<8x1xf32>
    %cst_309 = arith.constant 0.000000e+00 : f32
    %1197 = vector.shape_cast %1196 : vector<8x1xf32> to vector<8x1xf32>
    %1198 = vector.broadcast %1197 : vector<8x1xf32> to vector<8x8xf32>
    %1199 = vector.broadcast %cst_309 : f32 to vector<8x8xf32>
    %1200 = arith.select %56, %1198, %1199 : vector<8x8xi1>, vector<8x8xf32>
    %1201 = arith.addf %1194, %1200 : vector<8x8xf32>
    %cst_310 = arith.constant 1.000000e-01 : f32
    %1202 = vector.broadcast %cst_310 : f32 to vector<8x1xf32>
    %1203 = arith.mulf %1129, %1202 : vector<8x1xf32>
    %cst_311 = arith.constant 0.000000e+00 : f32
    %1204 = vector.shape_cast %1203 : vector<8x1xf32> to vector<8x1xf32>
    %1205 = vector.broadcast %1204 : vector<8x1xf32> to vector<8x8xf32>
    %1206 = vector.broadcast %cst_311 : f32 to vector<8x8xf32>
    %1207 = arith.select %58, %1205, %1206 : vector<8x8xi1>, vector<8x8xf32>
    %1208 = arith.addf %1201, %1207 : vector<8x8xf32>
    %1209 = arith.addf %1020, %1208 : vector<8x8xf32>
    %1210 = tpu.concatenate %252, %444, %636, %828, %1020, %1209 in 1 : vector<8x8xf32>, vector<8x8xf32>, vector<8x8xf32>, vector<8x8xf32>, vector<8x8xf32>, vector<8x8xf32> -> vector<8x48xf32>
    %c0_312 = arith.constant 0 : index
    %c0_313 = arith.constant 0 : index
    %1211 = vector.load %arg5[%c0_312, %c0_313] : memref<8x48xf32, #tpu.memory_space<vmem>>, vector<8x48xf32>
    tpu.vector_store %arg5[%c0_312, %c0_313], %1210 {strides = array<i32>} : memref<8x48xf32, #tpu.memory_space<vmem>>, vector<8x48xf32>,
    return
  }
}

</mosaic_0001>

<bundles_post_ra>
// kernel: decoder_forward.1
= control target key start
LH: loop header
LB: loop body
LE: loop exit
PB: predicated region body
PF: predicated region fallthrough
CT: control target
= control target key end

     0   :  { %10 = vsyncpa [#allocation3], 0  ;;  %s3631_s0 = inlined_call_operand.vmem [shape: f32[8,25], index: 0, kind: input, shape index: {}]   ;;  %s3632_s1 = inlined_call_operand.vmem [shape: f32[16,32], index: 1, kind: input, shape index: {}]   ;;  %s3633_s2 = inlined_call_operand.vmem [shape: bf16[80,128], index: 2, kind: input, shape index: {}]   ;;  %s3634_s3 = inlined_call_operand.hbm [shape: bf16[32,128], index: 3, kind: input, shape index: {}]   ;;  %s3635_s4 = inlined_call_operand.hbm [shape: f32[12,128], index: 4, kind: input, shape index: {}]   ;;  %s3636_s5 = inlined_call_operand.vmem [shape: f32[8,48], index: 5, kind: output, shape index: {}]  }
   0x1   :  { %s22_s20 = sshll.u32 %s3634_s3, 4  ;;  %s23_s20 = int_to_ptr.hbm [resolvable:$true] %s22_s20 }
   0x2   :  { %11 = vsyncpa [#allocation5], 0  ;;  %s2747_s21 = smov [#allocation2]   ;;  %s35_s25 = sshll.u32 %s3635_s4, 4  ;;  %s36_s25 = int_to_ptr.hbm [resolvable:$true] %s35_s25 }
   0x3   :  { %s24_s22 = sshll.u32 %s2747_s21, 4  ;;  %s2748_s26 = smov 64   ;;  %s25_s22 = int_to_ptr.vmem [resolvable:$true] %s24_s22 }
   0x4   :  { %s2749_s27 = smov 4   ;;  %s2750_s28 = smov [#allocation4]  }
   0x5   :  { %30 = dma.hbm_to_vmem [thread:$0]  %s23_s20, 256, %s25_s22, [#allocation3], %s2748_s26, %s2748_s26, %s2749_s27  }
   0x6   :  { %s37_s29 = sshll.u32 %s2750_s28, 4  ;;  %s2751_s30 = smov 128   ;;  %s38_s29 = int_to_ptr.vmem [resolvable:$true] %s37_s29 }
   0x7   :  { %s2752_s3 = smov 8  }
   0x8   :  { %43 = dma.hbm_to_vmem [thread:$0]  %s36_s25, 256, %s38_s29, [#allocation5], %s2751_s30, %s2751_s30, %s2752_s3  }
   0x9   :  { %2743 = dma.done.wait [#allocation3], 256  }
   0xa   :  { %2744 = vsyncadd [#allocation3], 4294967040 }
   0xb   :  { %2745 = dma.done.wait [#allocation5], 256  }
   0xc   :  { %2746 = vsyncadd [#allocation5], 4294967040  ;;  %vm125_vm0 = vcmask 64512   ;;  %v2808_v0 = vld [vmem:[#allocation4] sm:$0xff]  ;;  %v2813_v1 = vld [vmem:[%s3631_s0] sm:$0xff]  ;;  %s2753_s7 = smov 32  }
   0xd   :  { %v2815_v2 = vld [vmem:[#allocation2 + $0x8] sm:$0xff]  ;;  %143 = vmatpush.msra.mxu1 %v2808_v0  ;;  %v2823_v3 = vld [vmem:[#allocation2] sm:$0xff]  ;;  %v2828_v4 = vld [vmem:[#allocation4 + $0x8] sm:$0xf]  ;;  %vm99_vm1 = vcmask 261120   ;;  %vm184_vm2 = vcmask 130048  }
   0xe   :  { %2429 = vmatmul.msk.f32.vlgmr.msra.gmra.mxu1 %vm125_vm0, %v2813_v1  ;;  %152 = vrot.lane.b32.xlu0 %v2815_v2, %s2753_s7  ;;  %v2831_v5 = vperm.slane %v2828_v4, 2  ;;  %v54_v6 = vld [vmem:[%s3632_s1] sm:$0xff]  ;;  %v55_v7 = vld [vmem:[%s3632_s1 + $0x8] sm:$0xff]  ;;  %v2857_v16 = vperm.slane %v2828_v4, 1  ;;  %s2754_s12 = smov 112   ;;  %s2755_s13 = smov 119  }
   0xf   :  { %109 = vmatpush.bf16.msra.mxu0 %v2815_v2  ;;  %v82_v8 = vpack.c.bf16 %v55_v7, %v54_v6  ;;  %v2853_v15 = vld [vmem:[%s3633_s2 + $0x20] sm:$0xff]  ;;  %s2756_s14 = smov 96   ;;  %s2757_s15 = smov 80   ;;  %vm412_vm7 = vcmask 523264  }
  0x10   :  { %157 = vrot.lane.b32.xlu1 %v2831_v5, %s2748_s26  ;;  %195 = vmatpush.bf16.msra.mxu3 %v2853_v15  ;;  %s2758_s24 = smov 16   ;;  %s2761_s25 = smov 48  }
  0x11   :  { %s2763_s27 = smov 1  }
  0x13   :  { %110 = vmatpush.bf16.msra.mxu0 %v2823_v3 }
  0x16   :  { %150 = vrot.lane.b32.xlu0 %v2823_v3, %s2753_s7  ;;  %2428 = vmatmul.msk.bf16.vlgmr.msra.gmra.mxu0 %vm99_vm1, %v82_v8 }
  0x18   :  { %96 = vrot.lane.b32.xlu1 %v2857_v16, %s2748_s26 }
  0x20   :  { %212 = vrot.lane.b32.xlu1 %v2813_v1, %s2755_s13 }
  0x80   :  { %v2842_v9 = vpop.permute.xlu0 %152 }
  0x81   :  { %169 = vmatpush.bf16.msra.mxu2 %v2842_v9 }
  0x82   :  { %v2861_v17 = vpop.permute.xlu1 %157 }
  0x88   :  { %v2845_v10 = vpop.permute.xlu0 %150 }
  0x89   :  { %170 = vmatpush.bf16.msra.mxu2 %v2845_v10 }
  0x8a   :  { %v97_v25 = vpop.permute.xlu1 %96 }
  0x8b   :  { %v145_v11 = vpop.f32.mrf.mxu1 }
  0x8c   :  { %v146_v12 = vadd.f32 %v145_v11, %v2831_v5 }
  0x8e   :  { %v148_v13 = vmax.f32 %v146_v12, 0.0  ;;  %v2906_v12 = vld [vmem:[%s3633_s2 + $0x18] sm:$0xff] }
  0x90   :  { %v149_v14 = vpack.c.bf16 %v148_v13, %v148_v13 }
  0x92   :  { %2430 = vmatmul.msk.bf16.vlgmr.msra.gmra.mxu2 %vm99_vm1, %v149_v14  ;;  %v2883_v44 = vpop.permute.xlu1 %212 }
  0x93   :  { %v112_v23 = vpop.f32.mrf.mxu0 }
  0x94   :  { %v113_v26 = vadd.f32 %v112_v23, %v97_v25  ;;  %v2927_v23 = vld [vmem:[%s3633_s2] sm:$0xff] }
  0x96   :  { %v117_v28 = vpack.c.bf16 %v113_v26, %v113_v26 }
  0x98   :  { %v209_v30 = vunpack.c.l.b16 %v117_v28 }
  0x9b   :  { %v114_v24 = vpop.f32.mrf.mxu0 }
  0x9c   :  { %v115_v27 = vadd.f32 %v114_v24, %v97_v25 }
  0x9e   :  { %v118_v29 = vpack.c.bf16 %v115_v27, %v115_v27 }
  0xa0   :  { %v210_v31 = vunpack.c.l.b16 %v118_v29 }
  0xa2   :  { %v211_v32 = vpack.c.b16 %v210_v31, %v209_v30 }
  0xa4   :  { %267 = vrot.lane.b32.xlu2 %v211_v32, %s2754_s12  ;;  %v2866_v33 = vsel %vm184_vm2, %v211_v32, 0 }
  0xa5   :  { %228 = vmatpush.bf16.xpose.msrb.mxu1 %v2866_v33 }
  0xfe   :  { %v268_v40 = vpop.permute.xlu2 %267 }
  0xff   :  { %v2878_v41 = vsel %vm184_vm2, %v268_v40, 0 }
 0x100   :  { %282 = vmatpush.bf16.xpose.msrb.mxu0 %v2878_v41 }
 0x115   :  { %v172_v18 = vpop.f32.mrf.mxu2 }
 0x116   :  { %v173_v19 = vadd.f32 %v172_v18, %v2861_v17  ;;  %v2915_v18 = vld [vmem:[%s3633_s2 + $0x10] sm:$0xff] }
 0x118   :  { %v176_v20 = vmax.f32 %v173_v19, 0.0  ;;  %v2921_v19 = vld [vmem:[%s3633_s2 + $0x8] sm:$0xff] }
 0x11a   :  { %v177_v21 = vpack.c.bf16 %v176_v20, %v176_v20 }
 0x11c   :  { %2435 = vmatmul.msk.bf16.vlgmr.msra.gmra.mxu3 %vm184_vm2, %v177_v21 }
 0x11d   :  { %v174_v22 = vpop.f32.mrf.mxu2 }
 0x19f   :  { %v197_v34 = vpop.f32.mrf.mxu3 }
 0x1a0   :  { %v2871_v35 = vadd.f32 %v197_v34, %v2857_v16 }
 0x1a2   :  { %v201_v36 = vpack.c.bf16 %v2871_v35, %v2871_v35 }
 0x1a4   :  { %v203_v37 = vunpack.c.l.b16 %v201_v36 }
 0x1a6   :  { %v204_v38 = vpack.c.b16 %v203_v37, %v203_v37 }
 0x1a7   :  { %v199_v39 = vpop.f32.mrf.mxu3 }
 0x1a8   :  { %205 = vrot.lane.b32.xlu0 %v204_v38, %s2756_s14  ;;  %265 = vrot.lane.b32.xlu2 %v204_v38, %s2757_s15 }
 0x202   :  { %v266_v42 = vpop.permute.xlu2 %265 }
 0x203   :  { %2438 = vmatmul.msk.bf16.vlgmr.msrb.gmra.mxu0 %vm184_vm2, %v266_v42  ;;  %v2759_v42 = vmov 32.0  }
 0x21a   :  { %v206_v43 = vpop.permute.xlu0 %205 }
 0x21b   :  { %2436 = vmatmul.msk.bf16.vlgmr.msrb.gmra.mxu1 %vm184_vm2, %v206_v43  ;;  %v2954_v43 = vperm.slane %v2828_v4, 3 }
 0x280   :  { %v284_v45 = vpop.f32.mrf.mxu0 }
 0x281   :  { %v285_v46 = vadd.f32 %v284_v45, %v2883_v44 }
 0x283   :  { %v288_v47 = vsel %vm184_vm2, %v285_v46, -inf }
 0x284   :  { %289 = vmax.xlane.f32.xlu2 %v288_v47 }
 0x288   :  { %v286_v48 = vpop.f32.mrf.mxu0 }
 0x298   :  { %v230_v49 = vpop.f32.mrf.mxu1 }
 0x299   :  { %v231_v50 = vadd.f32 %v230_v49, %v2883_v44 }
 0x29b   :  { %v234_v51 = vsel %vm184_vm2, %v231_v50, -inf }
 0x29c   :  { %235 = vmax.xlane.f32.xlu0 %v234_v51  ;;  %300 = vrot.lane.b32.xlu2 %v211_v32, %s2757_s15 }
 0x2a0   :  { %v232_v52 = vpop.f32.mrf.mxu1 }
 0x2f7   :  { %v290_v53 = vpop.xlane.xlu2 %289 }
 0x2f8   :  { %v291_v54 = vsub.f32 %v285_v46, %v290_v53 }
 0x2fa   :  { %v292_v55 = vmul.f32 1.442695, %v291_v54 }
 0x2fc   :  { %2577 = vpow2.f32 %v292_v55 }
 0x2ff   :  { %v2890_v56 = vpop.permute.xlu2 %300 }
 0x300   :  { %313 = vmatpush.bf16.msrb.mxu2 %v2890_v56 }
 0x302   :  { %v2578_v57 = vpop.eup %2577 }
 0x303   :  { %v294_v58 = vsel %vm184_vm2, %v2578_v57, 0.0 }
 0x304   :  { %600 = vmatpush.msra.mxu2 %v2808_v0  ;;  %295 = vadd.xlane.f32.xlu1 %v294_v58 }
 0x30f   :  { %v236_v59 = vpop.xlane.xlu0 %235 }
 0x310   :  { %v237_v60 = vsub.f32 %v231_v50, %v236_v59 }
 0x312   :  { %v238_v61 = vmul.f32 1.442695, %v237_v60 }
 0x314   :  { %2579 = vpow2.f32 %v238_v61 }
 0x31a   :  { %v2580_v62 = vpop.eup %2579 }
 0x31b   :  { %v240_v63 = vsel %vm184_vm2, %v2580_v62, 0.0 }
 0x31c   :  { %241 = vadd.xlane.f32.xlu0 %v240_v63 }
 0x31d   :  { %246 = vrot.lane.b32.xlu1 %v211_v32, %s2756_s14 }
 0x325   :  { %331 = vrot.lane.b32.xlu1 %v2831_v5, %s2756_s14 }
 0x32d   :  { %382 = vrot.lane.b32.xlu1 %v2954_v43, %s2756_s14 }
 0x330   :  { %327 = vrot.lane.b32.xlu0 %v2815_v2, %s2748_s26 }
 0x377   :  { %v296_v6 = vpop.xlane.xlu1 %295 }
 0x378   :  { %2581 = vrcp.f32 %v296_v6 }
 0x37e   :  { %v2582_v7 = vpop.eup %2581 }
 0x37f   :  { %v298_v8 = vmul.f32 %v2582_v7, %v2578_v57 }
 0x381   :  { %v299_v11 = vpack.c.bf16 %v298_v8, %v298_v8 }
 0x383   :  { %2439 = vmatmul.msk.bf16.vlgmr.msrb.gmra.mxu2 %vm184_vm2, %v299_v11 }
 0x384   :  { %635 = vmatpush.bf16.msrb.mxu2 %v2853_v15 }
 0x38f   :  { %v242_v13 = vpop.xlane.xlu0 %241  ;;  %v2908_v14 = vpop.permute.xlu1 %246 }
 0x390   :  { %2583 = vrcp.f32 %v242_v13  ;;  %259 = vmatpush.bf16.msrb.mxu3 %v2908_v14 }
 0x391   :  { %2585 = vrcp.f32 %v2759_v42 }
 0x394   :  { %420 = vmatpush.bf16.msra.mxu3 %v2906_v12 }
 0x396   :  { %v2584_v20 = vpop.eup %2583 }
 0x397   :  { %v244_v21 = vmul.f32 %v2584_v20, %v2580_v62  ;;  %v2946_v34 = vpop.permute.xlu1 %331  ;;  %v2586_v45 = vpop.eup %2585 }
 0x398   :  { %421 = vmatpush.bf16.msra.mxu3 %v2915_v18  ;;  %v355_v46 = vmul.f32 32.0, %v2586_v45  ;;  %vm359_vm3 = vweird.f32 %v2586_v45 }
 0x399   :  { %v245_v22 = vpack.c.bf16 %v244_v21, %v244_v21 }
 0x39a   :  { %v356_v47 = vsub.f32 1.0, %v355_v46 }
 0x39b   :  { %2437 = vmatmul.msk.bf16.vlgmr.msrb.gmra.mxu3 %vm184_vm2, %v245_v22 }
 0x39c   :  { %422 = vmatpush.bf16.msra.mxu3 %v2921_v19  ;;  %v357_v48 = vmul.f32 %v2586_v45, %v356_v47 }
 0x39f   :  { %v2972_v11 = vpop.permute.xlu1 %382 }
 0x3a0   :  { %423 = vmatpush.bf16.msra.mxu3 %v2927_v23 }
 0x3a2   :  { %v2932_v25 = vpop.permute.xlu0 %327 }
 0x3a3   :  { %343 = vmatpush.bf16.msra.mxu1 %v2932_v25 }
 0x3a4   :  { %657 = vmatpush.bf16.xpose.msrb.mxu3 %v2866_v33 }
 0x406   :  { %v315_v24 = vpop.f32.mrf.mxu2 }
 0x407   :  { %320 = vrot.lane.b32.xlu2 %v315_v24, %s2758_s24  ;;  %v2981_v24 = vperm.slane %v2828_v4, 0 }
 0x40e   :  { %v317_v26 = vpop.f32.mrf.mxu2 }
 0x40f   :  { %325 = vrot.lane.b32.xlu2 %v2823_v3, %s2748_s26 }
 0x41e   :  { %v261_v27 = vpop.f32.mrf.mxu3 }
 0x426   :  { %v263_v28 = vpop.f32.mrf.mxu3 }
 0x461   :  { %v321_v29 = vpop.permute.xlu2 %320 }
 0x462   :  { %v323_v30 = vsel %vm184_vm2, %v261_v27, %v321_v29 }
 0x463   :  { %v324_v32 = vpack.c.bf16 %v323_v30, %v323_v30 }
 0x469   :  { %v2939_v31 = vpop.permute.xlu2 %325 }
 0x46a   :  { %344 = vmatpush.bf16.msra.mxu1 %v2939_v31 }
 0x46d   :  { %2440 = vmatmul.msk.bf16.vlgmr.msra.gmra.mxu1 %vm99_vm1, %v324_v32 }
 0x46e   :  { %616 = vmatpush.bf16.msrb.mxu1 %v2842_v9 }
 0x472   :  { %617 = vmatpush.bf16.msrb.mxu1 %v2845_v10 }
 0x476   :  { %703 = vmatpush.bf16.xpose.msra.mxu1 %v2878_v41 }
 0x4ea   :  { %v346_v36 = vpop.f32.mrf.mxu1 }
 0x4eb   :  { %v347_v37 = vadd.f32 %v346_v36, %v2946_v34 }
 0x4ed   :  { %v350_v38 = vadd.f32 %v347_v37, %v2871_v35  ;;  %v358_v35 = vadd.f32 %v2586_v45, %v357_v48  ;;  %v2760_v37 = vmov 8  }
 0x4ee   :  { %2556 = vset.pattern.permute.xlu1 %v2760_v37 }
 0x4ef   :  { %v351_v39 = vsel %vm99_vm1, %v350_v38, 0.0  ;;  %v2958_v49 = vsel %vm359_vm3, %v2586_v45, %v358_v35 }
 0x4f0   :  { %352 = vadd.xlane.f32.xlu0 %v351_v39 }
 0x4f2   :  { %v348_v40 = vpop.f32.mrf.mxu1 }
 0x504   :  { %477 = vrot.lane.b32.xlu0 %v2815_v2, %s2758_s24 }
 0x563   :  { %v353_v50 = vpop.xlane.xlu0 %352 }
 0x564   :  { %v361_v51 = vmul.f32 %v2958_v49, %v353_v50 }
 0x566   :  { %v362_v2 = vsub.f32 %v350_v38, %v361_v51 }
 0x568   :  { %v363_v52 = vmul.f32 %v362_v2, %v362_v2 }
 0x56a   :  { %v364_v53 = vsel %vm99_vm1, %v363_v52, 0.0 }
 0x56b   :  { %365 = vadd.xlane.f32.xlu2 %v364_v53 }
 0x576   :  { %v2964_v54 = vpop.permute.xlu0 %477 }
 0x577   :  { %493 = vmatpush.bf16.msra.mxu0 %v2964_v54 }
 0x583   :  { %475 = vrot.lane.b32.xlu2 %v2823_v3, %s2758_s24 }
 0x5de   :  { %v366_v55 = vpop.xlane.xlu2 %365 }
 0x5df   :  { %v367_v57 = vmul.f32 %v366_v55, %v2958_v49 }
 0x5e1   :  { %v368_v58 = vadd.f32 1e-05, %v367_v57 }
 0x5e3   :  { %2587 = vrsqrt.f32 %v368_v58  ;;  %vm375_vm5 = vweird.f32 %v368_v58 }
 0x5e6   :  { %v2968_v59 = vpop.permute.xlu2 %475 }
 0x5e7   :  { %494 = vmatpush.bf16.msra.mxu0 %v2968_v59 }
 0x5e9   :  { %v2588_v60 = vpop.eup %2587 }
 0x5ea   :  { %v370_v61 = vmul.f32 %v2588_v60, %v368_v58  ;;  %vm376_vm4 = vweird.f32 %v2588_v60 }
 0x5eb   :  { %685 = vmatpush.bf16.msrb.mxu0 %v2908_v14  ;;  %vm377_vm6 = vmor %vm375_vm5, %vm376_vm4 }
 0x5ec   :  { %v371_v62 = vmul.f32 %v2588_v60, %v370_v61 }
 0x5ee   :  { %v372_v63 = vmul.f32 0.5, %v371_v62 }
 0x5f0   :  { %v373_v3 = vsub.f32 1.5, %v372_v63 }
 0x5f2   :  { %v374_v6 = vmul.f32 %v2588_v60, %v373_v3 }
 0x5f4   :  { %v378_v7 = vsel %vm377_vm6, %v2588_v60, %v374_v6 }
 0x5f5   :  { %v379_v8 = vmul.f32 %v378_v7, %v362_v2  ;;  %v2762_v7 = vmov 6.2831855  }
 0x5f7   :  { %v380_v13 = vmul.f32 %v379_v8, %v2954_v43 }
 0x5f9   :  { %v385_v20 = vadd.f32 %v2972_v11, %v380_v13 }
 0x5fb   :  { %v386_v21 = vsel %vm99_vm1, %v385_v20, 0.0 }
 0x5fc   :  { %v387_v22 = vpack.c.bf16 %v386_v21, %v386_v21 }
 0x5fe   :  { %2457 = vmatmul.msk.bf16.vlgmr.msra.gmra.mxu3 %vm412_vm7, %v387_v22 }
 0x5ff   :  { %752 = vmatpush.bf16.msra.mxu3 %v2932_v25 }
 0x603   :  { %753 = vmatpush.bf16.msra.mxu3 %v2939_v31 }
 0x681   :  { %v425_v26 = vpop.f32.mrf.mxu3 }
 0x682   :  { %v426_v27 = vadd.f32 %v425_v26, %v2981_v24 }
 0x684   :  { %2589 = vtanh.f32 %v426_v27  ;;  %v2458_v30 = vmul.f32 -1.442695, %v426_v27 }
 0x686   :  { %2591 = vpow2.f32 %v2458_v30 }
 0x689   :  { %v427_v28 = vpop.f32.mrf.mxu3 }
 0x68a   :  { %v2590_v29 = vpop.eup %2589 }
 0x68b   :  { %451 = vrot.lane.b32.xlu1 %v2590_v29, %s2753_s7 }
 0x68c   :  { %v2592_v32 = vpop.eup %2591 }
 0x68d   :  { %v432_v36 = vadd.f32 1.0, %v2592_v32 }
 0x68f   :  { %2593 = vrcp.f32 %v432_v36  ;;  %v444_v45 = vand.u32 2147483648, %v432_v36  ;;  %vm438_vm9 = vweird.f32 %v432_v36  ;;  %v442_v46 = vand.u32 2147483647, %v432_v36 }
 0x691   :  { %v445_v48 = vor.u32 1.1754944e-38, %v444_v45  ;;  %vm443_vm11 = vcmp.eq.f32.partialorder %v442_v46, 8.507059e+37 }
 0x695   :  { %v2594_v38 = vpop.eup %2593 }
 0x696   :  { %v434_v39 = vmul.f32 %v2594_v38, %v432_v36  ;;  %vm439_vm8 = vweird.f32 %v2594_v38 }
 0x697   :  { %vm440_vm10 = vmor %vm438_vm9, %vm439_vm8 }
 0x698   :  { %v435_v40 = vsub.f32 1.0, %v434_v39 }
 0x69a   :  { %v436_v4 = vmul.f32 %v2594_v38, %v435_v40 }
 0x69c   :  { %v437_v42 = vadd.f32 %v2594_v38, %v436_v4 }
 0x69e   :  { %v441_v47 = vsel %vm440_vm10, %v2594_v38, %v437_v42 }
 0x69f   :  { %v446_v50 = vsel %vm443_vm11, %v445_v48, %v441_v47 }
 0x6a0   :  { %v449_v2 = vmul.f32 0.0, %v446_v50 }
 0x6fd   :  { %v452_v35 = vpop.permute.xlu1 %451 }
 0x6fe   :  { %v454_v51 = vmul.f32 %v452_v35, %v446_v50 }
 0x700   :  { %456 = vrot.lane.b32.xlu1 %v454_v51, %s2753_s7 }
 0x708   :  { %78 = vperm.xlu1 %2556, %v2813_v1  }
 0x772   :  { %v457_v52 = vpop.permute.xlu1 %456 }
 0x773   :  { %v2987_v53 = vadd.f32 %v457_v52, %v449_v2 }
 0x775   :  { %2595 = vtanh.f32 %v2987_v53 }
 0x776   :  { %2597 = vrcp.f32 %v2762_v7 }
 0x77a   :  { %v2991_v57 = vpop.permute.xlu1 %78 }
 0x77b   :  { %v2596_v55 = vpop.eup %2595  ;;  %v2994_v58 = vsub.f32 1.0, %v2991_v57 }
 0x77c   :  { %462 = vrot.lane.b32.xlu1 %v2596_v55, %s2753_s7  ;;  %v2598_v8 = vpop.eup %2597 }
 0x77d   :  { %v2997_v62 = vmul.f32 0.0, %v2994_v58  ;;  %v505_v13 = vmul.f32 6.2831855, %v2598_v8  ;;  %vm509_vm12 = vweird.f32 %v2598_v8 }
 0x77f   :  { %v506_v20 = vsub.f32 1.0, %v505_v13 }
 0x781   :  { %v507_v21 = vmul.f32 %v2598_v8, %v506_v20 }
 0x783   :  { %v508_v22 = vadd.f32 %v2598_v8, %v507_v21  ;;  %v2764_v21 = vmov 3  }
 0x784   :  { %2557 = vset.pattern.permute.xlu2 %v2764_v21  ;;  %2558 = vset.pattern.permute.xlu1 %v2764_v21 }
 0x785   :  { %v3007_v26 = vsel %vm509_vm12, %v2598_v8, %v508_v22 }
 0x786   :  { %v511_v27 = vmul.f32 %v3007_v26, %v2813_v1 }
 0x788   :  { %v512_v28 = vadd.f32 0.5, %v511_v27 }
 0x78a   :  { %v513_v29 = vfloor.f32 %v512_v28 }
 0x78c   :  { %v514_v30 = vmul.f32 6.2831855, %v513_v29 }
 0x78e   :  { %v515_v32 = vsub.f32 %v2813_v1, %v514_v30 }
 0x790   :  { %v516_v36 = vmul.f32 %v515_v32, %v515_v32 }
 0x792   :  { %v528_v37 = vmul.f32 2.0876756e-09, %v516_v36  ;;  %v517_v40 = vmul.f32 -2.5052108e-08, %v516_v36 }
 0x794   :  { %v529_v38 = vadd.f32 -2.755732e-07, %v528_v37  ;;  %v518_v42 = vadd.f32 2.7557319e-06, %v517_v40  ;;  %v2765_v37 = vmov 1  }
 0x795   :  { %2559 = vset.pattern.permute.xlu0 %v2765_v37 }
 0x796   :  { %v530_v39 = vmul.f32 %v529_v38, %v516_v36  ;;  %v519_v46 = vmul.f32 %v518_v42, %v516_v36  ;;  %v2766_v38 = vmov 0  }
 0x798   :  { %v531_v4 = vadd.f32 2.4801588e-05, %v530_v39  ;;  %v520_v48 = vadd.f32 -0.0001984127, %v519_v46 }
 0x79a   :  { %v532_v45 = vmul.f32 %v531_v4, %v516_v36 }
 0x79c   :  { %v533_v47 = vadd.f32 -0.0013888889, %v532_v45 }
 0x79e   :  { %v534_v35 = vmul.f32 %v533_v47, %v516_v36 }
 0x7a0   :  { %v535_v51 = vadd.f32 0.041666668, %v534_v35 }
 0x7a2   :  { %v536_v52 = vmul.f32 %v535_v51, %v516_v36 }
 0x7ee   :  { %v463_v60 = vpop.permute.xlu1 %462 }
 0x7ef   :  { %v465_v61 = vmul.f32 %v463_v60, %v446_v50  ;;  %v521_v50 = vmul.f32 %v520_v48, %v516_v36  ;;  %v537_v60 = vadd.f32 -0.5, %v536_v52  ;;  %v119_v48 = vlaneseq }
 0x7f1   :  { %v466_v63 = vmul.f32 %v465_v61, %v2991_v57  ;;  %v522_v2 = vadd.f32 0.008333334, %v521_v50  ;;  %v3031_v50 = vand.u32 127, %v119_v48 }
 0x7f3   :  { %v3001_v3 = vadd.f32 %v2997_v62, %v466_v63  ;;  %v523_v55 = vmul.f32 %v522_v2, %v516_v36  ;;  %v538_v63 = vmul.f32 %v537_v60, %v516_v36  ;;  %vm121_vm13 = vcmp.eq.s32.totalorder %v3031_v50, 0 }
 0x7f4   :  { %vm122_vm14 = vcmp.eq.s32.totalorder %v3031_v50, 1  ;;  %vm123_vm15 = vcmp.eq.s32.totalorder %v3031_v50, 2  ;;  %vm124_vm3 = vcmp.eq.s32.totalorder %v3031_v50, 3 }
 0x7f5   :  { %v471_v6 = vpack.c.bf16 %v3001_v3, %v3001_v3  ;;  %v524_v61 = vadd.f32 -0.16666667, %v523_v55  ;;  %v539_v7 = vadd.f32 1.0, %v538_v63 }
 0x7f7   :  { %473 = vrot.lane.b32.xlu1 %v471_v6, %s2748_s26  ;;  %v525_v6 = vmul.f32 %v524_v61, %v516_v36 }
 0x7f9   :  { %v526_v8 = vadd.f32 1.0, %v525_v6 }
 0x7fb   :  { %v527_v13 = vmul.f32 %v526_v8, %v515_v32 }
 0x7fd   :  { %553 = vrot.lane.b32.xlu0 %v527_v13, %s2763_s27 }
 0x7ff   :  { %481 = vrot.lane.b32.xlu1 %v2831_v5, %s2761_s25 }
 0x807   :  { %541 = vrot.lane.b32.xlu1 %v539_v7, %s2763_s27 }
 0x869   :  { %v474_v20 = vpop.permute.xlu1 %473 }
 0x86a   :  { %2459 = vmatmul.msk.bf16.vlgmr.msra.gmra.mxu0 %vm99_vm1, %v474_v20 }
 0x86b   :  { %797 = vmatpush.bf16.msra.mxu0 %v2906_v12 }
 0x86f   :  { %798 = vmatpush.bf16.msra.mxu0 %v2915_v18  ;;  %v554_v29 = vpop.permute.xlu0 %553 }
 0x870   :  { %v556_v32 = vmul.f32 %v554_v29, %v2813_v1 }
 0x871   :  { %v3021_v22 = vpop.permute.xlu1 %481 }
 0x872   :  { %v557_v36 = vmul.f32 0.1, %v556_v32 }
 0x873   :  { %799 = vmatpush.bf16.msra.mxu0 %v2921_v19 }
 0x874   :  { %560 = vperm.xlu1 %2558, %v557_v36  }
 0x877   :  { %800 = vmatpush.bf16.msra.mxu0 %v2927_v23 }
 0x879   :  { %v542_v27 = vpop.permute.xlu1 %541 }
 0x87a   :  { %v544_v28 = vmul.f32 %v542_v27, %v2813_v1 }
 0x87c   :  { %v545_v30 = vmul.f32 0.1, %v544_v28  ;;  %2563 = vset.pattern.permute.xlu1 %v2765_v37 }
 0x87e   :  { %548 = vperm.xlu2 %2557, %v545_v30  }
 0x886   :  { %2560 = vset.pattern.permute.xlu2 %v2766_v38 }
 0x8d8   :  { %v549_v35 = vpop.permute.xlu2 %548 }
 0x8d9   :  { %v551_v2 = vsel %vm121_vm13, %v549_v35, 0.0 }
 0x8e6   :  { %v561_v51 = vpop.permute.xlu1 %560 }
 0x8e7   :  { %v496_v39 = vpop.f32.mrf.mxu0  ;;  %v563_v52 = vsel %vm122_vm14, %v561_v51, 0.0 }
 0x8e8   :  { %v497_v40 = vadd.f32 %v496_v39, %v3021_v22  ;;  %v564_v60 = vadd.f32 %v563_v52, %v551_v2 }
 0x8ea   :  { %v2460_v4 = vclamps-f32 %v497_v40, 4.0  ;;  %v2461_v42 = vclamps-f32 %v497_v40, 1.0 }
 0x8ec   :  { %v565_v45 = vmul.f32 0.1, %v2461_v42  ;;  %v573_v46 = vmul.f32 0.1, %v2460_v4 }
 0x8ee   :  { %568 = vperm.xlu0 %2559, %v565_v45   ;;  %576 = vperm.xlu2 %2560, %v573_v46  }
 0x8ef   :  { %v498_v47 = vpop.f32.mrf.mxu0 }
 0x8f6   :  { %2562 = vset.pattern.permute.xlu2 %v2764_v21  ;;  %2561 = vset.pattern.permute.xlu0 %v2764_v21 }
 0x948   :  { %v577_v55 = vpop.permute.xlu2 %576 }
 0x949   :  { %v579_v7 = vsel %vm124_vm3, %v577_v55, 0.0 }
 0x960   :  { %v569_v61 = vpop.permute.xlu0 %568 }
 0x961   :  { %v571_v63 = vsel %vm123_vm15, %v569_v61, 0.0 }
 0x962   :  { %v572_v6 = vadd.f32 %v571_v63, %v564_v60 }
 0x964   :  { %v580_v8 = vadd.f32 %v579_v7, %v572_v6 }
 0x966   :  { %v3046_v13 = vadd.f32 %v580_v8, %v2813_v1 }
 0x968   :  { %v873_v20 = vmul.f32 %v3046_v13, %v3007_v26  ;;  %2462 = vmatmul.msk.f32.vlgmr.msra.gmra.mxu2 %vm125_vm0, %v3046_v13 }
 0x969   :  { %731 = vmatpush.bf16.msra.mxu2 %v2890_v56 }
 0x96a   :  { %v874_v27 = vadd.f32 0.5, %v873_v20 }
 0x96c   :  { %v875_v28 = vfloor.f32 %v874_v27 }
 0x96e   :  { %v876_v29 = vmul.f32 6.2831855, %v875_v28 }
 0x970   :  { %v877_v30 = vsub.f32 %v3046_v13, %v876_v29 }
 0x972   :  { %v3054_v32 = vmul.f32 %v877_v30, %v877_v30 }
 0x974   :  { %v879_v36 = vmul.f32 -2.5052108e-08, %v3054_v32 }
 0x976   :  { %v880_v39 = vadd.f32 2.7557319e-06, %v879_v36 }
 0x978   :  { %v881_v1 = vmul.f32 %v880_v39, %v3054_v32 }
 0x97a   :  { %v882_v40 = vadd.f32 -0.0001984127, %v881_v1 }
 0x97c   :  { %v883_v4 = vmul.f32 %v882_v40, %v3054_v32 }
 0x97e   :  { %v884_v42 = vadd.f32 0.008333334, %v883_v4 }
 0x980   :  { %v885_v45 = vmul.f32 %v884_v42, %v3054_v32 }
 0x982   :  { %v886_v46 = vadd.f32 -0.16666667, %v885_v45 }
 0x984   :  { %v887_v47 = vmul.f32 %v886_v46, %v3054_v32 }
 0x986   :  { %v888_v48 = vadd.f32 1.0, %v887_v47 }
 0x988   :  { %v3061_v35 = vmul.f32 %v888_v48, %v877_v30 }
 0x9eb   :  { %v602_v51 = vpop.f32.mrf.mxu2 }
 0x9ec   :  { %v603_v2 = vadd.f32 %v602_v51, %v2831_v5 }
 0x9ee   :  { %v605_v52 = vmax.f32 %v603_v2, 0.0 }
 0x9f0   :  { %v606_v55 = vpack.c.bf16 %v605_v52, %v605_v52 }
 0x9f2   :  { %2463 = vmatmul.msk.bf16.vlgmr.msrb.gmra.mxu1 %vm99_vm1, %v606_v55 }
 0x9f3   :  { %862 = vmatpush.bf16.msrb.mxu1 %v2964_v54 }
 0x9f7   :  { %863 = vmatpush.bf16.msrb.mxu1 %v2968_v59 }
 0xa6f   :  { %v619_v60 = vpop.f32.mrf.mxu1 }
 0xa70   :  { %v620_v61 = vadd.f32 %v619_v60, %v2861_v17 }
 0xa72   :  { %v623_v63 = vmax.f32 %v620_v61, 0.0 }
 0xa74   :  { %v624_v6 = vpack.c.bf16 %v623_v63, %v623_v63 }
 0xa76   :  { %2464 = vmatmul.msk.bf16.vlgmr.msrb.gmra.mxu2 %vm184_vm2, %v624_v6 }
 0xa77   :  { %v621_v7 = vpop.f32.mrf.mxu1  ;;  %962 = vmatpush.msrb.mxu2 %v2808_v0 }
 0xaf9   :  { %v637_v8 = vpop.f32.mrf.mxu2 }
 0xafa   :  { %v3071_v20 = vadd.f32 %v637_v8, %v2857_v16 }
 0xafc   :  { %v641_v27 = vpack.c.bf16 %v3071_v20, %v3071_v20 }
 0xafe   :  { %v643_v28 = vunpack.c.l.b16 %v641_v27 }
 0xb00   :  { %v644_v29 = vpack.c.b16 %v643_v28, %v643_v28 }
 0xb01   :  { %v639_v30 = vpop.f32.mrf.mxu2 }
 0xb02   :  { %645 = vrot.lane.b32.xlu2 %v644_v29, %s2756_s14  ;;  %691 = vrot.lane.b32.xlu1 %v644_v29, %s2757_s15 }
 0xb5c   :  { %v646_v36 = vpop.permute.xlu2 %645 }
 0xb5d   :  { %2465 = vmatmul.msk.bf16.vlgmr.msrb.gmra.mxu3 %vm184_vm2, %v646_v36 }
 0xb5e   :  { %978 = vmatpush.bf16.msrb.mxu3 %v2842_v9 }
 0xb62   :  { %979 = vmatpush.bf16.msrb.mxu3 %v2845_v10 }
 0xb74   :  { %v692_v0 = vpop.permute.xlu1 %691 }
 0xb75   :  { %2467 = vmatmul.msk.bf16.vlgmr.msra.gmra.mxu1 %vm184_vm2, %v692_v0 }
 0xb76   :  { %1047 = vmatpush.bf16.msra.mxu1 %v2908_v14 }
 0xbe0   :  { %v659_v39 = vpop.f32.mrf.mxu3 }
 0xbe1   :  { %v660_v1 = vadd.f32 %v659_v39, %v2883_v44 }
 0xbe3   :  { %v663_v40 = vsel %vm184_vm2, %v660_v1, -inf }
 0xbe4   :  { %664 = vmax.xlane.f32.xlu0 %v663_v40 }
 0xbe8   :  { %v661_v4 = vpop.f32.mrf.mxu3 }
 0xbf2   :  { %v705_v42 = vpop.f32.mrf.mxu1 }
 0xbf3   :  { %v706_v45 = vadd.f32 %v705_v42, %v2883_v44 }
 0xbf5   :  { %v709_v46 = vsel %vm184_vm2, %v706_v45, -inf }
 0xbf6   :  { %710 = vmax.xlane.f32.xlu1 %v709_v46 }
 0xbfa   :  { %v707_v47 = vpop.f32.mrf.mxu1 }
 0xc57   :  { %v665_v48 = vpop.xlane.xlu0 %664 }
 0xc58   :  { %v666_v51 = vsub.f32 %v660_v1, %v665_v48 }
 0xc5a   :  { %v667_v2 = vmul.f32 1.442695, %v666_v51 }
 0xc5c   :  { %2599 = vpow2.f32 %v667_v2 }
 0xc62   :  { %v2600_v52 = vpop.eup %2599 }
 0xc63   :  { %v669_v55 = vsel %vm184_vm2, %v2600_v52, 0.0 }
 0xc64   :  { %670 = vadd.xlane.f32.xlu1 %v669_v55 }
 0xc69   :  { %v711_v60 = vpop.xlane.xlu1 %710 }
 0xc6a   :  { %v712_v61 = vsub.f32 %v706_v45, %v711_v60 }
 0xc6c   :  { %v713_v63 = vmul.f32 1.442695, %v712_v61 }
 0xc6e   :  { %2601 = vpow2.f32 %v713_v63 }
 0xc74   :  { %v2602_v6 = vpop.eup %2601 }
 0xc75   :  { %v715_v7 = vsel %vm184_vm2, %v2602_v6, 0.0 }
 0xc76   :  { %716 = vadd.xlane.f32.xlu2 %v715_v7 }
 0xcd7   :  { %v671_v8 = vpop.xlane.xlu1 %670 }
 0xcd8   :  { %2603 = vrcp.f32 %v671_v8 }
 0xcde   :  { %v2604_v27 = vpop.eup %2603 }
 0xcdf   :  { %v673_v28 = vmul.f32 %v2604_v27, %v2600_v52 }
 0xce1   :  { %v674_v29 = vpack.c.bf16 %v673_v28, %v673_v28 }
 0xce3   :  { %2466 = vmatmul.msk.bf16.vlgmr.msrb.gmra.mxu0 %vm184_vm2, %v674_v29 }
 0xce4   :  { %997 = vmatpush.bf16.msrb.mxu0 %v2853_v15  ;;  %v890_v15 = vmul.f32 2.0876756e-09, %v3054_v32 }
 0xce6   :  { %v891_v48 = vadd.f32 -2.755732e-07, %v890_v15 }
 0xce8   :  { %v892_v2 = vmul.f32 %v891_v48, %v3054_v32 }
 0xce9   :  { %v717_v30 = vpop.xlane.xlu2 %716 }
 0xcea   :  { %2605 = vrcp.f32 %v717_v30  ;;  %v893_v60 = vadd.f32 2.4801588e-05, %v892_v2 }
 0xcf0   :  { %v2606_v36 = vpop.eup %2605 }
 0xcf1   :  { %v719_v0 = vmul.f32 %v2606_v36, %v2602_v6  ;;  %v894_v6 = vmul.f32 %v893_v60, %v3054_v32 }
 0xcf3   :  { %v720_v39 = vpack.c.bf16 %v719_v0, %v719_v0  ;;  %v895_v7 = vadd.f32 -0.0013888889, %v894_v6 }
 0xcf5   :  { %2468 = vmatmul.msk.bf16.vlgmr.msra.gmra.mxu2 %vm184_vm2, %v720_v39  ;;  %v896_v8 = vmul.f32 %v895_v7, %v3054_v32 }
 0xcf6   :  { %1019 = vmatpush.bf16.xpose.msra.mxu2 %v2866_v33 }
 0xcf7   :  { %v897_v27 = vadd.f32 0.041666668, %v896_v8 }
 0xcf9   :  { %v898_v28 = vmul.f32 %v897_v27, %v3054_v32 }
 0xcfb   :  { %v899_v29 = vadd.f32 -0.5, %v898_v28 }
 0xcfd   :  { %v900_v30 = vmul.f32 %v899_v29, %v3054_v32 }
 0xd60   :  { %v687_v1 = vpop.f32.mrf.mxu0 }
 0xd68   :  { %v689_v40 = vpop.f32.mrf.mxu0 }
 0xd78   :  { %v733_v4 = vpop.f32.mrf.mxu2 }
 0xd79   :  { %738 = vrot.lane.b32.xlu0 %v733_v4, %s2758_s24 }
 0xd80   :  { %v735_v42 = vpop.f32.mrf.mxu2 }
 0xdeb   :  { %v739_v45 = vpop.permute.xlu0 %738 }
 0xdec   :  { %v741_v46 = vsel %vm184_vm2, %v687_v1, %v739_v45 }
 0xded   :  { %v742_v47 = vpack.c.bf16 %v741_v46, %v741_v46 }
 0xdef   :  { %2469 = vmatmul.msk.bf16.vlgmr.msra.gmra.mxu3 %vm99_vm1, %v742_v47 }
 0xdf0   :  { %1065 = vmatpush.bf16.xpose.msra.mxu3 %v2878_v41 }
 0xe72   :  { %v755_v51 = vpop.f32.mrf.mxu3 }
 0xe73   :  { %v756_v52 = vadd.f32 %v755_v51, %v2946_v34 }
 0xe75   :  { %v759_v55 = vadd.f32 %v756_v52, %v3071_v20  ;;  %v901_v20 = vadd.f32 1.0, %v900_v30 }
 0xe77   :  { %v760_v61 = vsel %vm99_vm1, %v759_v55, 0.0 }
 0xe78   :  { %761 = vadd.xlane.f32.xlu2 %v760_v61 }
 0xe7a   :  { %v757_v63 = vpop.f32.mrf.mxu3 }
 0xe90   :  { %785 = vrot.lane.b32.xlu2 %v3001_v3, %s2756_s14 }
 0xe98   :  { %903 = vrot.lane.b32.xlu2 %v901_v20, %s2763_s27 }
 0xeeb   :  { %v762_v36 = vpop.xlane.xlu2 %761 }
 0xeec   :  { %v763_v0 = vmul.f32 %v762_v36, %v2958_v49 }
 0xeee   :  { %v764_v39 = vsub.f32 %v759_v55, %v763_v0 }
 0xef0   :  { %v765_v1 = vmul.f32 %v764_v39, %v764_v39 }
 0xef2   :  { %v766_v40 = vsel %vm99_vm1, %v765_v1, 0.0 }
 0xef3   :  { %767 = vadd.xlane.f32.xlu1 %v766_v40  ;;  %v786_v61 = vpop.permute.xlu2 %785 }
 0xf66   :  { %v768_v4 = vpop.xlane.xlu1 %767 }
 0xf67   :  { %v769_v42 = vmul.f32 %v768_v4, %v2958_v49 }
 0xf69   :  { %v770_v45 = vadd.f32 1e-05, %v769_v42 }
 0xf6b   :  { %2607 = vrsqrt.f32 %v770_v45  ;;  %vm777_vm5 = vweird.f32 %v770_v45 }
 0xf71   :  { %v2608_v46 = vpop.eup %2607 }
 0xf72   :  { %v772_v47 = vmul.f32 %v2608_v46, %v770_v45  ;;  %vm778_vm4 = vweird.f32 %v2608_v46 }
 0xf73   :  { %vm779_vm6 = vmor %vm777_vm5, %vm778_vm4 }
 0xf74   :  { %v773_v15 = vmul.f32 %v2608_v46, %v772_v47 }
 0xf76   :  { %v774_v32 = vmul.f32 0.5, %v773_v15 }
 0xf78   :  { %v775_v48 = vsub.f32 1.5, %v774_v32 }
 0xf7a   :  { %v776_v51 = vmul.f32 %v2608_v46, %v775_v48 }
 0xf7c   :  { %v780_v2 = vsel %vm779_vm6, %v2608_v46, %v776_v51 }
 0xf7d   :  { %v781_v52 = vmul.f32 %v780_v2, %v764_v39  ;;  %v469_v2 = vmul.f32 %v2987_v53, %v2991_v57 }
 0xf7f   :  { %v782_v55 = vmul.f32 %v781_v52, %v2954_v43  ;;  %v3126_v52 = vadd.f32 %v469_v2, %v2997_v62 }
 0xf81   :  { %v783_v60 = vadd.f32 %v782_v55, %v2972_v11 }
 0xf83   :  { %v788_v63 = vsel %vm99_vm1, %v783_v60, %v786_v61 }
 0xf84   :  { %v789_v6 = vpack.c.bf16 %v788_v63, %v788_v63 }
 0xf86   :  { %2470 = vmatmul.msk.bf16.vlgmr.msra.gmra.mxu0 %vm412_vm7, %v789_v6 }
 0xf87   :  { %1093 = vmatpush.bf16.msra.mxu0 %v2890_v56 }
0x1003   :  { %v802_v7 = vpop.f32.mrf.mxu0 }
0x1004   :  { %v803_v8 = vadd.f32 %v802_v7, %v2981_v24 }
0x1006   :  { %2609 = vtanh.f32 %v803_v8  ;;  %v2471_v29 = vmul.f32 -1.442695, %v803_v8  ;;  %v844_v8 = vmul.f32 %v3001_v3, %v2994_v58 }
0x1008   :  { %2611 = vpow2.f32 %v2471_v29 }
0x100b   :  { %v804_v27 = vpop.f32.mrf.mxu0 }
0x100c   :  { %v2610_v28 = vpop.eup %2609 }
0x100d   :  { %828 = vrot.lane.b32.xlu1 %v2610_v28, %s2753_s7  ;;  %v904_v28 = vpop.permute.xlu2 %903 }
0x100e   :  { %v2612_v30 = vpop.eup %2611  ;;  %v906_v29 = vmul.f32 %v904_v28, %v3046_v13 }
0x100f   :  { %v809_v20 = vadd.f32 1.0, %v2612_v30 }
0x1010   :  { %v907_v30 = vmul.f32 0.1, %v906_v29 }
0x1011   :  { %2613 = vrcp.f32 %v809_v20  ;;  %v821_v4 = vand.u32 2147483648, %v809_v20  ;;  %vm815_vm9 = vweird.f32 %v809_v20  ;;  %v819_v42 = vand.u32 2147483647, %v809_v20 }
0x1013   :  { %v822_v46 = vor.u32 1.1754944e-38, %v821_v4  ;;  %vm820_vm11 = vcmp.eq.f32.partialorder %v819_v42, 8.507059e+37 }
0x1015   :  { %915 = vrot.lane.b32.xlu1 %v3061_v35, %s2763_s27 }
0x1017   :  { %v2614_v36 = vpop.eup %2613 }
0x1018   :  { %v811_v0 = vmul.f32 %v2614_v36, %v809_v20  ;;  %vm816_vm8 = vweird.f32 %v2614_v36 }
0x1019   :  { %vm817_vm10 = vmor %vm815_vm9, %vm816_vm8 }
0x101a   :  { %v812_v39 = vsub.f32 1.0, %v811_v0 }
0x101c   :  { %v813_v1 = vmul.f32 %v2614_v36, %v812_v39 }
0x101e   :  { %v814_v40 = vadd.f32 %v2614_v36, %v813_v1 }
0x1020   :  { %v818_v45 = vsel %vm817_vm10, %v2614_v36, %v814_v40 }
0x1021   :  { %v823_v35 = vsel %vm820_vm11, %v822_v46, %v818_v45 }
0x1022   :  { %v826_v55 = vmul.f32 %v823_v35, %v3126_v52 }
0x107f   :  { %v829_v47 = vpop.permute.xlu1 %828 }
0x1080   :  { %v831_v15 = vmul.f32 %v829_v47, %v823_v35 }
0x1082   :  { %833 = vrot.lane.b32.xlu0 %v831_v15, %s2753_s7 }
0x1087   :  { %v916_v32 = vpop.permute.xlu1 %915 }
0x1088   :  { %v918_v48 = vmul.f32 %v916_v32, %v3046_v13 }
0x108a   :  { %v919_v51 = vmul.f32 0.1, %v918_v48 }
0x108c   :  { %922 = vperm.xlu2 %2562, %v919_v51  }
0x1094   :  { %2564 = vset.pattern.permute.xlu2 %v2766_v38 }
0x10f4   :  { %v834_v60 = vpop.permute.xlu0 %833 }
0x10f5   :  { %v3129_v61 = vadd.f32 %v834_v60, %v826_v55 }
0x10f7   :  { %2615 = vtanh.f32 %v3129_v61 }
0x10fd   :  { %v2616_v63 = vpop.eup %2615 }
0x10fe   :  { %839 = vrot.lane.b32.xlu0 %v2616_v63, %s2753_s7 }
0x1170   :  { %v840_v6 = vpop.permute.xlu0 %839 }
0x1171   :  { %v842_v7 = vmul.f32 %v840_v6, %v823_v35 }
0x1173   :  { %v843_v53 = vmul.f32 %v842_v7, %v2991_v57 }
0x1175   :  { %v3136_v27 = vadd.f32 %v844_v8, %v843_v53 }
0x1177   :  { %v849_v62 = vpack.c.bf16 %v3136_v27, %v3136_v27 }
0x1179   :  { %851 = vrot.lane.b32.xlu0 %v849_v62, %s2748_s26 }
0x1181   :  { %910 = vperm.xlu0 %2561, %v907_v30  }
0x1189   :  { %2567 = vset.pattern.permute.xlu0 %v2765_v37 }
0x11eb   :  { %v852_v20 = vpop.permute.xlu0 %851 }
0x11ec   :  { %2472 = vmatmul.msk.bf16.vlgmr.msrb.gmra.mxu1 %vm99_vm1, %v852_v20 }
0x11ed   :  { %1159 = vmatpush.bf16.msrb.mxu1 %v2906_v12  ;;  %v923_v12 = vpop.permute.xlu2 %922 }
0x11f1   :  { %1160 = vmatpush.bf16.msrb.mxu1 %v2915_v18 }
0x11f3   :  { %v911_v18 = vpop.permute.xlu0 %910 }
0x11f5   :  { %1161 = vmatpush.bf16.msrb.mxu1 %v2921_v19  ;;  %v913_v19 = vsel %vm121_vm13, %v911_v18, 0.0 }
0x11f9   :  { %1162 = vmatpush.bf16.msrb.mxu1 %v2927_v23  ;;  %v925_v23 = vsel %vm122_vm14, %v923_v12, 0.0 }
0x11fa   :  { %v926_v42 = vadd.f32 %v925_v23, %v913_v19 }
0x1269   :  { %v865_v3 = vpop.f32.mrf.mxu1 }
0x126a   :  { %v866_v36 = vadd.f32 %v865_v3, %v3021_v22 }
0x126c   :  { %v2473_v0 = vclamps-f32 %v866_v36, 4.0  ;;  %v2474_v39 = vclamps-f32 %v866_v36, 1.0 }
0x126e   :  { %v927_v1 = vmul.f32 0.1, %v2474_v39  ;;  %v935_v40 = vmul.f32 0.1, %v2473_v0 }
0x1270   :  { %930 = vperm.xlu1 %2563, %v927_v1   ;;  %938 = vperm.xlu2 %2564, %v935_v40  }
0x1271   :  { %v867_v4 = vpop.f32.mrf.mxu1 }
0x1278   :  { %2566 = vset.pattern.permute.xlu2 %v2764_v21  ;;  %2565 = vset.pattern.permute.xlu1 %v2764_v21 }
0x12ca   :  { %v939_v45 = vpop.permute.xlu2 %938 }
0x12cb   :  { %v941_v15 = vsel %vm124_vm3, %v939_v45, 0.0  ;;  %v3184_v45 = vld [vmem:[#allocation4] sm:$0xff] }
0x12e2   :  { %v931_v46 = vpop.permute.xlu1 %930 }
0x12e3   :  { %v933_v47 = vsel %vm123_vm15, %v931_v46, 0.0 }
0x12e4   :  { %v934_v35 = vadd.f32 %v933_v47, %v926_v42 }
0x12e6   :  { %v942_v32 = vadd.f32 %v941_v15, %v934_v35 }
0x12e8   :  { %v3160_v48 = vadd.f32 %v942_v32, %v3046_v13 }
0x12ea   :  { %v1235_v51 = vmul.f32 %v3160_v48, %v3007_v26  ;;  %2475 = vmatmul.msk.f32.vlgmr.msrb.gmra.mxu2 %vm125_vm0, %v3160_v48 }
0x12eb   :  { %1114 = vmatpush.bf16.msrb.mxu2 %v2932_v25 }
0x12ec   :  { %v1236_v2 = vadd.f32 0.5, %v1235_v51 }
0x12ee   :  { %v1237_v55 = vfloor.f32 %v1236_v2 }
0x12ef   :  { %1115 = vmatpush.bf16.msrb.mxu2 %v2939_v31 }
0x12f0   :  { %v1238_v60 = vmul.f32 6.2831855, %v1237_v55 }
0x12f2   :  { %v1239_v63 = vsub.f32 %v3160_v48, %v1238_v60 }
0x12f4   :  { %v3169_v6 = vmul.f32 %v1239_v63, %v1239_v63 }
0x12f6   :  { %v1241_v7 = vmul.f32 -2.5052108e-08, %v3169_v6 }
0x12f8   :  { %v1242_v8 = vadd.f32 2.7557319e-06, %v1241_v7 }
0x12fa   :  { %v1243_v53 = vmul.f32 %v1242_v8, %v3169_v6 }
0x12fc   :  { %v1244_v62 = vadd.f32 -0.0001984127, %v1243_v53 }
0x12fe   :  { %v1245_v28 = vmul.f32 %v1244_v62, %v3169_v6 }
0x1300   :  { %v1246_v29 = vadd.f32 0.008333334, %v1245_v28 }
0x1302   :  { %v1247_v30 = vmul.f32 %v1246_v29, %v3169_v6 }
0x1304   :  { %v1248_v20 = vadd.f32 -0.16666667, %v1247_v30 }
0x1306   :  { %v1249_v3 = vmul.f32 %v1248_v20, %v3169_v6 }
0x1308   :  { %v1250_v36 = vadd.f32 1.0, %v1249_v3 }
0x130a   :  { %v3176_v0 = vmul.f32 %v1250_v36, %v1239_v63 }
0x136d   :  { %v964_v39 = vpop.f32.mrf.mxu2 }
0x136e   :  { %v965_v1 = vadd.f32 %v964_v39, %v2831_v5 }
0x1370   :  { %v967_v40 = vmax.f32 %v965_v1, 0.0 }
0x1372   :  { %v968_v4 = vpack.c.bf16 %v967_v40, %v967_v40 }
0x1374   :  { %2476 = vmatmul.msk.bf16.vlgmr.msrb.gmra.mxu3 %vm99_vm1, %v968_v4 }
0x1375   :  { %1224 = vmatpush.bf16.msrb.mxu3 %v2964_v54 }
0x1379   :  { %1225 = vmatpush.bf16.msrb.mxu3 %v2968_v59 }
0x13f7   :  { %v981_v12 = vpop.f32.mrf.mxu3 }
0x13f8   :  { %v982_v18 = vadd.f32 %v981_v12, %v2861_v17 }
0x13fa   :  { %v985_v19 = vmax.f32 %v982_v18, 0.0 }
0x13fc   :  { %v986_v23 = vpack.c.bf16 %v985_v19, %v985_v19 }
0x13fe   :  { %2477 = vmatmul.msk.bf16.vlgmr.msrb.gmra.mxu0 %vm184_vm2, %v986_v23 }
0x13ff   :  { %v983_v42 = vpop.f32.mrf.mxu3  ;;  %1324 = vmatpush.msrb.mxu0 %v3184_v45 }
0x147b   :  { %v999_v46 = vpop.f32.mrf.mxu0 }
0x147c   :  { %v3188_v47 = vadd.f32 %v999_v46, %v2857_v16 }
0x147e   :  { %v1003_v35 = vpack.c.bf16 %v3188_v47, %v3188_v47 }
0x1480   :  { %v1005_v15 = vunpack.c.l.b16 %v1003_v35 }
0x1482   :  { %v1006_v32 = vpack.c.b16 %v1005_v15, %v1005_v15 }
0x1483   :  { %v1001_v51 = vpop.f32.mrf.mxu0 }
0x1484   :  { %1007 = vrot.lane.b32.xlu0 %v1006_v32, %s2756_s14  ;;  %1053 = vrot.lane.b32.xlu1 %v1006_v32, %s2757_s15 }
0x14f6   :  { %v1008_v2 = vpop.permute.xlu0 %1007  ;;  %v1054_v55 = vpop.permute.xlu1 %1053 }
0x14f7   :  { %2478 = vmatmul.msk.bf16.vlgmr.msra.gmra.mxu2 %vm184_vm2, %v1008_v2  ;;  %2480 = vmatmul.msk.bf16.vlgmr.msra.gmra.mxu3 %vm184_vm2, %v1054_v55  ;;  %v3211_v2 = vld [vmem:[%s3633_s2 + $0x20] sm:$0xff] }
0x14f8   :  { %1340 = vmatpush.bf16.msra.mxu2 %v2842_v9  ;;  %1409 = vmatpush.bf16.msra.mxu3 %v2908_v14 }
0x14fc   :  { %1341 = vmatpush.bf16.msra.mxu2 %v2845_v10 }
0x157a   :  { %v1021_v60 = vpop.f32.mrf.mxu2  ;;  %v1067_v63 = vpop.f32.mrf.mxu3 }
0x157b   :  { %v1022_v7 = vadd.f32 %v1021_v60, %v2883_v44  ;;  %v1068_v8 = vadd.f32 %v1067_v63, %v2883_v44 }
0x157d   :  { %v1025_v53 = vsel %vm184_vm2, %v1022_v7, -inf  ;;  %v1071_v62 = vsel %vm184_vm2, %v1068_v8, -inf }
0x157e   :  { %1026 = vmax.xlane.f32.xlu1 %v1025_v53  ;;  %1072 = vmax.xlane.f32.xlu2 %v1071_v62 }
0x1582   :  { %v1023_v28 = vpop.f32.mrf.mxu2  ;;  %v1069_v29 = vpop.f32.mrf.mxu3 }
0x15f1   :  { %v1073_v30 = vpop.xlane.xlu2 %1072  ;;  %v1027_v20 = vpop.xlane.xlu1 %1026 }
0x15f2   :  { %v1074_v3 = vsub.f32 %v1068_v8, %v1073_v30  ;;  %v1028_v36 = vsub.f32 %v1022_v7, %v1027_v20 }
0x15f4   :  { %v1075_v39 = vmul.f32 1.442695, %v1074_v3  ;;  %v1029_v1 = vmul.f32 1.442695, %v1028_v36 }
0x15f6   :  { %2617 = vpow2.f32 %v1075_v39 }
0x15f7   :  { %2619 = vpow2.f32 %v1029_v1 }
0x15fc   :  { %v2618_v40 = vpop.eup %2617 }
0x15fd   :  { %v2620_v4 = vpop.eup %2619  ;;  %v1077_v12 = vsel %vm184_vm2, %v2618_v40, 0.0 }
0x15fe   :  { %1078 = vadd.xlane.f32.xlu0 %v1077_v12  ;;  %v1031_v18 = vsel %vm184_vm2, %v2620_v4, 0.0 }
0x15ff   :  { %1032 = vadd.xlane.f32.xlu2 %v1031_v18 }
0x1671   :  { %v1079_v19 = vpop.xlane.xlu0 %1078 }
0x1672   :  { %2621 = vrcp.f32 %v1079_v19  ;;  %v1033_v23 = vpop.xlane.xlu2 %1032 }
0x1673   :  { %2623 = vrcp.f32 %v1033_v23 }
0x1678   :  { %v2622_v42 = vpop.eup %2621 }
0x1679   :  { %v2624_v46 = vpop.eup %2623  ;;  %v1081_v35 = vmul.f32 %v2622_v42, %v2618_v40 }
0x167a   :  { %v1035_v15 = vmul.f32 %v2624_v46, %v2620_v4 }
0x167b   :  { %v1082_v32 = vpack.c.bf16 %v1081_v35, %v1081_v35 }
0x167c   :  { %v1036_v51 = vpack.c.bf16 %v1035_v15, %v1035_v15 }
0x167d   :  { %2481 = vmatmul.msk.bf16.vlgmr.msra.gmra.mxu0 %vm184_vm2, %v1082_v32 }
0x167e   :  { %2479 = vmatmul.msk.bf16.vlgmr.msra.gmra.mxu1 %vm184_vm2, %v1036_v51  ;;  %1381 = vmatpush.bf16.xpose.msra.mxu0 %v2866_v33 }
0x167f   :  { %1359 = vmatpush.bf16.msra.mxu1 %v3211_v2 }
0x16fa   :  { %v1095_v55 = vpop.f32.mrf.mxu0 }
0x16fb   :  { %v1049_v60 = vpop.f32.mrf.mxu1  ;;  %1100 = vrot.lane.b32.xlu1 %v1095_v55, %s2758_s24 }
0x1702   :  { %v1097_v63 = vpop.f32.mrf.mxu0 }
0x1703   :  { %v1051_v7 = vpop.f32.mrf.mxu1 }
0x176d   :  { %v1101_v8 = vpop.permute.xlu1 %1100 }
0x176e   :  { %v1103_v53 = vsel %vm184_vm2, %v1049_v60, %v1101_v8 }
0x176f   :  { %v1104_v62 = vpack.c.bf16 %v1103_v53, %v1103_v53  ;;  %v1252_v53 = vmul.f32 2.0876756e-09, %v3169_v6 }
0x1771   :  { %2482 = vmatmul.msk.bf16.vlgmr.msrb.gmra.mxu2 %vm99_vm1, %v1104_v62  ;;  %v1253_v62 = vadd.f32 -2.755732e-07, %v1252_v53 }
0x1772   :  { %1427 = vmatpush.bf16.xpose.msrb.mxu2 %v2878_v41 }
0x17f4   :  { %v1117_v28 = vpop.f32.mrf.mxu2 }
0x17f5   :  { %v1118_v29 = vadd.f32 %v1117_v28, %v2946_v34  ;;  %v1254_v28 = vmul.f32 %v1253_v62, %v3169_v6 }
0x17f7   :  { %v1121_v30 = vadd.f32 %v1118_v29, %v3188_v47  ;;  %v1255_v29 = vadd.f32 2.4801588e-05, %v1254_v28  ;;  %v846_v28 = vmul.f32 %v3129_v61, %v2991_v57 }
0x17f9   :  { %v1122_v20 = vsel %vm99_vm1, %v1121_v30, 0.0 }
0x17fa   :  { %1123 = vadd.xlane.f32.xlu0 %v1122_v20 }
0x17fc   :  { %v1119_v3 = vpop.f32.mrf.mxu2 }
0x180e   :  { %1147 = vrot.lane.b32.xlu0 %v3136_v27, %s2756_s14 }
0x186d   :  { %v1124_v36 = vpop.xlane.xlu0 %1123 }
0x186e   :  { %v1125_v39 = vmul.f32 %v1124_v36, %v2958_v49 }
0x1870   :  { %v1126_v1 = vsub.f32 %v1121_v30, %v1125_v39  ;;  %v1256_v30 = vmul.f32 %v1255_v29, %v3169_v6  ;;  %v847_v29 = vmul.f32 %v3126_v52, %v2994_v58  ;;  %v1206_v52 = vmul.f32 %v3136_v27, %v2994_v58 }
0x1872   :  { %v1127_v40 = vmul.f32 %v1126_v1, %v1126_v1  ;;  %v1257_v20 = vadd.f32 -0.0013888889, %v1256_v30  ;;  %v3245_v30 = vadd.f32 %v847_v29, %v846_v28 }
0x1874   :  { %v1128_v4 = vsel %vm99_vm1, %v1127_v40, 0.0  ;;  %v1258_v3 = vmul.f32 %v1257_v20, %v3169_v6 }
0x1875   :  { %1129 = vadd.xlane.f32.xlu2 %v1128_v4 }
0x1876   :  { %v1259_v39 = vadd.f32 0.041666668, %v1258_v3 }
0x1878   :  { %v1260_v40 = vmul.f32 %v1259_v39, %v3169_v6 }
0x1880   :  { %v1148_v63 = vpop.permute.xlu0 %1147 }
0x18e8   :  { %v1130_v12 = vpop.xlane.xlu2 %1129 }
0x18e9   :  { %v1131_v18 = vmul.f32 %v1130_v12, %v2958_v49  ;;  %v1261_v12 = vadd.f32 -0.5, %v1260_v40 }
0x18eb   :  { %v1132_v19 = vadd.f32 1e-05, %v1131_v18 }
0x18ed   :  { %2625 = vrsqrt.f32 %v1132_v19  ;;  %vm1139_vm4 = vweird.f32 %v1132_v19 }
0x18f3   :  { %v2626_v47 = vpop.eup %2625 }
0x18f4   :  { %v1134_v23 = vmul.f32 %v2626_v47, %v1132_v19  ;;  %vm1140_vm12 = vweird.f32 %v2626_v47  ;;  %v1262_v19 = vmul.f32 %v1261_v12, %v3169_v6 }
0x18f5   :  { %vm1141_vm5 = vmor %vm1139_vm4, %vm1140_vm12 }
0x18f6   :  { %v1135_v42 = vmul.f32 %v2626_v47, %v1134_v23 }
0x18f8   :  { %v1136_v46 = vmul.f32 0.5, %v1135_v42 }
0x18fa   :  { %v1137_v35 = vsub.f32 1.5, %v1136_v46 }
0x18fc   :  { %v1138_v15 = vmul.f32 %v2626_v47, %v1137_v35 }
0x18fe   :  { %v1142_v32 = vsel %vm1141_vm5, %v2626_v47, %v1138_v15  ;;  %v1263_v47 = vadd.f32 1.0, %v1262_v19 }
0x18ff   :  { %v1143_v51 = vmul.f32 %v1142_v32, %v1126_v1 }
0x1901   :  { %v1144_v55 = vmul.f32 %v1143_v51, %v2954_v43 }
0x1903   :  { %v1145_v60 = vadd.f32 %v1144_v55, %v2972_v11 }
0x1905   :  { %v1150_v7 = vsel %vm99_vm1, %v1145_v60, %v1148_v63 }
0x1906   :  { %v1151_v8 = vpack.c.bf16 %v1150_v7, %v1150_v7 }
0x1908   :  { %2483 = vmatmul.msk.bf16.vlgmr.msrb.gmra.mxu1 %vm412_vm7, %v1151_v8 }
0x1909   :  { %1455 = vmatpush.bf16.msrb.mxu1 %v2890_v56 }
0x1985   :  { %v1164_v36 = vpop.f32.mrf.mxu1 }
0x1986   :  { %v1165_v1 = vadd.f32 %v1164_v36, %v2981_v24 }
0x1988   :  { %2627 = vtanh.f32 %v1165_v1  ;;  %v2484_v23 = vmul.f32 -1.442695, %v1165_v1 }
0x198a   :  { %2629 = vpow2.f32 %v2484_v23 }
0x198d   :  { %v1166_v4 = vpop.f32.mrf.mxu1 }
0x198e   :  { %v2628_v18 = vpop.eup %2627 }
0x198f   :  { %1190 = vrot.lane.b32.xlu2 %v2628_v18, %s2753_s7 }
0x1990   :  { %v2630_v42 = vpop.eup %2629 }
0x1991   :  { %v1171_v46 = vadd.f32 1.0, %v2630_v42 }
0x1993   :  { %2631 = vrcp.f32 %v1171_v46  ;;  %v1183_v60 = vand.u32 2147483648, %v1171_v46  ;;  %vm1177_vm8 = vweird.f32 %v1171_v46  ;;  %v1181_v63 = vand.u32 2147483647, %v1171_v46 }
0x1995   :  { %v1184_v6 = vor.u32 1.1754944e-38, %v1183_v60  ;;  %vm1182_vm10 = vcmp.eq.f32.partialorder %v1181_v63, 8.507059e+37 }
0x1997   :  { %1265 = vrot.lane.b32.xlu2 %v1263_v47, %s2763_s27 }
0x1999   :  { %v2632_v35 = vpop.eup %2631 }
0x199a   :  { %v1173_v15 = vmul.f32 %v2632_v35, %v1171_v46  ;;  %vm1178_vm6 = vweird.f32 %v2632_v35  ;;  %v3269_v46 = vld [vmem:[%s3633_s2 + $0x18] sm:$0xff] }
0x199b   :  { %vm1179_vm9 = vmor %vm1177_vm8, %vm1178_vm6 }
0x199c   :  { %v1174_v32 = vsub.f32 1.0, %v1173_v15  ;;  %v3281_v15 = vld [vmem:[%s3633_s2 + $0x8] sm:$0xff] }
0x199e   :  { %v1175_v51 = vmul.f32 %v2632_v35, %v1174_v32  ;;  %v3287_v32 = vld [vmem:[%s3633_s2] sm:$0xff] }
0x19a0   :  { %v1176_v55 = vadd.f32 %v2632_v35, %v1175_v51 }
0x19a2   :  { %v1180_v7 = vsel %vm1179_vm9, %v2632_v35, %v1176_v55  ;;  %v3275_v35 = vld [vmem:[%s3633_s2 + $0x10] sm:$0xff]  ;;  %s2767_s2 = smov 24  }
0x19a3   :  { %v1185_v53 = vsel %vm1182_vm10, %v1184_v6, %v1180_v7 }
0x19a4   :  { %v1188_v20 = vmul.f32 %v1185_v53, %v3245_v30 }
0x19e9   :  { %v1191_v8 = vpop.permute.xlu2 %1190 }
0x19ea   :  { %v1193_v62 = vmul.f32 %v1191_v8, %v1185_v53 }
0x19ec   :  { %1195 = vrot.lane.b32.xlu1 %v1193_v62, %s2753_s7 }
0x19f1   :  { %v1266_v18 = vpop.permute.xlu2 %1265 }
0x1a5e   :  { %v1196_v3 = vpop.permute.xlu1 %1195 }
0x1a5f   :  { %v3248_v36 = vadd.f32 %v1196_v3, %v1188_v20 }
0x1a61   :  { %2633 = vtanh.f32 %v3248_v36 }
0x1a67   :  { %v2634_v39 = vpop.eup %2633 }
0x1a68   :  { %1201 = vrot.lane.b32.xlu0 %v2634_v39, %s2753_s7 }
0x1a70   :  { %1277 = vrot.lane.b32.xlu0 %v3176_v0, %s2763_s27  ;;  %v1268_v0 = vmul.f32 %v1266_v18, %v3160_v48 }
0x1a72   :  { %v1269_v42 = vmul.f32 0.1, %v1268_v0 }
0x1ada   :  { %v1202_v1 = vpop.permute.xlu0 %1201 }
0x1adb   :  { %v1204_v61 = vmul.f32 %v1202_v1, %v1185_v53 }
0x1add   :  { %v1205_v40 = vmul.f32 %v1204_v61, %v2991_v57 }
0x1adf   :  { %v3257_v4 = vadd.f32 %v1206_v52, %v1205_v40 }
0x1ae1   :  { %v1211_v12 = vpack.c.bf16 %v3257_v4, %v3257_v4 }
0x1ae2   :  { %v1278_v19 = vpop.permute.xlu0 %1277 }
0x1ae3   :  { %v1280_v47 = vmul.f32 %v1278_v19, %v3160_v48  ;;  %1213 = vrot.lane.b32.xlu1 %v1211_v12, %s2748_s26 }
0x1ae5   :  { %v1281_v23 = vmul.f32 0.1, %v1280_v47 }
0x1ae7   :  { %1284 = vperm.xlu2 %2566, %v1281_v23  }
0x1aeb   :  { %1272 = vperm.xlu1 %2565, %v1269_v42  }
0x1af3   :  { %2568 = vset.pattern.permute.xlu1 %v2766_v38 }
0x1b41   :  { %v1285_v62 = vpop.permute.xlu2 %1284 }
0x1b42   :  { %v1287_v29 = vsel %vm122_vm14, %v1285_v62, 0.0 }
0x1b55   :  { %v1214_v27 = vpop.permute.xlu1 %1213 }
0x1b56   :  { %2485 = vmatmul.msk.bf16.vlgmr.msrb.gmra.mxu3 %vm99_vm1, %v1214_v27 }
0x1b57   :  { %1521 = vmatpush.bf16.msrb.mxu3 %v3269_v46 }
0x1b5b   :  { %1522 = vmatpush.bf16.msrb.mxu3 %v3275_v35 }
0x1b5d   :  { %v1273_v53 = vpop.permute.xlu1 %1272 }
0x1b5e   :  { %v1275_v28 = vsel %vm121_vm13, %v1273_v53, 0.0 }
0x1b5f   :  { %1523 = vmatpush.bf16.msrb.mxu3 %v3281_v15  ;;  %v1288_v20 = vadd.f32 %v1287_v29, %v1275_v28 }
0x1b63   :  { %1524 = vmatpush.bf16.msrb.mxu3 %v3287_v32 }
0x1bd9   :  { %v1227_v51 = vpop.f32.mrf.mxu3 }
0x1bda   :  { %v1228_v55 = vadd.f32 %v1227_v51, %v3021_v22 }
0x1bdc   :  { %v2486_v60 = vclamps-f32 %v1228_v55, 4.0  ;;  %v2487_v63 = vclamps-f32 %v1228_v55, 1.0 }
0x1bde   :  { %v1289_v7 = vmul.f32 0.1, %v2487_v63  ;;  %v1297_v6 = vmul.f32 0.1, %v2486_v60 }
0x1be0   :  { %1292 = vperm.xlu0 %2567, %v1289_v7   ;;  %1300 = vperm.xlu1 %2568, %v1297_v6  }
0x1be1   :  { %v1229_v8 = vpop.f32.mrf.mxu3 }
0x1be8   :  { %2569 = vset.pattern.permute.xlu1 %v2764_v21 }
0x1c52   :  { %v1301_v3 = vpop.permute.xlu1 %1300  ;;  %v1293_v39 = vpop.permute.xlu0 %1292 }
0x1c53   :  { %v1295_v1 = vsel %vm123_vm15, %v1293_v39, 0.0  ;;  %v1303_v52 = vsel %vm124_vm3, %v1301_v3, 0.0 }
0x1c54   :  { %v1296_v61 = vadd.f32 %v1295_v1, %v1288_v20 }
0x1c56   :  { %v1304_v40 = vadd.f32 %v1303_v52, %v1296_v61 }
0x1c58   :  { %v3301_v12 = vadd.f32 %v1304_v40, %v3160_v48 }
0x1c5a   :  { %v1597_v18 = vmul.f32 %v3301_v12, %v3007_v26  ;;  %2488 = vmatmul.msk.f32.vlgmr.msrb.gmra.mxu0 %vm125_vm0, %v3301_v12 }
0x1c5b   :  { %1476 = vmatpush.bf16.msrb.mxu0 %v2932_v25 }
0x1c5c   :  { %v1598_v19 = vadd.f32 0.5, %v1597_v18 }
0x1c5e   :  { %v1599_v47 = vfloor.f32 %v1598_v19 }
0x1c5f   :  { %1477 = vmatpush.bf16.msrb.mxu0 %v2939_v31 }
0x1c60   :  { %v1600_v0 = vmul.f32 6.2831855, %v1599_v47 }
0x1c62   :  { %v1601_v23 = vsub.f32 %v3301_v12, %v1600_v0 }
0x1c64   :  { %v3310_v42 = vmul.f32 %v1601_v23, %v1601_v23 }
0x1c66   :  { %v1603_v27 = vmul.f32 -2.5052108e-08, %v3310_v42 }
0x1c68   :  { %v1604_v51 = vadd.f32 2.7557319e-06, %v1603_v27 }
0x1c6a   :  { %v1605_v55 = vmul.f32 %v1604_v51, %v3310_v42 }
0x1c6c   :  { %v1606_v60 = vadd.f32 -0.0001984127, %v1605_v55 }
0x1c6e   :  { %v1607_v63 = vmul.f32 %v1606_v60, %v3310_v42 }
0x1c70   :  { %v1608_v7 = vadd.f32 0.008333334, %v1607_v63 }
0x1c72   :  { %v1609_v6 = vmul.f32 %v1608_v7, %v3310_v42 }
0x1c74   :  { %v1610_v8 = vadd.f32 -0.16666667, %v1609_v6 }
0x1c76   :  { %v1611_v53 = vmul.f32 %v1610_v8, %v3310_v42 }
0x1c78   :  { %v1612_v62 = vadd.f32 1.0, %v1611_v53 }
0x1c7a   :  { %v3317_v28 = vmul.f32 %v1612_v62, %v1601_v23 }
0x1cd7   :  { %v1326_v29 = vpop.f32.mrf.mxu0 }
0x1cd8   :  { %v1327_v20 = vadd.f32 %v1326_v29, %v2831_v5 }
0x1cda   :  { %v1329_v3 = vmax.f32 %v1327_v20, 0.0 }
0x1cdc   :  { %v1330_v39 = vpack.c.bf16 %v1329_v3, %v1329_v3 }
0x1cde   :  { %2489 = vmatmul.msk.bf16.vlgmr.msra.gmra.mxu2 %vm99_vm1, %v1330_v39 }
0x1cdf   :  { %1586 = vmatpush.bf16.msra.mxu2 %v2964_v54 }
0x1ce3   :  { %1587 = vmatpush.bf16.msra.mxu2 %v2968_v59 }
0x1d61   :  { %v1343_v1 = vpop.f32.mrf.mxu2 }
0x1d62   :  { %v1344_v61 = vadd.f32 %v1343_v1, %v2861_v17 }
0x1d64   :  { %v1347_v52 = vmax.f32 %v1344_v61, 0.0 }
0x1d66   :  { %v1348_v40 = vpack.c.bf16 %v1347_v52, %v1347_v52 }
0x1d68   :  { %2490 = vmatmul.msk.bf16.vlgmr.msra.gmra.mxu1 %vm184_vm2, %v1348_v40 }
0x1d69   :  { %v1345_v18 = vpop.f32.mrf.mxu2  ;;  %1686 = vmatpush.msra.mxu1 %v3184_v45 }
0x1de5   :  { %v1361_v19 = vpop.f32.mrf.mxu1 }
0x1de6   :  { %v3327_v47 = vadd.f32 %v1361_v19, %v2857_v16 }
0x1de8   :  { %v1365_v0 = vpack.c.bf16 %v3327_v47, %v3327_v47 }
0x1dea   :  { %v1367_v23 = vunpack.c.l.b16 %v1365_v0 }
0x1dec   :  { %v1368_v27 = vpack.c.b16 %v1367_v23, %v1367_v23 }
0x1ded   :  { %v1363_v51 = vpop.f32.mrf.mxu1 }
0x1dee   :  { %1369 = vrot.lane.b32.xlu1 %v1368_v27, %s2756_s14  ;;  %1415 = vrot.lane.b32.xlu2 %v1368_v27, %s2757_s15 }
0x1e48   :  { %v1416_v55 = vpop.permute.xlu2 %1415 }
0x1e49   :  { %2493 = vmatmul.msk.bf16.vlgmr.msrb.gmra.mxu2 %vm184_vm2, %v1416_v55 }
0x1e4a   :  { %1771 = vmatpush.bf16.msrb.mxu2 %v2908_v14 }
0x1e60   :  { %v1370_v60 = vpop.permute.xlu1 %1369 }
0x1e61   :  { %2491 = vmatmul.msk.bf16.vlgmr.msra.gmra.mxu0 %vm184_vm2, %v1370_v60 }
0x1e62   :  { %1702 = vmatpush.bf16.msra.mxu0 %v2842_v9 }
0x1e66   :  { %1703 = vmatpush.bf16.msra.mxu0 %v2845_v10 }
0x1ecc   :  { %v1429_v63 = vpop.f32.mrf.mxu2 }
0x1ecd   :  { %v1430_v7 = vadd.f32 %v1429_v63, %v2883_v44 }
0x1ecf   :  { %v1433_v6 = vsel %vm184_vm2, %v1430_v7, -inf }
0x1ed0   :  { %1434 = vmax.xlane.f32.xlu2 %v1433_v6 }
0x1ed4   :  { %v1431_v8 = vpop.f32.mrf.mxu2 }
0x1ede   :  { %v1383_v53 = vpop.f32.mrf.mxu0 }
0x1edf   :  { %v1384_v62 = vadd.f32 %v1383_v53, %v2883_v44 }
0x1ee1   :  { %v1387_v29 = vsel %vm184_vm2, %v1384_v62, -inf }
0x1ee2   :  { %1388 = vmax.xlane.f32.xlu0 %v1387_v29 }
0x1ee6   :  { %v1385_v20 = vpop.f32.mrf.mxu0 }
0x1f43   :  { %v1435_v3 = vpop.xlane.xlu2 %1434 }
0x1f44   :  { %v1436_v39 = vsub.f32 %v1430_v7, %v1435_v3 }
0x1f46   :  { %v1437_v1 = vmul.f32 1.442695, %v1436_v39 }
0x1f48   :  { %2635 = vpow2.f32 %v1437_v1 }
0x1f4e   :  { %v2636_v61 = vpop.eup %2635 }
0x1f4f   :  { %v1439_v52 = vsel %vm184_vm2, %v2636_v61, 0.0 }
0x1f50   :  { %1440 = vadd.xlane.f32.xlu1 %v1439_v52 }
0x1f55   :  { %v1389_v40 = vpop.xlane.xlu0 %1388 }
0x1f56   :  { %v1390_v18 = vsub.f32 %v1384_v62, %v1389_v40 }
0x1f58   :  { %v1391_v19 = vmul.f32 1.442695, %v1390_v18 }
0x1f5a   :  { %2637 = vpow2.f32 %v1391_v19 }
0x1f60   :  { %v2638_v0 = vpop.eup %2637 }
0x1f61   :  { %v1393_v23 = vsel %vm184_vm2, %v2638_v0, 0.0 }
0x1f62   :  { %1394 = vadd.xlane.f32.xlu2 %v1393_v23 }
0x1fc3   :  { %v1441_v27 = vpop.xlane.xlu1 %1440 }
0x1fc4   :  { %2639 = vrcp.f32 %v1441_v27 }
0x1fca   :  { %v2640_v51 = vpop.eup %2639 }
0x1fcb   :  { %v1443_v55 = vmul.f32 %v2640_v51, %v2636_v61 }
0x1fcd   :  { %v1444_v60 = vpack.c.bf16 %v1443_v55, %v1443_v55 }
0x1fcf   :  { %2494 = vmatmul.msk.bf16.vlgmr.msrb.gmra.mxu1 %vm184_vm2, %v1444_v60 }
0x1fd0   :  { %1721 = vmatpush.bf16.msrb.mxu1 %v3211_v2 }
0x1fd5   :  { %v1395_v63 = vpop.xlane.xlu2 %1394 }
0x1fd6   :  { %2641 = vrcp.f32 %v1395_v63 }
0x1fdc   :  { %v2642_v7 = vpop.eup %2641 }
0x1fdd   :  { %v1397_v6 = vmul.f32 %v2642_v7, %v2638_v0 }
0x1fdf   :  { %v1398_v8 = vpack.c.bf16 %v1397_v6, %v1397_v6 }
0x1fe1   :  { %2492 = vmatmul.msk.bf16.vlgmr.msra.gmra.mxu3 %vm184_vm2, %v1398_v8 }
0x1fe2   :  { %1743 = vmatpush.bf16.xpose.msra.mxu3 %v2866_v33 }
0x204c   :  { %v1457_v53 = vpop.f32.mrf.mxu1 }
0x204d   :  { %1462 = vrot.lane.b32.xlu0 %v1457_v53, %s2758_s24 }
0x2054   :  { %v1459_v62 = vpop.f32.mrf.mxu1 }
0x2064   :  { %v1411_v29 = vpop.f32.mrf.mxu3 }
0x206c   :  { %v1413_v20 = vpop.f32.mrf.mxu3 }
0x20bf   :  { %v1463_v3 = vpop.permute.xlu0 %1462 }
0x20c0   :  { %v1465_v39 = vsel %vm184_vm2, %v1411_v29, %v1463_v3 }
0x20c1   :  { %v1466_v1 = vpack.c.bf16 %v1465_v39, %v1465_v39 }
0x20c3   :  { %2495 = vmatmul.msk.bf16.vlgmr.msrb.gmra.mxu0 %vm99_vm1, %v1466_v1 }
0x20c4   :  { %1789 = vmatpush.bf16.xpose.msrb.mxu0 %v2878_v41 }
0x2140   :  { %v1479_v61 = vpop.f32.mrf.mxu0 }
0x2141   :  { %v1480_v52 = vadd.f32 %v1479_v61, %v2946_v34 }
0x2143   :  { %v1483_v40 = vadd.f32 %v1480_v52, %v3327_v47 }
0x2145   :  { %v1484_v18 = vsel %vm99_vm1, %v1483_v40, 0.0 }
0x2146   :  { %1485 = vadd.xlane.f32.xlu1 %v1484_v18  ;;  %v1614_v18 = vmul.f32 2.0876756e-09, %v3310_v42 }
0x2148   :  { %v1481_v19 = vpop.f32.mrf.mxu0 }
0x2149   :  { %v1615_v19 = vadd.f32 -2.755732e-07, %v1614_v18 }
0x215f   :  { %1509 = vrot.lane.b32.xlu1 %v3257_v4, %s2756_s14 }
0x21b9   :  { %v1486_v0 = vpop.xlane.xlu1 %1485 }
0x21ba   :  { %v1487_v23 = vmul.f32 %v1486_v0, %v2958_v49  ;;  %v1616_v0 = vmul.f32 %v1615_v19, %v3310_v42 }
0x21bc   :  { %v1488_v27 = vsub.f32 %v1483_v40, %v1487_v23  ;;  %v1617_v23 = vadd.f32 2.4801588e-05, %v1616_v0 }
0x21be   :  { %v1489_v51 = vmul.f32 %v1488_v27, %v1488_v27 }
0x21c0   :  { %v1490_v55 = vsel %vm99_vm1, %v1489_v51, 0.0 }
0x21c1   :  { %1491 = vadd.xlane.f32.xlu2 %v1490_v55 }
0x21d1   :  { %v1510_v61 = vpop.permute.xlu1 %1509 }
0x2234   :  { %v1492_v60 = vpop.xlane.xlu2 %1491 }
0x2235   :  { %v1493_v63 = vmul.f32 %v1492_v60, %v2958_v49 }
0x2237   :  { %v1494_v7 = vadd.f32 1e-05, %v1493_v63 }
0x2239   :  { %2643 = vrsqrt.f32 %v1494_v7  ;;  %vm1501_vm12 = vweird.f32 %v1494_v7 }
0x223f   :  { %v2644_v47 = vpop.eup %2643 }
0x2240   :  { %v1496_v6 = vmul.f32 %v2644_v47, %v1494_v7  ;;  %vm1502_vm11 = vweird.f32 %v2644_v47 }
0x2241   :  { %vm1503_vm4 = vmor %vm1501_vm12, %vm1502_vm11 }
0x2242   :  { %v1497_v8 = vmul.f32 %v2644_v47, %v1496_v6 }
0x2244   :  { %v1498_v53 = vmul.f32 0.5, %v1497_v8 }
0x2246   :  { %v1499_v62 = vsub.f32 1.5, %v1498_v53 }
0x2248   :  { %v1500_v29 = vmul.f32 %v2644_v47, %v1499_v62 }
0x224a   :  { %v1504_v20 = vsel %vm1503_vm4, %v2644_v47, %v1500_v29 }
0x224b   :  { %v1505_v3 = vmul.f32 %v1504_v20, %v1488_v27  ;;  %v1618_v27 = vmul.f32 %v1617_v23, %v3310_v42 }
0x224d   :  { %v1506_v39 = vmul.f32 %v1505_v3, %v2954_v43  ;;  %v1619_v51 = vadd.f32 -0.0013888889, %v1618_v27 }
0x224f   :  { %v1507_v1 = vadd.f32 %v1506_v39, %v2972_v11  ;;  %v1620_v55 = vmul.f32 %v1619_v51, %v3310_v42 }
0x2251   :  { %v1512_v52 = vsel %vm99_vm1, %v1507_v1, %v1510_v61  ;;  %v1621_v63 = vadd.f32 0.041666668, %v1620_v55 }
0x2252   :  { %v1513_v40 = vpack.c.bf16 %v1512_v52, %v1512_v52 }
0x2253   :  { %v1622_v47 = vmul.f32 %v1621_v63, %v3310_v42  ;;  %v1209_v63 = vmul.f32 %v3245_v30, %v2994_v58  ;;  %v1568_v30 = vmul.f32 %v3257_v4, %v2994_v58 }
0x2254   :  { %2496 = vmatmul.msk.bf16.vlgmr.msrb.gmra.mxu3 %vm412_vm7, %v1513_v40 }
0x2255   :  { %1838 = vmatpush.bf16.msrb.mxu3 %v2932_v25  ;;  %v1623_v8 = vadd.f32 -0.5, %v1622_v47 }
0x2257   :  { %v1624_v62 = vmul.f32 %v1623_v8, %v3310_v42 }
0x2259   :  { %1839 = vmatpush.bf16.msrb.mxu3 %v2939_v31  ;;  %v1625_v29 = vadd.f32 1.0, %v1624_v62 }
0x22d7   :  { %v1526_v60 = vpop.f32.mrf.mxu3 }
0x22d8   :  { %v1527_v7 = vadd.f32 %v1526_v60, %v2981_v24  ;;  %v1208_v60 = vmul.f32 %v3248_v36, %v2991_v57 }
0x22da   :  { %2645 = vtanh.f32 %v1527_v7  ;;  %v2497_v20 = vmul.f32 -1.442695, %v1527_v7  ;;  %v3380_v7 = vadd.f32 %v1209_v63, %v1208_v60 }
0x22dc   :  { %2647 = vpow2.f32 %v2497_v20 }
0x22df   :  { %v1528_v6 = vpop.f32.mrf.mxu3 }
0x22e0   :  { %v2646_v53 = vpop.eup %2645 }
0x22e1   :  { %1552 = vrot.lane.b32.xlu2 %v2646_v53, %s2753_s7 }
0x22e2   :  { %v2648_v3 = vpop.eup %2647 }
0x22e3   :  { %v1533_v39 = vadd.f32 1.0, %v2648_v3 }
0x22e5   :  { %2649 = vrcp.f32 %v1533_v39  ;;  %v1545_v19 = vand.u32 2147483648, %v1533_v39  ;;  %vm1539_vm6 = vweird.f32 %v1533_v39  ;;  %v1543_v0 = vand.u32 2147483647, %v1533_v39 }
0x22e7   :  { %v1546_v42 = vor.u32 1.1754944e-38, %v1545_v19  ;;  %vm1544_vm9 = vcmp.eq.f32.partialorder %v1543_v0, 8.507059e+37 }
0x22e9   :  { %1627 = vrot.lane.b32.xlu2 %v1625_v29, %s2763_s27 }
0x22eb   :  { %v2650_v1 = vpop.eup %2649 }
0x22ec   :  { %v1535_v61 = vmul.f32 %v2650_v1, %v1533_v39  ;;  %vm1540_vm5 = vweird.f32 %v2650_v1 }
0x22ed   :  { %vm1541_vm8 = vmor %vm1539_vm6, %vm1540_vm5 }
0x22ee   :  { %v1536_v52 = vsub.f32 1.0, %v1535_v61 }
0x22f0   :  { %v1537_v40 = vmul.f32 %v2650_v1, %v1536_v52 }
0x22f2   :  { %v1538_v18 = vadd.f32 %v2650_v1, %v1537_v40 }
0x22f4   :  { %v1542_v23 = vsel %vm1541_vm8, %v2650_v1, %v1538_v18 }
0x22f5   :  { %v1547_v51 = vsel %vm1544_vm9, %v1546_v42, %v1542_v23 }
0x22f6   :  { %v1550_v47 = vmul.f32 %v1547_v51, %v3380_v7 }
0x233b   :  { %v1553_v27 = vpop.permute.xlu2 %1552 }
0x233c   :  { %v1555_v55 = vmul.f32 %v1553_v27, %v1547_v51 }
0x233e   :  { %1557 = vrot.lane.b32.xlu0 %v1555_v55, %s2753_s7 }
0x2343   :  { %v1628_v39 = vpop.permute.xlu2 %1627 }
0x23b0   :  { %v1558_v6 = vpop.permute.xlu0 %1557 }
0x23b1   :  { %v3383_v8 = vadd.f32 %v1558_v6, %v1550_v47 }
0x23b3   :  { %2651 = vtanh.f32 %v3383_v8 }
0x23b9   :  { %v2652_v53 = vpop.eup %2651 }
0x23ba   :  { %1563 = vrot.lane.b32.xlu0 %v2652_v53, %s2753_s7 }
0x23c2   :  { %1639 = vrot.lane.b32.xlu0 %v3317_v28, %s2763_s27  ;;  %v1630_v28 = vmul.f32 %v1628_v39, %v3301_v12 }
0x23c4   :  { %v1631_v40 = vmul.f32 0.1, %v1630_v28 }
0x242c   :  { %v1564_v62 = vpop.permute.xlu0 %1563 }
0x242d   :  { %v1566_v36 = vmul.f32 %v1564_v62, %v1547_v51 }
0x242f   :  { %v1567_v29 = vmul.f32 %v1566_v36, %v2991_v57 }
0x2431   :  { %v3392_v20 = vadd.f32 %v1568_v30, %v1567_v29 }
0x2433   :  { %v1573_v3 = vpack.c.bf16 %v3392_v20, %v3392_v20 }
0x2434   :  { %v1640_v1 = vpop.permute.xlu0 %1639 }
0x2435   :  { %v1642_v61 = vmul.f32 %v1640_v1, %v3301_v12  ;;  %1575 = vrot.lane.b32.xlu1 %v1573_v3, %s2748_s26 }
0x2437   :  { %v1643_v52 = vmul.f32 0.1, %v1642_v61 }
0x2439   :  { %1646 = vperm.xlu2 %2566, %v1643_v52  }
0x243d   :  { %1634 = vperm.xlu1 %2569, %v1631_v40  }
0x2441   :  { %2573 = vset.pattern.permute.xlu2 %v2765_v37 }
0x2445   :  { %2570 = vset.pattern.permute.xlu1 %v2766_v38 }
0x2493   :  { %v1647_v55 = vpop.permute.xlu2 %1646 }
0x2494   :  { %v1649_v63 = vsel %vm122_vm14, %v1647_v55, 0.0 }
0x24a7   :  { %v1576_v4 = vpop.permute.xlu1 %1575 }
0x24a8   :  { %2498 = vmatmul.msk.bf16.vlgmr.msra.gmra.mxu2 %vm99_vm1, %v1576_v4 }
0x24a9   :  { %1883 = vmatpush.bf16.msra.mxu2 %v3269_v46 }
0x24ad   :  { %1884 = vmatpush.bf16.msra.mxu2 %v3275_v35 }
0x24af   :  { %v1635_v51 = vpop.permute.xlu1 %1634 }
0x24b0   :  { %v1637_v60 = vsel %vm121_vm13, %v1635_v51, 0.0 }
0x24b1   :  { %1885 = vmatpush.bf16.msra.mxu2 %v3281_v15  ;;  %v1650_v47 = vadd.f32 %v1649_v63, %v1637_v60 }
0x24b5   :  { %1886 = vmatpush.bf16.msra.mxu2 %v3287_v32 }
0x252b   :  { %v1589_v18 = vpop.f32.mrf.mxu2 }
0x252c   :  { %v1590_v19 = vadd.f32 %v1589_v18, %v3021_v22 }
0x252e   :  { %v2499_v0 = vclamps-f32 %v1590_v19, 4.0  ;;  %v2500_v23 = vclamps-f32 %v1590_v19, 1.0 }
0x2530   :  { %v1651_v42 = vmul.f32 0.1, %v2500_v23  ;;  %v1659_v37 = vmul.f32 0.1, %v2499_v0 }
0x2532   :  { %1654 = vperm.xlu0 %2567, %v1651_v42   ;;  %1662 = vperm.xlu1 %2570, %v1659_v37  }
0x2533   :  { %v1591_v27 = vpop.f32.mrf.mxu2 }
0x253a   :  { %2571 = vset.pattern.permute.xlu1 %v2764_v21  ;;  %2572 = vset.pattern.permute.xlu0 %v2764_v21 }
0x25a4   :  { %v1663_v6 = vpop.permute.xlu1 %1662  ;;  %v1655_v53 = vpop.permute.xlu0 %1654 }
0x25a5   :  { %v1657_v62 = vsel %vm123_vm15, %v1655_v53, 0.0  ;;  %v1665_v30 = vsel %vm124_vm3, %v1663_v6, 0.0 }
0x25a6   :  { %v1658_v36 = vadd.f32 %v1657_v62, %v1650_v47 }
0x25a8   :  { %v1666_v29 = vadd.f32 %v1665_v30, %v1658_v36 }
0x25aa   :  { %v3418_v3 = vadd.f32 %v1666_v29, %v3301_v12 }
0x25ac   :  { %v1959_v39 = vmul.f32 %v3418_v3, %v3007_v26  ;;  %2501 = vmatmul.msk.f32.vlgmr.msra.gmra.mxu1 %vm125_vm0, %v3418_v3 }
0x25ad   :  { %1817 = vmatpush.bf16.msra.mxu1 %v2890_v56 }
0x25ae   :  { %v1960_v1 = vadd.f32 0.5, %v1959_v39 }
0x25b0   :  { %v1961_v61 = vfloor.f32 %v1960_v1 }
0x25b2   :  { %v1962_v28 = vmul.f32 6.2831855, %v1961_v61 }
0x25b4   :  { %v1963_v52 = vsub.f32 %v3418_v3, %v1962_v28 }
0x25b6   :  { %v3426_v40 = vmul.f32 %v1963_v52, %v1963_v52 }
0x25b8   :  { %v1965_v4 = vmul.f32 -2.5052108e-08, %v3426_v40 }
0x25ba   :  { %v1966_v18 = vadd.f32 2.7557319e-06, %v1965_v4 }
0x25bc   :  { %v1967_v19 = vmul.f32 %v1966_v18, %v3426_v40 }
0x25be   :  { %v1968_v0 = vadd.f32 -0.0001984127, %v1967_v19 }
0x25c0   :  { %v1969_v23 = vmul.f32 %v1968_v0, %v3426_v40 }
0x25c2   :  { %v1970_v42 = vadd.f32 0.008333334, %v1969_v23 }
0x25c4   :  { %v1971_v37 = vmul.f32 %v1970_v42, %v3426_v40 }
0x25c6   :  { %v1972_v27 = vadd.f32 -0.16666667, %v1971_v37 }
0x25c8   :  { %v1973_v51 = vmul.f32 %v1972_v27, %v3426_v40 }
0x25ca   :  { %v1974_v55 = vadd.f32 1.0, %v1973_v51 }
0x25cc   :  { %v3433_v60 = vmul.f32 %v1974_v55, %v1963_v52 }
0x2629   :  { %v1688_v63 = vpop.f32.mrf.mxu1 }
0x262a   :  { %v1689_v47 = vadd.f32 %v1688_v63, %v2831_v5 }
0x262c   :  { %v1691_v6 = vmax.f32 %v1689_v47, 0.0 }
0x262e   :  { %v1692_v53 = vpack.c.bf16 %v1691_v6, %v1691_v6 }
0x2630   :  { %2502 = vmatmul.msk.bf16.vlgmr.msra.gmra.mxu0 %vm99_vm1, %v1692_v53 }
0x2631   :  { %1948 = vmatpush.bf16.msra.mxu0 %v2964_v54 }
0x2635   :  { %1949 = vmatpush.bf16.msra.mxu0 %v2968_v59 }
0x26ad   :  { %v1705_v62 = vpop.f32.mrf.mxu0 }
0x26ae   :  { %v1706_v36 = vadd.f32 %v1705_v62, %v2861_v17 }
0x26b0   :  { %v1709_v30 = vmax.f32 %v1706_v36, 0.0 }
0x26b2   :  { %v1710_v29 = vpack.c.bf16 %v1709_v30, %v1709_v30 }
0x26b4   :  { %2503 = vmatmul.msk.bf16.vlgmr.msrb.gmra.mxu1 %vm184_vm2, %v1710_v29 }
0x26b5   :  { %v1707_v39 = vpop.f32.mrf.mxu0  ;;  %2048 = vmatpush.msrb.mxu1 %v3184_v45 }
0x2731   :  { %v1723_v1 = vpop.f32.mrf.mxu1 }
0x2732   :  { %v3443_v61 = vadd.f32 %v1723_v1, %v2857_v16 }
0x2734   :  { %v1727_v28 = vpack.c.bf16 %v3443_v61, %v3443_v61 }
0x2736   :  { %v1729_v52 = vunpack.c.l.b16 %v1727_v28 }
0x2738   :  { %v1730_v4 = vpack.c.b16 %v1729_v52, %v1729_v52 }
0x2739   :  { %v1725_v18 = vpop.f32.mrf.mxu1 }
0x273a   :  { %1731 = vrot.lane.b32.xlu0 %v1730_v4, %s2756_s14  ;;  %1777 = vrot.lane.b32.xlu2 %v1730_v4, %s2757_s15 }
0x2794   :  { %v1778_v19 = vpop.permute.xlu2 %1777 }
0x2795   :  { %2506 = vmatmul.msk.bf16.vlgmr.msrb.gmra.mxu0 %vm184_vm2, %v1778_v19 }
0x2796   :  { %2133 = vmatpush.bf16.msrb.mxu0 %v2908_v14 }
0x27ac   :  { %v1732_v45 = vpop.permute.xlu0 %1731 }
0x27ad   :  { %2504 = vmatmul.msk.bf16.vlgmr.msra.gmra.mxu3 %vm184_vm2, %v1732_v45 }
0x27ae   :  { %2064 = vmatpush.bf16.msra.mxu3 %v2842_v9 }
0x27b2   :  { %2065 = vmatpush.bf16.msra.mxu3 %v2845_v10 }
0x2812   :  { %v1791_v0 = vpop.f32.mrf.mxu0 }
0x2813   :  { %v1792_v23 = vadd.f32 %v1791_v0, %v2883_v44 }
0x2815   :  { %v1795_v42 = vsel %vm184_vm2, %v1792_v23, -inf }
0x2816   :  { %1796 = vmax.xlane.f32.xlu1 %v1795_v42 }
0x281a   :  { %v1793_v37 = vpop.f32.mrf.mxu0 }
0x2830   :  { %v1745_v27 = vpop.f32.mrf.mxu3 }
0x2831   :  { %v1746_v51 = vadd.f32 %v1745_v27, %v2883_v44 }
0x2833   :  { %v1749_v55 = vsel %vm184_vm2, %v1746_v51, -inf }
0x2834   :  { %1750 = vmax.xlane.f32.xlu2 %v1749_v55 }
0x2838   :  { %v1747_v14 = vpop.f32.mrf.mxu3 }
0x2889   :  { %v1797_v63 = vpop.xlane.xlu1 %1796 }
0x288a   :  { %v1798_v47 = vsub.f32 %v1792_v23, %v1797_v63 }
0x288c   :  { %v1799_v6 = vmul.f32 1.442695, %v1798_v47 }
0x288e   :  { %2653 = vpow2.f32 %v1799_v6 }
0x2894   :  { %v2654_v9 = vpop.eup %2653 }
0x2895   :  { %v1801_v10 = vsel %vm184_vm2, %v2654_v9, 0.0 }
0x2896   :  { %1802 = vadd.xlane.f32.xlu0 %v1801_v10 }
0x28a7   :  { %v1751_v53 = vpop.xlane.xlu2 %1750 }
0x28a8   :  { %v1752_v62 = vsub.f32 %v1746_v51, %v1751_v53 }
0x28aa   :  { %v1753_v36 = vmul.f32 1.442695, %v1752_v62 }
0x28ac   :  { %2655 = vpow2.f32 %v1753_v36 }
0x28b2   :  { %v2656_v30 = vpop.eup %2655 }
0x28b3   :  { %v1755_v29 = vsel %vm184_vm2, %v2656_v30, 0.0 }
0x28b4   :  { %1756 = vadd.xlane.f32.xlu1 %v1755_v29 }
0x2909   :  { %v1803_v39 = vpop.xlane.xlu0 %1802 }
0x290a   :  { %2657 = vrcp.f32 %v1803_v39 }
0x2910   :  { %v2658_v1 = vpop.eup %2657 }
0x2911   :  { %v1805_v28 = vmul.f32 %v2658_v1, %v2654_v9 }
0x2913   :  { %v1806_v52 = vpack.c.bf16 %v1805_v28, %v1805_v28 }
0x2915   :  { %2507 = vmatmul.msk.bf16.vlgmr.msra.gmra.mxu1 %vm184_vm2, %v1806_v52 }
0x2916   :  { %2105 = vmatpush.bf16.xpose.msra.mxu1 %v2866_v33 }
0x2927   :  { %v1757_v4 = vpop.xlane.xlu1 %1756 }
0x2928   :  { %2659 = vrcp.f32 %v1757_v4 }
0x292e   :  { %v2660_v18 = vpop.eup %2659 }
0x292f   :  { %v1759_v19 = vmul.f32 %v2660_v18, %v2656_v30 }
0x2931   :  { %v1760_v45 = vpack.c.bf16 %v1759_v19, %v1759_v19 }
0x2933   :  { %2505 = vmatmul.msk.bf16.vlgmr.msrb.gmra.mxu2 %vm184_vm2, %v1760_v45 }
0x2934   :  { %2083 = vmatpush.bf16.msrb.mxu2 %v3211_v2 }
0x2992   :  { %v1819_v0 = vpop.f32.mrf.mxu1 }
0x2993   :  { %1824 = vrot.lane.b32.xlu2 %v1819_v0, %s2758_s24 }
0x299a   :  { %v1821_v23 = vpop.f32.mrf.mxu1 }
0x29b6   :  { %v1773_v42 = vpop.f32.mrf.mxu2 }
0x29be   :  { %v1775_v37 = vpop.f32.mrf.mxu2 }
0x29ed   :  { %v1825_v27 = vpop.permute.xlu2 %1824 }
0x29ee   :  { %v1827_v51 = vsel %vm184_vm2, %v1773_v42, %v1825_v27 }
0x29ef   :  { %v1828_v55 = vpack.c.bf16 %v1827_v51, %v1827_v51 }
0x29f1   :  { %2508 = vmatmul.msk.bf16.vlgmr.msrb.gmra.mxu3 %vm99_vm1, %v1828_v55 }
0x29f2   :  { %2151 = vmatpush.bf16.xpose.msrb.mxu3 %v2878_v41 }
0x2a74   :  { %v1841_v33 = vpop.f32.mrf.mxu3 }
0x2a75   :  { %v1842_v14 = vadd.f32 %v1841_v33, %v2946_v34 }
0x2a77   :  { %v1845_v63 = vadd.f32 %v1842_v14, %v3443_v61 }
0x2a79   :  { %v1846_v2 = vsel %vm99_vm1, %v1845_v63, 0.0 }
0x2a7a   :  { %1847 = vadd.xlane.f32.xlu0 %v1846_v2 }
0x2a7c   :  { %v1843_v47 = vpop.f32.mrf.mxu3 }
0x2a8e   :  { %1871 = vrot.lane.b32.xlu0 %v3392_v20, %s2756_s14 }
0x2aed   :  { %v1848_v6 = vpop.xlane.xlu0 %1847 }
0x2aee   :  { %v1849_v9 = vmul.f32 %v1848_v6, %v2958_v49 }
0x2af0   :  { %v1850_v10 = vsub.f32 %v1845_v63, %v1849_v9 }
0x2af2   :  { %v1851_v53 = vmul.f32 %v1850_v10, %v1850_v10 }
0x2af4   :  { %v1852_v62 = vsel %vm99_vm1, %v1851_v53, 0.0 }
0x2af5   :  { %1853 = vadd.xlane.f32.xlu1 %v1852_v62 }
0x2b00   :  { %v1872_v0 = vpop.permute.xlu0 %1871 }
0x2b68   :  { %v1854_v41 = vpop.xlane.xlu1 %1853 }
0x2b69   :  { %v1855_v36 = vmul.f32 %v1854_v41, %v2958_v49 }
0x2b6b   :  { %v1856_v30 = vadd.f32 1e-05, %v1855_v36 }
0x2b6d   :  { %2661 = vrsqrt.f32 %v1856_v30  ;;  %vm1863_vm11 = vweird.f32 %v1856_v30 }
0x2b73   :  { %v2662_v61 = vpop.eup %2661 }
0x2b74   :  { %v1858_v29 = vmul.f32 %v2662_v61, %v1856_v30  ;;  %vm1864_vm10 = vweird.f32 %v2662_v61 }
0x2b75   :  { %vm1865_vm12 = vmor %vm1863_vm11, %vm1864_vm10 }
0x2b76   :  { %v1859_v39 = vmul.f32 %v2662_v61, %v1858_v29  ;;  %v1976_v29 = vmul.f32 2.0876756e-09, %v3426_v40 }
0x2b78   :  { %v1860_v1 = vmul.f32 0.5, %v1859_v39  ;;  %v1977_v39 = vadd.f32 -2.755732e-07, %v1976_v29 }
0x2b7a   :  { %v1861_v28 = vsub.f32 1.5, %v1860_v1  ;;  %v1978_v1 = vmul.f32 %v1977_v39, %v3426_v40 }
0x2b7c   :  { %v1862_v52 = vmul.f32 %v2662_v61, %v1861_v28  ;;  %v1979_v28 = vadd.f32 2.4801588e-05, %v1978_v1 }
0x2b7e   :  { %v1866_v4 = vsel %vm1865_vm12, %v2662_v61, %v1862_v52  ;;  %v1980_v52 = vmul.f32 %v1979_v28, %v3426_v40 }
0x2b7f   :  { %v1867_v18 = vmul.f32 %v1866_v4, %v1850_v10 }
0x2b80   :  { %v1981_v4 = vadd.f32 -0.0013888889, %v1980_v52 }
0x2b81   :  { %v1868_v19 = vmul.f32 %v1867_v18, %v2954_v43  ;;  %v1570_v18 = vmul.f32 %v3383_v8, %v2991_v57 }
0x2b83   :  { %v1869_v45 = vadd.f32 %v1868_v19, %v2972_v11  ;;  %v1571_v19 = vmul.f32 %v3380_v7, %v2994_v58 }
0x2b85   :  { %v1874_v23 = vsel %vm99_vm1, %v1869_v45, %v1872_v0  ;;  %v1982_v45 = vmul.f32 %v1981_v4, %v3426_v40  ;;  %v3492_v0 = vadd.f32 %v1571_v19, %v1570_v18 }
0x2b86   :  { %v1875_v42 = vpack.c.bf16 %v1874_v23, %v1874_v23 }
0x2b88   :  { %2509 = vmatmul.msk.bf16.vlgmr.msra.gmra.mxu2 %vm412_vm7, %v1875_v42 }
0x2b89   :  { %2179 = vmatpush.bf16.msra.mxu2 %v2890_v56 }
0x2c0b   :  { %v1888_v37 = vpop.f32.mrf.mxu2 }
0x2c0c   :  { %v1889_v27 = vadd.f32 %v1888_v37, %v2981_v24  ;;  %v1983_v37 = vadd.f32 0.041666668, %v1982_v45 }
0x2c0e   :  { %2663 = vtanh.f32 %v1889_v27  ;;  %v2510_v33 = vmul.f32 -1.442695, %v1889_v27 }
0x2c10   :  { %2665 = vpow2.f32 %v2510_v33 }
0x2c13   :  { %v1890_v51 = vpop.f32.mrf.mxu2 }
0x2c14   :  { %v2664_v55 = vpop.eup %2663  ;;  %v1984_v51 = vmul.f32 %v1983_v37, %v3426_v40 }
0x2c15   :  { %1914 = vrot.lane.b32.xlu1 %v2664_v55, %s2753_s7 }
0x2c16   :  { %v2666_v14 = vpop.eup %2665  ;;  %v1985_v55 = vadd.f32 -0.5, %v1984_v51 }
0x2c17   :  { %v1895_v63 = vadd.f32 1.0, %v2666_v14 }
0x2c18   :  { %v1986_v7 = vmul.f32 %v1985_v55, %v3426_v40 }
0x2c19   :  { %2667 = vrcp.f32 %v1895_v63  ;;  %v1907_v56 = vand.u32 2147483648, %v1895_v63  ;;  %vm1901_vm5 = vweird.f32 %v1895_v63  ;;  %v1905_v53 = vand.u32 2147483647, %v1895_v63 }
0x2c1a   :  { %v1987_v8 = vadd.f32 1.0, %v1986_v7 }
0x2c1b   :  { %v1908_v41 = vor.u32 1.1754944e-38, %v1907_v56  ;;  %vm1906_vm8 = vcmp.eq.f32.partialorder %v1905_v53, 8.507059e+37 }
0x2c1f   :  { %v2668_v2 = vpop.eup %2667 }
0x2c20   :  { %v1897_v47 = vmul.f32 %v2668_v2, %v1895_v63  ;;  %vm1902_vm4 = vweird.f32 %v2668_v2 }
0x2c21   :  { %vm1903_vm6 = vmor %vm1901_vm5, %vm1902_vm4 }
0x2c22   :  { %v1898_v6 = vsub.f32 1.0, %v1897_v47 }
0x2c24   :  { %v1899_v9 = vmul.f32 %v2668_v2, %v1898_v6 }
0x2c26   :  { %v1900_v10 = vadd.f32 %v2668_v2, %v1899_v9 }
0x2c28   :  { %v1904_v62 = vsel %vm1903_vm6, %v2668_v2, %v1900_v10  ;;  %v1930_v2 = vmul.f32 %v3392_v20, %v2994_v58 }
0x2c29   :  { %v1909_v30 = vsel %vm1906_vm8, %v1908_v41, %v1904_v62 }
0x2c2a   :  { %v1912_v23 = vmul.f32 %v1909_v30, %v3492_v0 }
0x2c87   :  { %v1915_v36 = vpop.permute.xlu1 %1914 }
0x2c88   :  { %v1917_v61 = vmul.f32 %v1915_v36, %v1909_v30 }
0x2c8a   :  { %1919 = vrot.lane.b32.xlu2 %v1917_v61, %s2753_s7 }
0x2ce4   :  { %v1920_v42 = vpop.permute.xlu2 %1919 }
0x2ce5   :  { %v3495_v27 = vadd.f32 %v1920_v42, %v1912_v23 }
0x2ce7   :  { %2669 = vtanh.f32 %v3495_v27 }
0x2ced   :  { %v2670_v33 = vpop.eup %2669 }
0x2cee   :  { %1925 = vrot.lane.b32.xlu0 %v2670_v33, %s2753_s7 }
0x2cf6   :  { %1989 = vrot.lane.b32.xlu0 %v1987_v8, %s2763_s27 }
0x2d60   :  { %v1926_v14 = vpop.permute.xlu0 %1925 }
0x2d61   :  { %v1928_v63 = vmul.f32 %v1926_v14, %v1909_v30 }
0x2d63   :  { %v1929_v47 = vmul.f32 %v1928_v63, %v2991_v57 }
0x2d65   :  { %v3505_v6 = vadd.f32 %v1930_v2, %v1929_v47 }
0x2d67   :  { %v1935_v9 = vpack.c.bf16 %v3505_v6, %v3505_v6 }
0x2d68   :  { %v1990_v10 = vpop.permute.xlu0 %1989 }
0x2d69   :  { %v1992_v56 = vmul.f32 %v1990_v10, %v3418_v3  ;;  %1937 = vrot.lane.b32.xlu2 %v1935_v9, %s2748_s26 }
0x2d6b   :  { %v1993_v40 = vmul.f32 0.1, %v1992_v56 }
0x2d6d   :  { %1996 = vperm.xlu1 %2571, %v1993_v40  }
0x2d71   :  { %2001 = vrot.lane.b32.xlu2 %v3433_v60, %s2763_s27 }
0x2d75   :  { %2574 = vset.pattern.permute.xlu1 %v2766_v38 }
0x2dc3   :  { %v1938_v20 = vpop.permute.xlu2 %1937 }
0x2dc4   :  { %2511 = vmatmul.msk.bf16.vlgmr.msra.gmra.mxu0 %vm99_vm1, %v1938_v20 }
0x2dc5   :  { %2245 = vmatpush.bf16.msra.mxu0 %v3269_v46 }
0x2dc9   :  { %2246 = vmatpush.bf16.msra.mxu0 %v3275_v35 }
0x2dcb   :  { %v2002_v53 = vpop.permute.xlu2 %2001 }
0x2dcc   :  { %v2004_v62 = vmul.f32 %v2002_v53, %v3418_v3 }
0x2dcd   :  { %2247 = vmatpush.bf16.msra.mxu0 %v3281_v15 }
0x2dce   :  { %v2005_v41 = vmul.f32 0.1, %v2004_v62 }
0x2dd0   :  { %2008 = vperm.xlu0 %2572, %v2005_v41  }
0x2dd1   :  { %2248 = vmatpush.bf16.msra.mxu0 %v3287_v32 }
0x2ddf   :  { %v1997_v35 = vpop.permute.xlu1 %1996 }
0x2de0   :  { %v1999_v32 = vsel %vm121_vm13, %v1997_v35, 0.0 }
0x2e41   :  { %v1951_v36 = vpop.f32.mrf.mxu0 }
0x2e42   :  { %v1952_v60 = vadd.f32 %v1951_v36, %v3021_v22  ;;  %v2009_v1 = vpop.permute.xlu0 %2008 }
0x2e43   :  { %v2011_v15 = vsel %vm122_vm14, %v2009_v1, 0.0 }
0x2e44   :  { %v2512_v30 = vclamps-f32 %v1952_v60, 4.0  ;;  %v2513_v61 = vclamps-f32 %v1952_v60, 1.0  ;;  %v2012_v4 = vadd.f32 %v2011_v15, %v1999_v32 }
0x2e46   :  { %v2013_v29 = vmul.f32 0.1, %v2513_v61  ;;  %v2021_v39 = vmul.f32 0.1, %v2512_v30 }
0x2e48   :  { %2016 = vperm.xlu2 %2573, %v2013_v29   ;;  %2024 = vperm.xlu1 %2574, %v2021_v39  }
0x2e49   :  { %v1953_v46 = vpop.f32.mrf.mxu0 }
0x2e50   :  { %2575 = vset.pattern.permute.xlu1 %v2764_v21 }
0x2ea2   :  { %v2017_v28 = vpop.permute.xlu2 %2016 }
0x2ea3   :  { %v2019_v52 = vsel %vm123_vm15, %v2017_v28, 0.0 }
0x2ea4   :  { %v2020_v18 = vadd.f32 %v2019_v52, %v2012_v4 }
0x2eba   :  { %v2025_v19 = vpop.permute.xlu1 %2024 }
0x2ebb   :  { %v2027_v45 = vsel %vm124_vm3, %v2025_v19, 0.0 }
0x2ebc   :  { %v2028_v23 = vadd.f32 %v2027_v45, %v2020_v18 }
0x2ebe   :  { %v3531_v21 = vadd.f32 %v2028_v23, %v3418_v3 }
0x2ec0   :  { %v2318_v42 = vmul.f32 %v3531_v21, %v3007_v26  ;;  %2514 = vmatmul.msk.f32.vlgmr.msrb.gmra.mxu1 %vm125_vm0, %v3531_v21 }
0x2ec1   :  { %2200 = vmatpush.bf16.msrb.mxu1 %v2932_v25 }
0x2ec2   :  { %v2319_v37 = vadd.f32 0.5, %v2318_v42 }
0x2ec4   :  { %v2320_v51 = vfloor.f32 %v2319_v37 }
0x2ec5   :  { %2201 = vmatpush.bf16.msrb.mxu1 %v2939_v31 }
0x2ec6   :  { %v2321_v55 = vmul.f32 6.2831855, %v2320_v51 }
0x2ec8   :  { %v2322_v33 = vsub.f32 %v3531_v21, %v2321_v55 }
0x2eca   :  { %v3540_v7 = vmul.f32 %v2322_v33, %v2322_v33 }
0x2ecc   :  { %v2324_v8 = vmul.f32 -2.5052108e-08, %v3540_v7 }
0x2ece   :  { %v2325_v14 = vadd.f32 2.7557319e-06, %v2324_v8 }
0x2ed0   :  { %v2326_v63 = vmul.f32 %v2325_v14, %v3540_v7 }
0x2ed2   :  { %v2327_v26 = vadd.f32 -0.0001984127, %v2326_v63 }
0x2ed4   :  { %v2328_v2 = vmul.f32 %v2327_v26, %v3540_v7 }
0x2ed6   :  { %v2329_v47 = vadd.f32 0.008333334, %v2328_v2 }
0x2ed8   :  { %v2330_v25 = vmul.f32 %v2329_v47, %v3540_v7 }
0x2eda   :  { %v2331_v9 = vadd.f32 -0.16666667, %v2330_v25 }
0x2edc   :  { %v2332_v10 = vmul.f32 %v2331_v9, %v3540_v7 }
0x2ede   :  { %v2333_v31 = vadd.f32 1.0, %v2332_v10 }
0x2ee0   :  { %v3547_v56 = vmul.f32 %v2333_v31, %v2322_v33 }
0x2f3d   :  { %v2050_v40 = vpop.f32.mrf.mxu1 }
0x2f3e   :  { %v2051_v20 = vadd.f32 %v2050_v40, %v2831_v5 }
0x2f40   :  { %v2053_v53 = vmax.f32 %v2051_v20, 0.0 }
0x2f42   :  { %v2054_v62 = vpack.c.bf16 %v2053_v53, %v2053_v53 }
0x2f44   :  { %2515 = vmatmul.msk.bf16.vlgmr.msra.gmra.mxu3 %vm99_vm1, %v2054_v62 }
0x2f45   :  { %2307 = vmatpush.bf16.msra.mxu3 %v2964_v54 }
0x2f49   :  { %2308 = vmatpush.bf16.msra.mxu3 %v2968_v59 }
0x2fc7   :  { %v2067_v41 = vpop.f32.mrf.mxu3 }
0x2fc8   :  { %v2068_v36 = vadd.f32 %v2067_v41, %v2861_v17 }
0x2fca   :  { %v2071_v60 = vmax.f32 %v2068_v36, 0.0 }
0x2fcc   :  { %v2072_v30 = vpack.c.bf16 %v2071_v60, %v2071_v60  ;;  %v2335_v60 = vmul.f32 2.0876756e-09, %v3540_v7 }
0x2fce   :  { %2516 = vmatmul.msk.bf16.vlgmr.msrb.gmra.mxu2 %vm184_vm2, %v2072_v30  ;;  %v2336_v30 = vadd.f32 -2.755732e-07, %v2335_v60 }
0x2fcf   :  { %v2069_v61 = vpop.f32.mrf.mxu3 }
0x3051   :  { %v2085_v29 = vpop.f32.mrf.mxu2 }
0x3052   :  { %v2086_v39 = vadd.f32 %v2085_v29, %v2857_v16 }
0x3054   :  { %v2089_v5 = vpack.c.bf16 %v2086_v39, %v2086_v39 }
0x3056   :  { %v2091_v46 = vunpack.c.l.b16 %v2089_v5  ;;  %v2337_v5 = vmul.f32 %v2336_v30, %v3540_v7 }
0x3058   :  { %v2092_v35 = vpack.c.b16 %v2091_v46, %v2091_v46 }
0x3059   :  { %v2087_v1 = vpop.f32.mrf.mxu2 }
0x305a   :  { %2093 = vrot.lane.b32.xlu1 %v2092_v35, %s2756_s14  ;;  %2139 = vrot.lane.b32.xlu2 %v2092_v35, %s2757_s15  ;;  %v2338_v1 = vadd.f32 2.4801588e-05, %v2337_v5 }
0x30b4   :  { %v2140_v54 = vpop.permute.xlu2 %2139 }
0x30b5   :  { %2519 = vmatmul.msk.bf16.vlgmr.msrb.gmra.mxu3 %vm184_vm2, %v2140_v54 }
0x30cc   :  { %v2094_v17 = vpop.permute.xlu1 %2093 }
0x30cd   :  { %2517 = vmatmul.msk.bf16.vlgmr.msra.gmra.mxu1 %vm184_vm2, %v2094_v17  ;;  %v2339_v17 = vmul.f32 %v2338_v1, %v3540_v7  ;;  %v1932_v1 = vmul.f32 %v3495_v27, %v2991_v57  ;;  %v2292_v27 = vmul.f32 %v3505_v6, %v2994_v58 }
0x3138   :  { %v2153_v59 = vpop.f32.mrf.mxu3 }
0x3139   :  { %v2154_v28 = vadd.f32 %v2153_v59, %v2883_v44  ;;  %v2340_v59 = vadd.f32 -0.0013888889, %v2339_v17 }
0x313b   :  { %v2157_v15 = vsel %vm184_vm2, %v2154_v28, -inf }
0x313c   :  { %2158 = vmax.xlane.f32.xlu0 %v2157_v15 }
0x3140   :  { %v2155_v16 = vpop.f32.mrf.mxu3 }
0x314a   :  { %v2107_v32 = vpop.f32.mrf.mxu1 }
0x314b   :  { %v2108_v52 = vadd.f32 %v2107_v32, %v2883_v44 }
0x314d   :  { %v2111_v4 = vsel %vm184_vm2, %v2108_v52, -inf }
0x314e   :  { %2112 = vmax.xlane.f32.xlu2 %v2111_v4 }
0x3152   :  { %v2109_v18 = vpop.f32.mrf.mxu1 }
0x31af   :  { %v2159_v19 = vpop.xlane.xlu0 %2158 }
0x31b0   :  { %v2160_v45 = vsub.f32 %v2154_v28, %v2159_v19  ;;  %v2341_v28 = vmul.f32 %v2340_v59, %v3540_v7 }
0x31b2   :  { %v2161_v23 = vmul.f32 1.442695, %v2160_v45  ;;  %v2342_v15 = vadd.f32 0.041666668, %v2341_v28 }
0x31b4   :  { %2671 = vpow2.f32 %v2161_v23  ;;  %v2343_v16 = vmul.f32 %v2342_v15, %v3540_v7 }
0x31b6   :  { %v2344_v32 = vadd.f32 -0.5, %v2343_v16 }
0x31ba   :  { %v2672_v42 = vpop.eup %2671 }
0x31bb   :  { %v2163_v37 = vsel %vm184_vm2, %v2672_v42, 0.0 }
0x31bc   :  { %2164 = vadd.xlane.f32.xlu1 %v2163_v37 }
0x31c1   :  { %v2113_v51 = vpop.xlane.xlu2 %2112 }
0x31c2   :  { %v2114_v55 = vsub.f32 %v2108_v52, %v2113_v51 }
0x31c4   :  { %v2115_v33 = vmul.f32 1.442695, %v2114_v55 }
0x31c6   :  { %2673 = vpow2.f32 %v2115_v33 }
0x31cc   :  { %v2674_v8 = vpop.eup %2673 }
0x31cd   :  { %v2117_v14 = vsel %vm184_vm2, %v2674_v8, 0.0 }
0x31ce   :  { %2118 = vadd.xlane.f32.xlu0 %v2117_v14 }
0x322f   :  { %v2165_v44 = vpop.xlane.xlu1 %2164 }
0x3230   :  { %2675 = vrcp.f32 %v2165_v44 }
0x3236   :  { %v2676_v63 = vpop.eup %2675 }
0x3237   :  { %v2167_v26 = vmul.f32 %v2676_v63, %v2672_v42 }
0x3239   :  { %v2168_v2 = vpack.c.bf16 %v2167_v26, %v2167_v26 }
0x323b   :  { %2520 = vmatmul.msk.bf16.vlgmr.msra.gmra.mxu2 %vm184_vm2, %v2168_v2 }
0x3241   :  { %v2119_v47 = vpop.xlane.xlu0 %2118 }
0x3242   :  { %2677 = vrcp.f32 %v2119_v47 }
0x3248   :  { %v2678_v25 = vpop.eup %2677 }
0x3249   :  { %v2121_v9 = vmul.f32 %v2678_v25, %v2674_v8 }
0x324b   :  { %v2122_v10 = vpack.c.bf16 %v2121_v9, %v2121_v9 }
0x324d   :  { %2518 = vmatmul.msk.bf16.vlgmr.msrb.gmra.mxu0 %vm184_vm2, %v2122_v10 }
0x32be   :  { %v2181_v31 = vpop.f32.mrf.mxu2 }
0x32bf   :  { %2186 = vrot.lane.b32.xlu2 %v2181_v31, %s2758_s24 }
0x32c6   :  { %v2183_v40 = vpop.f32.mrf.mxu2 }
0x32ca   :  { %v2135_v20 = vpop.f32.mrf.mxu0 }
0x32d2   :  { %v2137_v53 = vpop.f32.mrf.mxu0 }
0x3319   :  { %v2187_v62 = vpop.permute.xlu2 %2186 }
0x331a   :  { %v2189_v41 = vsel %vm184_vm2, %v2135_v20, %v2187_v62 }
0x331b   :  { %v2190_v36 = vpack.c.bf16 %v2189_v41, %v2189_v41 }
0x331d   :  { %2521 = vmatmul.msk.bf16.vlgmr.msrb.gmra.mxu1 %vm99_vm1, %v2190_v36 }
0x339a   :  { %v2203_v61 = vpop.f32.mrf.mxu1 }
0x339b   :  { %v2204_v29 = vadd.f32 %v2203_v61, %v2946_v34  ;;  %v2345_v34 = vmul.f32 %v2344_v32, %v3540_v7 }
0x339d   :  { %v2207_v46 = vadd.f32 %v2204_v29, %v2086_v39  ;;  %v2346_v39 = vadd.f32 1.0, %v2345_v34 }
0x339f   :  { %v2208_v35 = vsel %vm99_vm1, %v2207_v46, 0.0 }
0x33a0   :  { %2209 = vadd.xlane.f32.xlu1 %v2208_v35 }
0x33a2   :  { %v2205_v54 = vpop.f32.mrf.mxu1 }
0x33a3   :  { %v1933_v54 = vmul.f32 %v3492_v0, %v2994_v58 }
0x33a5   :  { %v1934_v17 = vadd.f32 %v1933_v54, %v1932_v1 }
0x33b9   :  { %2233 = vrot.lane.b32.xlu1 %v3505_v6, %s2756_s14 }
0x33c1   :  { %2348 = vrot.lane.b32.xlu1 %v2346_v39, %s2763_s27 }
0x3413   :  { %v2210_v52 = vpop.xlane.xlu1 %2209 }
0x3414   :  { %v2211_v4 = vmul.f32 %v2210_v52, %v2958_v49 }
0x3416   :  { %v2212_v18 = vsub.f32 %v2207_v46, %v2211_v4 }
0x3418   :  { %v2213_v19 = vmul.f32 %v2212_v18, %v2212_v18 }
0x341a   :  { %v2214_v45 = vsel %vm99_vm1, %v2213_v19, 0.0 }
0x341b   :  { %2215 = vadd.xlane.f32.xlu0 %v2214_v45 }
0x342b   :  { %v2234_v47 = vpop.permute.xlu1 %2233 }
0x3433   :  { %v2349_v4 = vpop.permute.xlu1 %2348 }
0x3434   :  { %v2351_v45 = vmul.f32 %v2349_v4, %v3531_v21 }
0x348e   :  { %v2216_v23 = vpop.xlane.xlu0 %2215 }
0x348f   :  { %v2217_v42 = vmul.f32 %v2216_v23, %v2958_v49 }
0x3491   :  { %v2218_v37 = vadd.f32 1e-05, %v2217_v42 }
0x3493   :  { %2679 = vrsqrt.f32 %v2218_v37  ;;  %vm2225_vm10 = vweird.f32 %v2218_v37 }
0x3499   :  { %v2680_v51 = vpop.eup %2679 }
0x349a   :  { %v2220_v55 = vmul.f32 %v2680_v51, %v2218_v37  ;;  %vm2226_vm9 = vweird.f32 %v2680_v51 }
0x349b   :  { %vm2227_vm11 = vmor %vm2225_vm10, %vm2226_vm9 }
0x349c   :  { %v2221_v33 = vmul.f32 %v2680_v51, %v2220_v55 }
0x349e   :  { %v2222_v7 = vmul.f32 0.5, %v2221_v33 }
0x34a0   :  { %v2223_v8 = vsub.f32 1.5, %v2222_v7 }
0x34a2   :  { %v2224_v14 = vmul.f32 %v2680_v51, %v2223_v8 }
0x34a4   :  { %v2228_v44 = vsel %vm2227_vm11, %v2680_v51, %v2224_v14 }
0x34a5   :  { %v2229_v63 = vmul.f32 %v2228_v44, %v2212_v18 }
0x34a7   :  { %v2230_v26 = vmul.f32 %v2229_v63, %v2954_v43 }
0x34a9   :  { %v2231_v2 = vadd.f32 %v2230_v26, %v2972_v11 }
0x34ab   :  { %v2236_v49 = vsel %vm99_vm1, %v2231_v2, %v2234_v47 }
0x34ac   :  { %v2237_v25 = vpack.c.bf16 %v2236_v49, %v2236_v49 }
0x34ae   :  { %2522 = vmatmul.msk.bf16.vlgmr.msra.gmra.mxu0 %vm412_vm7, %v2237_v25 }
0x352b   :  { %v2250_v9 = vpop.f32.mrf.mxu0 }
0x352c   :  { %v2251_v10 = vadd.f32 %v2250_v9, %v2981_v24 }
0x352e   :  { %2681 = vtanh.f32 %v2251_v10  ;;  %v2523_v20 = vmul.f32 -1.442695, %v2251_v10 }
0x3530   :  { %2683 = vpow2.f32 %v2523_v20 }
0x3533   :  { %v2252_v31 = vpop.f32.mrf.mxu0 }
0x3534   :  { %v2682_v40 = vpop.eup %2681 }
0x3535   :  { %2276 = vrot.lane.b32.xlu0 %v2682_v40, %s2753_s7 }
0x3536   :  { %v2684_v53 = vpop.eup %2683 }
0x3537   :  { %v2257_v43 = vadd.f32 1.0, %v2684_v53 }
0x3539   :  { %2685 = vrcp.f32 %v2257_v43  ;;  %v2269_v30 = vand.u32 2147483648, %v2257_v43  ;;  %vm2263_vm7 = vweird.f32 %v2257_v43  ;;  %v2267_v61 = vand.u32 2147483647, %v2257_v43 }
0x353b   :  { %v2270_v29 = vor.u32 1.1754944e-38, %v2269_v30  ;;  %vm2268_vm5 = vcmp.eq.f32.partialorder %v2267_v61, 8.507059e+37 }
0x353f   :  { %v2686_v11 = vpop.eup %2685 }
0x3540   :  { %v2259_v62 = vmul.f32 %v2686_v11, %v2257_v43  ;;  %vm2264_vm12 = vweird.f32 %v2686_v11 }
0x3541   :  { %vm2265_vm4 = vmor %vm2263_vm7, %vm2264_vm12 }
0x3542   :  { %v2260_v41 = vsub.f32 1.0, %v2259_v62 }
0x3544   :  { %v2261_v36 = vmul.f32 %v2686_v11, %v2260_v41 }
0x3546   :  { %v2262_v60 = vadd.f32 %v2686_v11, %v2261_v36 }
0x3548   :  { %v2266_v24 = vsel %vm2265_vm4, %v2686_v11, %v2262_v60 }
0x3549   :  { %v2271_v46 = vsel %vm2268_vm5, %v2270_v29, %v2266_v24 }
0x354a   :  { %v2274_v59 = vmul.f32 %v2271_v46, %v1934_v17 }
0x35a7   :  { %v2277_v5 = vpop.permute.xlu0 %2276 }
0x35a8   :  { %v2279_v35 = vmul.f32 %v2277_v5, %v2271_v46 }
0x35aa   :  { %2281 = vrot.lane.b32.xlu2 %v2279_v35, %s2753_s7 }
0x3604   :  { %v2282_v28 = vpop.permute.xlu2 %2281 }
0x3605   :  { %v2284_v15 = vadd.f32 %v2282_v28, %v2274_v59 }
0x3607   :  { %2687 = vtanh.f32 %v2284_v15 }
0x360d   :  { %v2688_v16 = vpop.eup %2687 }
0x360e   :  { %2287 = vrot.lane.b32.xlu2 %v2688_v16, %s2753_s7 }
0x3616   :  { %2360 = vrot.lane.b32.xlu2 %v3547_v56, %s2763_s27  ;;  %v2352_v56 = vmul.f32 0.1, %v2351_v45 }
0x3668   :  { %v2288_v32 = vpop.permute.xlu2 %2287 }
0x3669   :  { %v2290_v34 = vmul.f32 %v2288_v32, %v2271_v46 }
0x366b   :  { %v2291_v39 = vmul.f32 %v2290_v34, %v2991_v57 }
0x366d   :  { %v2293_v52 = vadd.f32 %v2292_v27, %v2291_v39 }
0x366f   :  { %v2294_v0 = vpack.c.bf16 %v2293_v52, %v2293_v52 }
0x3670   :  { %v2361_v18 = vpop.permute.xlu2 %2360 }
0x3671   :  { %v2363_v19 = vmul.f32 %v2361_v18, %v3531_v21  ;;  %2296 = vrot.lane.b32.xlu0 %v2294_v0, %s2748_s26  ;;  %s2768_s26 = smov 40  }
0x3673   :  { %v2364_v23 = vmul.f32 0.1, %v2363_v19 }
0x3675   :  { %2367 = vperm.xlu1 %2575, %v2364_v23  }
0x3679   :  { %2355 = vperm.xlu0 %2572, %v2352_v56  }
0x367d   :  { %2389 = vrot.lane.b32.xlu1 %v3160_v48, %s2752_s3 }
0x3681   :  { %2576 = vset.pattern.permute.xlu0 %v2766_v38 }
0x3685   :  { %2395 = vrot.lane.b32.xlu1 %v3418_v3, %s2767_s2 }
0x36e3   :  { %v2297_v57 = vpop.permute.xlu0 %2296 }
0x36e4   :  { %2524 = vmatmul.msk.bf16.vlgmr.msra.gmra.mxu3 %vm99_vm1, %v2297_v57 }
0x36e7   :  { %v2368_v48 = vpop.permute.xlu1 %2367 }
0x36eb   :  { %v2356_v38 = vpop.permute.xlu0 %2355 }
0x36ec   :  { %v2358_v7 = vsel %vm121_vm13, %v2356_v38, 0.0  ;;  %vm2407_vm13 = vcmask 195584  }
0x36ef   :  { %v2390_v49 = vpop.permute.xlu1 %2389 }
0x36f0   :  { %v2405_v25 = vsel %vm125_vm0, %v3046_v13, %v2390_v49 }
0x36f7   :  { %v2396_v31 = vpop.permute.xlu1 %2395 }
0x3767   :  { %v2310_v58 = vpop.f32.mrf.mxu3 }
0x3768   :  { %v2311_v6 = vadd.f32 %v2310_v58, %v3021_v22  ;;  %v2370_v22 = vsel %vm122_vm14, %v2368_v48, 0.0  ;;  %vm2410_vm14 = vcmask 326656  }
0x3769   :  { %v2371_v14 = vadd.f32 %v2370_v22, %v2358_v7 }
0x376a   :  { %v2525_v42 = vclamps-f32 %v2311_v6, 4.0  ;;  %v2526_v37 = vclamps-f32 %v2311_v6, 1.0 }
0x376c   :  { %v2372_v51 = vmul.f32 0.1, %v2526_v37  ;;  %v2380_v55 = vmul.f32 0.1, %v2525_v42 }
0x376e   :  { %2375 = vperm.xlu2 %2573, %v2372_v51   ;;  %2383 = vperm.xlu0 %2576, %v2380_v55  }
0x376f   :  { %v2312_v33 = vpop.f32.mrf.mxu3 }
0x3776   :  { %2392 = vrot.lane.b32.xlu2 %v3301_v12, %s2758_s24 }
0x377e   :  { %2398 = vrot.lane.b32.xlu2 %v3531_v21, %s2753_s7 }
0x37c8   :  { %v2376_v3 = vpop.permute.xlu2 %2375 }
0x37c9   :  { %v2378_v8 = vsel %vm123_vm15, %v2376_v3, 0.0  ;;  %vm2412_vm15 = vcmask 392192  }
0x37ca   :  { %v2379_v44 = vadd.f32 %v2378_v8, %v2371_v14 }
0x37d0   :  { %v2393_v47 = vpop.permute.xlu2 %2392 }
0x37d1   :  { %v2406_v9 = vsel %vm184_vm2, %v2405_v25, %v2393_v47 }
0x37d2   :  { %v2408_v40 = vsel %vm2407_vm13, %v2406_v9, %v2396_v31 }
0x37d8   :  { %v2399_v10 = vpop.permute.xlu2 %2398 }
0x37d9   :  { %v2409_v50 = vsel %vm99_vm1, %v2408_v40, %v2399_v10 }
0x37e0   :  { %v2384_v63 = vpop.permute.xlu0 %2383 }
0x37e1   :  { %v2386_v12 = vsel %vm124_vm3, %v2384_v63, 0.0 }
0x37e2   :  { %v2387_v26 = vadd.f32 %v2386_v12, %v2379_v44 }
0x37e4   :  { %v2388_v2 = vadd.f32 %v2387_v26, %v3531_v21 }
0x37e6   :  { %2402 = vrot.lane.b32.xlu0 %v2388_v2, %s2768_s26 }
0x3858   :  { %v2403_v20 = vpop.permute.xlu0 %2402 }
0x3859   :  { %v2411_v53 = vsel %vm2410_vm14, %v2409_v50, %v2403_v20 }
0x385a   :  { %2413 = vst.msk [vmem:[%s3636_s5] sm:$0xff] %vm2412_vm15, %v2411_v53 }
0x385b   :  { %2418 = vsyncpa [#allocation3], 1 }
0x385c   :  { %2419 = vsyncpa [#allocation5], 1 }

</bundles_post_ra>
